<compile_context>
chip_gen: v6e
topology: v6e:2x2x1
jax: 0.10.0
libtpu: 0.0.40
codegen_flags: <defaults>
</compile_context>

<pallas_src>
import functools

import jax
import jax.numpy as jnp
from jax import lax
from jax.experimental import pallas as pl
from jax.experimental.pallas import tpu as pltpu

_BN_EPS = 1e-5
_LANE = 128
_VMEM_LIMIT = 48 * 1024 * 1024  # scoped-VMEM budget; safe on v5e/v6e/v7x.


def _conv_stats_kernel(*refs, pre_act):
    """3x3 conv (9 shifted MXU matmuls) + per-channel sum / sumsq partials.

    If `pre_act`, the previous stage's BatchNorm (y*scale+shift) + ReLU is
    applied in f32 to every input tap before the bf16 cast feeding the MXU.
    """
    if pre_act:
        xp_ref, w_ref, scale_ref, shift_ref, y_ref, stat_ref = refs
    else:
        xp_ref, w_ref, y_ref, stat_ref = refs

    _, th, wo, cp = y_ref.shape
    rows = th * wo
    h0 = pl.program_id(1) * th

    @pl.when(pl.program_id(1) == 0)
    def _init():
        stat_ref[...] = jnp.zeros_like(stat_ref)

    if pre_act:
        scale = scale_ref[...]          # (1, Cp) f32
        shift = shift_ref[...]

    acc = None
    for k in range(9):                  # static unroll over the 3x3 taps
        dh, dw = k // 3, k % 3
        a = xp_ref[0, pl.ds(h0 + dh, th), dw:dw + wo, :].reshape(rows, cp)
        if pre_act:
            a = jnp.maximum(a.astype(jnp.float32) * scale + shift, 0.0)
        a = a.astype(w_ref.dtype)       # bf16 MXU operand, f32 accumulation
        t = jnp.dot(a, w_ref[k], preferred_element_type=jnp.float32)
        acc = t if acc is None else acc + t

    y_ref[0] = acc.reshape(th, wo, cp)
    # single-pass BN statistics: per-channel sum and sum-of-squares (f32).
    stat_ref[0, 0:1, :] += jnp.sum(acc, axis=0, keepdims=True)
    stat_ref[0, 1:2, :] += jnp.sum(acc * acc, axis=0, keepdims=True)


def _bn_residual_kernel(y_ref, res_ref, scale_ref, shift_ref, o_ref):
    y = y_ref[...]                                    # (1, th, w, Cp) f32
    res = res_ref[...].astype(jnp.float32)            # residual tile, input dtype
    o_ref[...] = (res + y * scale_ref[...] + shift_ref[...]).astype(o_ref.dtype)


def _conv_stats_call(xp, w9, scale, shift, *, th, pre_act):
    n, hp, wp, cp = xp.shape
    h, wo = hp - 2, wp - 2
    nh = h // th

    in_specs = [
        # Full padded image per batch element: revisited across h-tiles so it
        # is DMA'd once per image, double-buffered across the batch axis.
        pl.BlockSpec((1, hp, wp, cp), lambda i, j: (i, 0, 0, 0)),
        pl.BlockSpec((9, cp, cp), lambda i, j: (0, 0, 0)),
    ]
    args = [xp, w9]
    if pre_act:
        in_specs += [pl.BlockSpec((1, cp), lambda i, j: (0, 0)),
                     pl.BlockSpec((1, cp), lambda i, j: (0, 0))]
        args += [scale, shift]

    y, stats = pl.pallas_call(
        functools.partial(_conv_stats_kernel, pre_act=pre_act),
        grid=(n, nh),
        in_specs=in_specs,
        out_specs=(
            pl.BlockSpec((1, th, wo, cp), lambda i, j: (i, j, 0, 0)),
            # per-image stats accumulator, revisited across the h-tile axis
            pl.BlockSpec((1, 8, cp), lambda i, j: (i, 0, 0)),
        ),
        out_shape=(
            jax.ShapeDtypeStruct((n, h, wo, cp), jnp.float32),
            jax.ShapeDtypeStruct((n, 8, cp), jnp.float32),
        ),
        compiler_params=pltpu.CompilerParams(
            dimension_semantics=("parallel", "arbitrary"),
            vmem_limit_bytes=_VMEM_LIMIT),
    )(*args)
    return y, stats


def _bn_residual_call(y_raw, res, scale, shift, *, th):
    n, h, wo, cp = y_raw.shape
    nh = h // th
    return pl.pallas_call(
        _bn_residual_kernel,
        grid=(n, nh),
        in_specs=[
            pl.BlockSpec((1, th, wo, cp), lambda i, j: (i, j, 0, 0)),
            pl.BlockSpec((1, th, wo, cp), lambda i, j: (i, j, 0, 0)),
            pl.BlockSpec((1, cp), lambda i, j: (0, 0)),
            pl.BlockSpec((1, cp), lambda i, j: (0, 0)),
        ],
        out_specs=pl.BlockSpec((1, th, wo, cp), lambda i, j: (i, j, 0, 0)),
        out_shape=jax.ShapeDtypeStruct((n, h, wo, cp), res.dtype),
        compiler_params=pltpu.CompilerParams(
            dimension_semantics=("parallel", "parallel"),
            vmem_limit_bytes=_VMEM_LIMIT),
    )(y_raw, res, scale, shift)


def _round_up(x, m):
    return (x + m - 1) // m * m


def _pick_tile_h(h, w, cp, budget=1 << 20):
    """Largest divisor of h (keeping >=2 h-tiles when h>1) whose f32 output
    tile stays under `budget` bytes."""
    best = 1
    for th in range(1, h + 1):
        if h % th:
            continue
        if th * w * cp * 4 > budget:
            break
        if th < h or h == 1:
            best = th
    return best


def _finalize_stats(stats, count, gamma, beta):
    """Fold partial sums into BN affine: y_norm = y*scale + shift (f32)."""
    s = jnp.sum(stats[:, 0, :], axis=0)
    q = jnp.sum(stats[:, 1, :], axis=0)
    mean = s / count
    var = jnp.maximum(q / count - mean * mean, 0.0)
    scale = gamma * lax.rsqrt(var + _BN_EPS)
    shift = beta - mean * scale
    return scale.reshape(1, -1), shift.reshape(1, -1)


def _prep_weight(w_oihw, pad_c, dtype):
    # OIHW -> HWIO, zero-pad channels to Cp, flatten 3x3 taps -> (9, Cp, Cp).
    w_hwio = jnp.transpose(w_oihw, (2, 3, 1, 0))
    w_hwio = jnp.pad(w_hwio, ((0, 0), (0, 0), (0, pad_c), (0, pad_c)))
    cp = w_hwio.shape[-1]
    return w_hwio.reshape(9, cp, cp).astype(dtype)


def resnet_block_forward(x_nchw, params, *, mxu_dtype=jnp.bfloat16):
    """ResnetBlock.forward: out = x + conv_block(x)
    (padding_type='reflect', norm=BatchNorm2d training-mode batch stats,
    use_dropout=False, use_bias=False)."""
    w1, g1, b1, w2, g2, b2 = params
    n, c, h, w = x_nchw.shape
    cp = _round_up(c, _LANE)
    pad_c = cp - c
    count = float(n * h * w)

    x = jnp.transpose(x_nchw, (0, 2, 3, 1))                   # NCHW -> NHWC
    x = jnp.pad(x, ((0, 0), (0, 0), (0, 0), (0, pad_c)))      # lane-dense C

    w1m = _prep_weight(w1, pad_c, mxu_dtype)
    w2m = _prep_weight(w2, pad_c, mxu_dtype)
    g1p = jnp.pad(g1.astype(jnp.float32), (0, pad_c))
    b1p = jnp.pad(b1.astype(jnp.float32), (0, pad_c))
    g2p = jnp.pad(g2.astype(jnp.float32), (0, pad_c))
    b2p = jnp.pad(b2.astype(jnp.float32), (0, pad_c))

    th = _pick_tile_h(h, w, cp)

    # stage 1: reflect pad -> conv1 (+ BN1 batch-stat partials).
    xp1 = jnp.pad(x.astype(mxu_dtype), ((0, 0), (1, 1), (1, 1), (0, 0)),
                  mode="reflect")
    y1_raw, st1 = _conv_stats_call(xp1, w1m, None, None, th=th, pre_act=False)
    scale1, shift1 = _finalize_stats(st1, count, g1p, b1p)

    # stage 2: BN1+ReLU fused into the tap reads -> reflect pad -> conv2 + stats.
    # TODO(synk): for very large H*W the whole padded image no longer fits VMEM
    # per grid step; switch the input to memory_space=pl.ANY with manual halo DMA.
    y1p = jnp.pad(y1_raw, ((0, 0), (1, 1), (1, 1), (0, 0)), mode="reflect")
    y2_raw, st2 = _conv_stats_call(y1p, w2m, scale1, shift1, th=th, pre_act=True)
    scale2, shift2 = _finalize_stats(st2, count, g2p, b2p)

    # stage 3: BN2 + residual add (residual rides the same tiling, input dtype).
    out = _bn_residual_call(y2_raw, x, scale2, shift2, th=th)

    out = out[..., :c]
    return jnp.transpose(out, (0, 3, 1, 2))                   # NHWC -> NCHW


def _reference(x_nchw, params, mxu_dtype=jnp.bfloat16):
    # Pure-JAX reference mirroring the PyTorch forward with the same precision
    # policy (bf16 conv operands, f32 accumulation and BN math).
    w1, g1, b1, w2, g2, b2 = params

    def conv_bn(x, wo, g, b, relu):
        xp = jnp.pad(x.astype(mxu_dtype), ((0, 0), (0, 0), (1, 1), (1, 1)),
                     mode="reflect")
        y = lax.conv_general_dilated(
            xp, wo.astype(mxu_dtype), (1, 1), "VALID",
            dimension_numbers=("NCHW", "OIHW", "NCHW"),
            preferred_element_type=jnp.float32)
        mean = jnp.mean(y, axis=(0, 2, 3), keepdims=True)
        var = jnp.mean((y - mean) ** 2, axis=(0, 2, 3), keepdims=True)
        y = (y - mean) * lax.rsqrt(var + _BN_EPS)
        y = y * g.reshape(1, -1, 1, 1) + b.reshape(1, -1, 1, 1)
        return jnp.maximum(y, 0.0) if relu else y

    h1 = conv_bn(x_nchw, w1, g1, b1, True)
    h2 = conv_bn(h1, w2, g2, b2, False)
    return x_nchw + h2


if __name__ == "__main__":
    key = jax.random.PRNGKey(0)
    n, dim, h, w = 2, 8, 16, 16  # batch=2, channels(dim)=8, spatial=16
    k0, k1, k2 = jax.random.split(key, 3)

    x = jax.random.normal(k0, (n, dim, h, w), jnp.float32)

    # Deterministic parameter init (Conv2d OIHW weights, no bias; BN affine=1/0).
    fan_in = dim * 9
    w1 = jax.random.normal(k1, (dim, dim, 3, 3), jnp.float32) / jnp.sqrt(fan_in)
    w2 = jax.random.normal(k2, (dim, dim, 3, 3), jnp.float32) / jnp.sqrt(fan_in)
    g1 = jnp.ones((dim,), jnp.float32)
    b1 = jnp.zeros((dim,), jnp.float32)
    g2 = jnp.ones((dim,), jnp.float32)
    b2 = jnp.zeros((dim,), jnp.float32)
    params = (w1, g1, b1, w2, g2, b2)

    out = jax.jit(resnet_block_forward)(x, params)
    out = jax.block_until_ready(out)

    ref = _reference(x, params)
    assert out.shape == x.shape, (out.shape, x.shape)
    max_err = float(jnp.max(jnp.abs(out - ref)))
    # bf16 MXU operands are matched in the reference; the residual difference
    # is f32 accumulation-order noise plus rare one-ulp bf16 rounding flips.
    assert max_err < 2e-2, max_err
    print("KERNEL_OK")
</pallas_src>

<mosaic_0001>
module attributes {stable_mosaic.version = 11 : i64} {
  func.func @_conv_stats_kernel(%arg0: i32, %arg1: i32, %arg2: memref<1x18x18x128xbf16, #tpu.memory_space<vmem>>, %arg3: memref<9x128x128xbf16, #tpu.memory_space<vmem>>, %arg4: memref<1x8x16x128xf32, #tpu.memory_space<vmem>>, %arg5: memref<1x8x128xf32, #tpu.memory_space<vmem>>) attributes {dimension_semantics = [#tpu.dimension_semantics<parallel>, #tpu.dimension_semantics<arbitrary>], iteration_bounds = array<i64: 2, 2>, scalar_prefetch = 0 : i64, scratch_operands = 0 : i64, tpu.core_type = #tpu.core_type<tc>, window_params = [{transform_indices = @transform_0, window_bounds = array<i64: 1, 18, 18, 128>}, {pipeline_mode = #tpu.pipeline_mode<synchronous>, transform_indices = @transform_1, window_bounds = array<i64: 9, 128, 128>}, {transform_indices = @transform_2, window_bounds = array<i64: 1, 8, 16, 128>}, {transform_indices = @transform_3, window_bounds = array<i64: 1, 8, 128>}]} {
    %c8_i32 = arith.constant 8 : i32
    %0 = arith.muli %arg1, %c8_i32 : i32
    %c0_i32 = arith.constant 0 : i32
    %1 = arith.cmpi eq, %arg1, %c0_i32 : i32
    %2 = arith.extui %1 : i1 to i32
    %c0_i32_0 = arith.constant 0 : i32
    %3 = arith.cmpi ne, %2, %c0_i32_0 : i32
    scf.if %3 {
      %cst_79 = arith.constant 0.000000e+00 : f32
      %105 = vector.broadcast %cst_79 : f32 to vector<1x8x128xf32>
      %c0_80 = arith.constant 0 : index
      %c0_81 = arith.constant 0 : index
      %c0_82 = arith.constant 0 : index
      %106 = vector.load %arg5[%c0_80, %c0_81, %c0_82] : memref<1x8x128xf32, #tpu.memory_space<vmem>>, vector<1x8x128xf32>
      tpu.vector_store %arg5[%c0_80, %c0_81, %c0_82], %105 {strides = array<i32>} : memref<1x8x128xf32, #tpu.memory_space<vmem>>, vector<1x8x128xf32>,
    } else {
    }
    %c0_i32_1 = arith.constant 0 : i32
    %4 = arith.addi %0, %c0_i32_1 : i32
    %c0 = arith.constant 0 : index
    %5 = arith.index_cast %4 : i32 to index
    %c0_2 = arith.constant 0 : index
    %c0_3 = arith.constant 0 : index
    %6 = vector.load %arg2[%c0, %5, %c0_2, %c0_3] : memref<1x18x18x128xbf16, #tpu.memory_space<vmem>>, vector<1x8x16x128xbf16>
    %7 = vector.shape_cast %6 : vector<1x8x16x128xbf16> to vector<8x16x128xbf16>
    %8 = vector.shape_cast %7 : vector<8x16x128xbf16> to vector<128x128xbf16>
    %c0_4 = arith.constant 0 : index
    %c0_5 = arith.constant 0 : index
    %c0_6 = arith.constant 0 : index
    %9 = vector.load %arg3[%c0_4, %c0_5, %c0_6] : memref<9x128x128xbf16, #tpu.memory_space<vmem>>, vector<1x128x128xbf16>
    %10 = vector.shape_cast %9 : vector<1x128x128xbf16> to vector<128x128xbf16>
    %cst = arith.constant dense<0.000000e+00> : vector<128x128xf32>
    %11 = tpu.matmul %8, %10, %cst {dimension_numbers = #tpu.dot_dimension_numbers<[1], [0], [0], [1], [0, 0, 1, 1], [], []>} : vector<128x128xbf16>, vector<128x128xbf16>, vector<128x128xf32> -> vector<128x128xf32>
    %c0_i32_7 = arith.constant 0 : i32
    %12 = arith.addi %0, %c0_i32_7 : i32
    %c0_8 = arith.constant 0 : index
    %13 = arith.index_cast %12 : i32 to index
    %c1 = arith.constant 1 : index
    %c0_9 = arith.constant 0 : index
    %14 = vector.load %arg2[%c0_8, %13, %c1, %c0_9] : memref<1x18x18x128xbf16, #tpu.memory_space<vmem>>, vector<1x8x16x128xbf16>
    %15 = vector.shape_cast %14 : vector<1x8x16x128xbf16> to vector<8x16x128xbf16>
    %16 = vector.shape_cast %15 : vector<8x16x128xbf16> to vector<128x128xbf16>
    %c1_10 = arith.constant 1 : index
    %c0_11 = arith.constant 0 : index
    %c0_12 = arith.constant 0 : index
    %17 = vector.load %arg3[%c1_10, %c0_11, %c0_12] : memref<9x128x128xbf16, #tpu.memory_space<vmem>>, vector<1x128x128xbf16>
    %18 = vector.shape_cast %17 : vector<1x128x128xbf16> to vector<128x128xbf16>
    %cst_13 = arith.constant dense<0.000000e+00> : vector<128x128xf32>
    %19 = tpu.matmul %16, %18, %cst_13 {dimension_numbers = #tpu.dot_dimension_numbers<[1], [0], [0], [1], [0, 0, 1, 1], [], []>} : vector<128x128xbf16>, vector<128x128xbf16>, vector<128x128xf32> -> vector<128x128xf32>
    %20 = arith.addf %11, %19 : vector<128x128xf32>
    %c0_i32_14 = arith.constant 0 : i32
    %21 = arith.addi %0, %c0_i32_14 : i32
    %c0_15 = arith.constant 0 : index
    %22 = arith.index_cast %21 : i32 to index
    %c2 = arith.constant 2 : index
    %c0_16 = arith.constant 0 : index
    %23 = vector.load %arg2[%c0_15, %22, %c2, %c0_16] : memref<1x18x18x128xbf16, #tpu.memory_space<vmem>>, vector<1x8x16x128xbf16>
    %24 = vector.shape_cast %23 : vector<1x8x16x128xbf16> to vector<8x16x128xbf16>
    %25 = vector.shape_cast %24 : vector<8x16x128xbf16> to vector<128x128xbf16>
    %c2_17 = arith.constant 2 : index
    %c0_18 = arith.constant 0 : index
    %c0_19 = arith.constant 0 : index
    %26 = vector.load %arg3[%c2_17, %c0_18, %c0_19] : memref<9x128x128xbf16, #tpu.memory_space<vmem>>, vector<1x128x128xbf16>
    %27 = vector.shape_cast %26 : vector<1x128x128xbf16> to vector<128x128xbf16>
    %cst_20 = arith.constant dense<0.000000e+00> : vector<128x128xf32>
    %28 = tpu.matmul %25, %27, %cst_20 {dimension_numbers = #tpu.dot_dimension_numbers<[1], [0], [0], [1], [0, 0, 1, 1], [], []>} : vector<128x128xbf16>, vector<128x128xbf16>, vector<128x128xf32> -> vector<128x128xf32>
    %29 = arith.addf %20, %28 : vector<128x128xf32>
    %c1_i32 = arith.constant 1 : i32
    %30 = arith.addi %0, %c1_i32 : i32
    %c0_21 = arith.constant 0 : index
    %31 = arith.index_cast %30 : i32 to index
    %c0_22 = arith.constant 0 : index
    %c0_23 = arith.constant 0 : index
    %32 = vector.load %arg2[%c0_21, %31, %c0_22, %c0_23] : memref<1x18x18x128xbf16, #tpu.memory_space<vmem>>, vector<1x8x16x128xbf16>
    %33 = vector.shape_cast %32 : vector<1x8x16x128xbf16> to vector<8x16x128xbf16>
    %34 = vector.shape_cast %33 : vector<8x16x128xbf16> to vector<128x128xbf16>
    %c3 = arith.constant 3 : index
    %c0_24 = arith.constant 0 : index
    %c0_25 = arith.constant 0 : index
    %35 = vector.load %arg3[%c3, %c0_24, %c0_25] : memref<9x128x128xbf16, #tpu.memory_space<vmem>>, vector<1x128x128xbf16>
    %36 = vector.shape_cast %35 : vector<1x128x128xbf16> to vector<128x128xbf16>
    %cst_26 = arith.constant dense<0.000000e+00> : vector<128x128xf32>
    %37 = tpu.matmul %34, %36, %cst_26 {dimension_numbers = #tpu.dot_dimension_numbers<[1], [0], [0], [1], [0, 0, 1, 1], [], []>} : vector<128x128xbf16>, vector<128x128xbf16>, vector<128x128xf32> -> vector<128x128xf32>
    %38 = arith.addf %29, %37 : vector<128x128xf32>
    %c1_i32_27 = arith.constant 1 : i32
    %39 = arith.addi %0, %c1_i32_27 : i32
    %c0_28 = arith.constant 0 : index
    %40 = arith.index_cast %39 : i32 to index
    %c1_29 = arith.constant 1 : index
    %c0_30 = arith.constant 0 : index
    %41 = vector.load %arg2[%c0_28, %40, %c1_29, %c0_30] : memref<1x18x18x128xbf16, #tpu.memory_space<vmem>>, vector<1x8x16x128xbf16>
    %42 = vector.shape_cast %41 : vector<1x8x16x128xbf16> to vector<8x16x128xbf16>
    %43 = vector.shape_cast %42 : vector<8x16x128xbf16> to vector<128x128xbf16>
    %c4 = arith.constant 4 : index
    %c0_31 = arith.constant 0 : index
    %c0_32 = arith.constant 0 : index
    %44 = vector.load %arg3[%c4, %c0_31, %c0_32] : memref<9x128x128xbf16, #tpu.memory_space<vmem>>, vector<1x128x128xbf16>
    %45 = vector.shape_cast %44 : vector<1x128x128xbf16> to vector<128x128xbf16>
    %cst_33 = arith.constant dense<0.000000e+00> : vector<128x128xf32>
    %46 = tpu.matmul %43, %45, %cst_33 {dimension_numbers = #tpu.dot_dimension_numbers<[1], [0], [0], [1], [0, 0, 1, 1], [], []>} : vector<128x128xbf16>, vector<128x128xbf16>, vector<128x128xf32> -> vector<128x128xf32>
    %47 = arith.addf %38, %46 : vector<128x128xf32>
    %c1_i32_34 = arith.constant 1 : i32
    %48 = arith.addi %0, %c1_i32_34 : i32
    %c0_35 = arith.constant 0 : index
    %49 = arith.index_cast %48 : i32 to index
    %c2_36 = arith.constant 2 : index
    %c0_37 = arith.constant 0 : index
    %50 = vector.load %arg2[%c0_35, %49, %c2_36, %c0_37] : memref<1x18x18x128xbf16, #tpu.memory_space<vmem>>, vector<1x8x16x128xbf16>
    %51 = vector.shape_cast %50 : vector<1x8x16x128xbf16> to vector<8x16x128xbf16>
    %52 = vector.shape_cast %51 : vector<8x16x128xbf16> to vector<128x128xbf16>
    %c5 = arith.constant 5 : index
    %c0_38 = arith.constant 0 : index
    %c0_39 = arith.constant 0 : index
    %53 = vector.load %arg3[%c5, %c0_38, %c0_39] : memref<9x128x128xbf16, #tpu.memory_space<vmem>>, vector<1x128x128xbf16>
    %54 = vector.shape_cast %53 : vector<1x128x128xbf16> to vector<128x128xbf16>
    %cst_40 = arith.constant dense<0.000000e+00> : vector<128x128xf32>
    %55 = tpu.matmul %52, %54, %cst_40 {dimension_numbers = #tpu.dot_dimension_numbers<[1], [0], [0], [1], [0, 0, 1, 1], [], []>} : vector<128x128xbf16>, vector<128x128xbf16>, vector<128x128xf32> -> vector<128x128xf32>
    %56 = arith.addf %47, %55 : vector<128x128xf32>
    %c2_i32 = arith.constant 2 : i32
    %57 = arith.addi %0, %c2_i32 : i32
    %c0_41 = arith.constant 0 : index
    %58 = arith.index_cast %57 : i32 to index
    %c0_42 = arith.constant 0 : index
    %c0_43 = arith.constant 0 : index
    %59 = vector.load %arg2[%c0_41, %58, %c0_42, %c0_43] : memref<1x18x18x128xbf16, #tpu.memory_space<vmem>>, vector<1x8x16x128xbf16>
    %60 = vector.shape_cast %59 : vector<1x8x16x128xbf16> to vector<8x16x128xbf16>
    %61 = vector.shape_cast %60 : vector<8x16x128xbf16> to vector<128x128xbf16>
    %c6 = arith.constant 6 : index
    %c0_44 = arith.constant 0 : index
    %c0_45 = arith.constant 0 : index
    %62 = vector.load %arg3[%c6, %c0_44, %c0_45] : memref<9x128x128xbf16, #tpu.memory_space<vmem>>, vector<1x128x128xbf16>
    %63 = vector.shape_cast %62 : vector<1x128x128xbf16> to vector<128x128xbf16>
    %cst_46 = arith.constant dense<0.000000e+00> : vector<128x128xf32>
    %64 = tpu.matmul %61, %63, %cst_46 {dimension_numbers = #tpu.dot_dimension_numbers<[1], [0], [0], [1], [0, 0, 1, 1], [], []>} : vector<128x128xbf16>, vector<128x128xbf16>, vector<128x128xf32> -> vector<128x128xf32>
    %65 = arith.addf %56, %64 : vector<128x128xf32>
    %c2_i32_47 = arith.constant 2 : i32
    %66 = arith.addi %0, %c2_i32_47 : i32
    %c0_48 = arith.constant 0 : index
    %67 = arith.index_cast %66 : i32 to index
    %c1_49 = arith.constant 1 : index
    %c0_50 = arith.constant 0 : index
    %68 = vector.load %arg2[%c0_48, %67, %c1_49, %c0_50] : memref<1x18x18x128xbf16, #tpu.memory_space<vmem>>, vector<1x8x16x128xbf16>
    %69 = vector.shape_cast %68 : vector<1x8x16x128xbf16> to vector<8x16x128xbf16>
    %70 = vector.shape_cast %69 : vector<8x16x128xbf16> to vector<128x128xbf16>
    %c7 = arith.constant 7 : index
    %c0_51 = arith.constant 0 : index
    %c0_52 = arith.constant 0 : index
    %71 = vector.load %arg3[%c7, %c0_51, %c0_52] : memref<9x128x128xbf16, #tpu.memory_space<vmem>>, vector<1x128x128xbf16>
    %72 = vector.shape_cast %71 : vector<1x128x128xbf16> to vector<128x128xbf16>
    %cst_53 = arith.constant dense<0.000000e+00> : vector<128x128xf32>
    %73 = tpu.matmul %70, %72, %cst_53 {dimension_numbers = #tpu.dot_dimension_numbers<[1], [0], [0], [1], [0, 0, 1, 1], [], []>} : vector<128x128xbf16>, vector<128x128xbf16>, vector<128x128xf32> -> vector<128x128xf32>
    %74 = arith.addf %65, %73 : vector<128x128xf32>
    %c2_i32_54 = arith.constant 2 : i32
    %75 = arith.addi %0, %c2_i32_54 : i32
    %c0_55 = arith.constant 0 : index
    %76 = arith.index_cast %75 : i32 to index
    %c2_56 = arith.constant 2 : index
    %c0_57 = arith.constant 0 : index
    %77 = vector.load %arg2[%c0_55, %76, %c2_56, %c0_57] : memref<1x18x18x128xbf16, #tpu.memory_space<vmem>>, vector<1x8x16x128xbf16>
    %78 = vector.shape_cast %77 : vector<1x8x16x128xbf16> to vector<8x16x128xbf16>
    %79 = vector.shape_cast %78 : vector<8x16x128xbf16> to vector<128x128xbf16>
    %c8 = arith.constant 8 : index
    %c0_58 = arith.constant 0 : index
    %c0_59 = arith.constant 0 : index
    %80 = vector.load %arg3[%c8, %c0_58, %c0_59] : memref<9x128x128xbf16, #tpu.memory_space<vmem>>, vector<1x128x128xbf16>
    %81 = vector.shape_cast %80 : vector<1x128x128xbf16> to vector<128x128xbf16>
    %cst_60 = arith.constant dense<0.000000e+00> : vector<128x128xf32>
    %82 = tpu.matmul %79, %81, %cst_60 {dimension_numbers = #tpu.dot_dimension_numbers<[1], [0], [0], [1], [0, 0, 1, 1], [], []>} : vector<128x128xbf16>, vector<128x128xbf16>, vector<128x128xf32> -> vector<128x128xf32>
    %83 = arith.addf %74, %82 : vector<128x128xf32>
    %84 = vector.shape_cast %83 : vector<128x128xf32> to vector<8x16x128xf32>
    %c0_61 = arith.constant 0 : index
    %c0_62 = arith.constant 0 : index
    %c0_63 = arith.constant 0 : index
    %c0_64 = arith.constant 0 : index
    %85 = vector.load %arg4[%c0_61, %c0_62, %c0_63, %c0_64] : memref<1x8x16x128xf32, #tpu.memory_space<vmem>>, vector<1x8x16x128xf32>
    %86 = vector.shape_cast %85 : vector<1x8x16x128xf32> to vector<8x16x128xf32>
    %87 = vector.shape_cast %84 : vector<8x16x128xf32> to vector<1x8x16x128xf32>
    tpu.vector_store %arg4[%c0_61, %c0_62, %c0_63, %c0_64], %87 {strides = array<i32>} : memref<1x8x16x128xf32, #tpu.memory_space<vmem>>, vector<1x8x16x128xf32>,
    %c0_65 = arith.constant 0 : index
    %c0_66 = arith.constant 0 : index
    %c0_67 = arith.constant 0 : index
    %88 = vector.load %arg5[%c0_65, %c0_66, %c0_67] : memref<1x8x128xf32, #tpu.memory_space<vmem>>, vector<1x1x128xf32>
    %89 = vector.shape_cast %88 : vector<1x1x128xf32> to vector<1x128xf32>
    %cst_68 = arith.constant dense<0.000000e+00> : vector<128xf32>
    %90 = vector.multi_reduction <add>, %83, %cst_68 [0] : vector<128x128xf32> to vector<128xf32>
    %91 = vector.shape_cast %90 : vector<128xf32> to vector<1x128xf32>
    %92 = arith.addf %89, %91 : vector<1x128xf32>
    %c0_69 = arith.constant 0 : index
    %c0_70 = arith.constant 0 : index
    %c0_71 = arith.constant 0 : index
    %93 = vector.load %arg5[%c0_69, %c0_70, %c0_71] : memref<1x8x128xf32, #tpu.memory_space<vmem>>, vector<1x1x128xf32>
    %94 = vector.shape_cast %93 : vector<1x1x128xf32> to vector<1x128xf32>
    %95 = vector.shape_cast %92 : vector<1x128xf32> to vector<1x1x128xf32>
    tpu.vector_store %arg5[%c0_69, %c0_70, %c0_71], %95 {strides = array<i32>} : memref<1x8x128xf32, #tpu.memory_space<vmem>>, vector<1x1x128xf32>,
    %c0_72 = arith.constant 0 : index
    %c1_73 = arith.constant 1 : index
    %c0_74 = arith.constant 0 : index
    %96 = vector.load %arg5[%c0_72, %c1_73, %c0_74] : memref<1x8x128xf32, #tpu.memory_space<vmem>>, vector<1x1x128xf32>
    %97 = vector.shape_cast %96 : vector<1x1x128xf32> to vector<1x128xf32>
    %98 = arith.mulf %83, %83 : vector<128x128xf32>
    %cst_75 = arith.constant dense<0.000000e+00> : vector<128xf32>
    %99 = vector.multi_reduction <add>, %98, %cst_75 [0] : vector<128x128xf32> to vector<128xf32>
    %100 = vector.shape_cast %99 : vector<128xf32> to vector<1x128xf32>
    %101 = arith.addf %97, %100 : vector<1x128xf32>
    %c0_76 = arith.constant 0 : index
    %c1_77 = arith.constant 1 : index
    %c0_78 = arith.constant 0 : index
    %102 = vector.load %arg5[%c0_76, %c1_77, %c0_78] : memref<1x8x128xf32, #tpu.memory_space<vmem>>, vector<1x1x128xf32>
    %103 = vector.shape_cast %102 : vector<1x1x128xf32> to vector<1x128xf32>
    %104 = vector.shape_cast %101 : vector<1x128xf32> to vector<1x1x128xf32>
    tpu.vector_store %arg5[%c0_76, %c1_77, %c0_78], %104 {strides = array<i32>} : memref<1x8x128xf32, #tpu.memory_space<vmem>>, vector<1x1x128xf32>,
    return
  }
  func.func @transform_0(%arg0: i32, %arg1: i32) -> (i32, i32, i32, i32) {
    %c0_i32 = arith.constant 0 : i32
    %c0_i32_0 = arith.constant 0 : i32
    %c0_i32_1 = arith.constant 0 : i32
    %c0_i32_2 = arith.constant 0 : i32
    return %arg0, %c0_i32, %c0_i32_0, %c0_i32_1 : i32, i32, i32, i32
  }
  func.func @transform_1(%arg0: i32, %arg1: i32) -> (i32, i32, i32) {
    %c0_i32 = arith.constant 0 : i32
    %c0_i32_0 = arith.constant 0 : i32
    %c0_i32_1 = arith.constant 0 : i32
    %c0_i32_2 = arith.constant 0 : i32
    return %c0_i32, %c0_i32_0, %c0_i32_1 : i32, i32, i32
  }
  func.func @transform_2(%arg0: i32, %arg1: i32) -> (i32, i32, i32, i32) {
    %c0_i32 = arith.constant 0 : i32
    %c0_i32_0 = arith.constant 0 : i32
    %c0_i32_1 = arith.constant 0 : i32
    return %arg0, %arg1, %c0_i32, %c0_i32_0 : i32, i32, i32, i32
  }
  func.func @transform_3(%arg0: i32, %arg1: i32) -> (i32, i32, i32) {
    %c0_i32 = arith.constant 0 : i32
    %c0_i32_0 = arith.constant 0 : i32
    %c0_i32_1 = arith.constant 0 : i32
    return %arg0, %c0_i32, %c0_i32_0 : i32, i32, i32
  }
}

module attributes {stable_mosaic.version = 11 : i64} {
  func.func @_conv_stats_kernel(%arg0: i32, %arg1: i32, %arg2: memref<1x18x18x128xf32, #tpu.memory_space<vmem>>, %arg3: memref<9x128x128xbf16, #tpu.memory_space<vmem>>, %arg4: memref<1x128xf32, #tpu.memory_space<vmem>>, %arg5: memref<1x128xf32, #tpu.memory_space<vmem>>, %arg6: memref<1x8x16x128xf32, #tpu.memory_space<vmem>>, %arg7: memref<1x8x128xf32, #tpu.memory_space<vmem>>) attributes {dimension_semantics = [#tpu.dimension_semantics<parallel>, #tpu.dimension_semantics<arbitrary>], iteration_bounds = array<i64: 2, 2>, scalar_prefetch = 0 : i64, scratch_operands = 0 : i64, tpu.core_type = #tpu.core_type<tc>, window_params = [{transform_indices = @transform_0, window_bounds = array<i64: 1, 18, 18, 128>}, {pipeline_mode = #tpu.pipeline_mode<synchronous>, transform_indices = @transform_1, window_bounds = array<i64: 9, 128, 128>}, {pipeline_mode = #tpu.pipeline_mode<synchronous>, transform_indices = @transform_2, window_bounds = array<i64: 1, 128>}, {pipeline_mode = #tpu.pipeline_mode<synchronous>, transform_indices = @transform_3, window_bounds = array<i64: 1, 128>}, {transform_indices = @transform_4, window_bounds = array<i64: 1, 8, 16, 128>}, {transform_indices = @transform_5, window_bounds = array<i64: 1, 8, 128>}]} {
    %c8_i32 = arith.constant 8 : i32
    %0 = arith.muli %arg1, %c8_i32 : i32
    %c0_i32 = arith.constant 0 : i32
    %1 = arith.cmpi eq, %arg1, %c0_i32 : i32
    %2 = arith.extui %1 : i1 to i32
    %c0_i32_0 = arith.constant 0 : i32
    %3 = arith.cmpi ne, %2, %c0_i32_0 : i32
    scf.if %3 {
      %cst_92 = arith.constant 0.000000e+00 : f32
      %170 = vector.broadcast %cst_92 : f32 to vector<1x8x128xf32>
      %c0_93 = arith.constant 0 : index
      %c0_94 = arith.constant 0 : index
      %c0_95 = arith.constant 0 : index
      %171 = vector.load %arg7[%c0_93, %c0_94, %c0_95] : memref<1x8x128xf32, #tpu.memory_space<vmem>>, vector<1x8x128xf32>
      tpu.vector_store %arg7[%c0_93, %c0_94, %c0_95], %170 {strides = array<i32>} : memref<1x8x128xf32, #tpu.memory_space<vmem>>, vector<1x8x128xf32>,
    } else {
    }
    %c0 = arith.constant 0 : index
    %c0_1 = arith.constant 0 : index
    %4 = vector.load %arg4[%c0, %c0_1] : memref<1x128xf32, #tpu.memory_space<vmem>>, vector<1x128xf32>
    %c0_2 = arith.constant 0 : index
    %c0_3 = arith.constant 0 : index
    %5 = vector.load %arg5[%c0_2, %c0_3] : memref<1x128xf32, #tpu.memory_space<vmem>>, vector<1x128xf32>
    %c0_i32_4 = arith.constant 0 : i32
    %6 = arith.addi %0, %c0_i32_4 : i32
    %c0_5 = arith.constant 0 : index
    %7 = arith.index_cast %6 : i32 to index
    %c0_6 = arith.constant 0 : index
    %c0_7 = arith.constant 0 : index
    %8 = vector.load %arg2[%c0_5, %7, %c0_6, %c0_7] : memref<1x18x18x128xf32, #tpu.memory_space<vmem>>, vector<1x8x16x128xf32>
    %9 = vector.shape_cast %8 : vector<1x8x16x128xf32> to vector<8x16x128xf32>
    %10 = vector.shape_cast %9 : vector<8x16x128xf32> to vector<128x128xf32>
    %11 = vector.broadcast %4 : vector<1x128xf32> to vector<128x128xf32>
    %12 = arith.mulf %10, %11 : vector<128x128xf32>
    %13 = vector.broadcast %5 : vector<1x128xf32> to vector<128x128xf32>
    %14 = arith.addf %12, %13 : vector<128x128xf32>
    %cst = arith.constant 0.000000e+00 : f32
    %15 = vector.broadcast %cst : f32 to vector<128x128xf32>
    %16 = arith.maximumf %14, %15 : vector<128x128xf32>
    %17 = arith.truncf %16 : vector<128x128xf32> to vector<128x128xbf16>
    %c0_8 = arith.constant 0 : index
    %c0_9 = arith.constant 0 : index
    %c0_10 = arith.constant 0 : index
    %18 = vector.load %arg3[%c0_8, %c0_9, %c0_10] : memref<9x128x128xbf16, #tpu.memory_space<vmem>>, vector<1x128x128xbf16>
    %19 = vector.shape_cast %18 : vector<1x128x128xbf16> to vector<128x128xbf16>
    %cst_11 = arith.constant dense<0.000000e+00> : vector<128x128xf32>
    %20 = tpu.matmul %17, %19, %cst_11 {dimension_numbers = #tpu.dot_dimension_numbers<[1], [0], [0], [1], [0, 0, 1, 1], [], []>} : vector<128x128xbf16>, vector<128x128xbf16>, vector<128x128xf32> -> vector<128x128xf32>
    %c0_i32_12 = arith.constant 0 : i32
    %21 = arith.addi %0, %c0_i32_12 : i32
    %c0_13 = arith.constant 0 : index
    %22 = arith.index_cast %21 : i32 to index
    %c1 = arith.constant 1 : index
    %c0_14 = arith.constant 0 : index
    %23 = vector.load %arg2[%c0_13, %22, %c1, %c0_14] : memref<1x18x18x128xf32, #tpu.memory_space<vmem>>, vector<1x8x16x128xf32>
    %24 = vector.shape_cast %23 : vector<1x8x16x128xf32> to vector<8x16x128xf32>
    %25 = vector.shape_cast %24 : vector<8x16x128xf32> to vector<128x128xf32>
    %26 = vector.broadcast %4 : vector<1x128xf32> to vector<128x128xf32>
    %27 = arith.mulf %25, %26 : vector<128x128xf32>
    %28 = vector.broadcast %5 : vector<1x128xf32> to vector<128x128xf32>
    %29 = arith.addf %27, %28 : vector<128x128xf32>
    %cst_15 = arith.constant 0.000000e+00 : f32
    %30 = vector.broadcast %cst_15 : f32 to vector<128x128xf32>
    %31 = arith.maximumf %29, %30 : vector<128x128xf32>
    %32 = arith.truncf %31 : vector<128x128xf32> to vector<128x128xbf16>
    %c1_16 = arith.constant 1 : index
    %c0_17 = arith.constant 0 : index
    %c0_18 = arith.constant 0 : index
    %33 = vector.load %arg3[%c1_16, %c0_17, %c0_18] : memref<9x128x128xbf16, #tpu.memory_space<vmem>>, vector<1x128x128xbf16>
    %34 = vector.shape_cast %33 : vector<1x128x128xbf16> to vector<128x128xbf16>
    %cst_19 = arith.constant dense<0.000000e+00> : vector<128x128xf32>
    %35 = tpu.matmul %32, %34, %cst_19 {dimension_numbers = #tpu.dot_dimension_numbers<[1], [0], [0], [1], [0, 0, 1, 1], [], []>} : vector<128x128xbf16>, vector<128x128xbf16>, vector<128x128xf32> -> vector<128x128xf32>
    %36 = arith.addf %20, %35 : vector<128x128xf32>
    %c0_i32_20 = arith.constant 0 : i32
    %37 = arith.addi %0, %c0_i32_20 : i32
    %c0_21 = arith.constant 0 : index
    %38 = arith.index_cast %37 : i32 to index
    %c2 = arith.constant 2 : index
    %c0_22 = arith.constant 0 : index
    %39 = vector.load %arg2[%c0_21, %38, %c2, %c0_22] : memref<1x18x18x128xf32, #tpu.memory_space<vmem>>, vector<1x8x16x128xf32>
    %40 = vector.shape_cast %39 : vector<1x8x16x128xf32> to vector<8x16x128xf32>
    %41 = vector.shape_cast %40 : vector<8x16x128xf32> to vector<128x128xf32>
    %42 = vector.broadcast %4 : vector<1x128xf32> to vector<128x128xf32>
    %43 = arith.mulf %41, %42 : vector<128x128xf32>
    %44 = vector.broadcast %5 : vector<1x128xf32> to vector<128x128xf32>
    %45 = arith.addf %43, %44 : vector<128x128xf32>
    %cst_23 = arith.constant 0.000000e+00 : f32
    %46 = vector.broadcast %cst_23 : f32 to vector<128x128xf32>
    %47 = arith.maximumf %45, %46 : vector<128x128xf32>
    %48 = arith.truncf %47 : vector<128x128xf32> to vector<128x128xbf16>
    %c2_24 = arith.constant 2 : index
    %c0_25 = arith.constant 0 : index
    %c0_26 = arith.constant 0 : index
    %49 = vector.load %arg3[%c2_24, %c0_25, %c0_26] : memref<9x128x128xbf16, #tpu.memory_space<vmem>>, vector<1x128x128xbf16>
    %50 = vector.shape_cast %49 : vector<1x128x128xbf16> to vector<128x128xbf16>
    %cst_27 = arith.constant dense<0.000000e+00> : vector<128x128xf32>
    %51 = tpu.matmul %48, %50, %cst_27 {dimension_numbers = #tpu.dot_dimension_numbers<[1], [0], [0], [1], [0, 0, 1, 1], [], []>} : vector<128x128xbf16>, vector<128x128xbf16>, vector<128x128xf32> -> vector<128x128xf32>
    %52 = arith.addf %36, %51 : vector<128x128xf32>
    %c1_i32 = arith.constant 1 : i32
    %53 = arith.addi %0, %c1_i32 : i32
    %c0_28 = arith.constant 0 : index
    %54 = arith.index_cast %53 : i32 to index
    %c0_29 = arith.constant 0 : index
    %c0_30 = arith.constant 0 : index
    %55 = vector.load %arg2[%c0_28, %54, %c0_29, %c0_30] : memref<1x18x18x128xf32, #tpu.memory_space<vmem>>, vector<1x8x16x128xf32>
    %56 = vector.shape_cast %55 : vector<1x8x16x128xf32> to vector<8x16x128xf32>
    %57 = vector.shape_cast %56 : vector<8x16x128xf32> to vector<128x128xf32>
    %58 = vector.broadcast %4 : vector<1x128xf32> to vector<128x128xf32>
    %59 = arith.mulf %57, %58 : vector<128x128xf32>
    %60 = vector.broadcast %5 : vector<1x128xf32> to vector<128x128xf32>
    %61 = arith.addf %59, %60 : vector<128x128xf32>
    %cst_31 = arith.constant 0.000000e+00 : f32
    %62 = vector.broadcast %cst_31 : f32 to vector<128x128xf32>
    %63 = arith.maximumf %61, %62 : vector<128x128xf32>
    %64 = arith.truncf %63 : vector<128x128xf32> to vector<128x128xbf16>
    %c3 = arith.constant 3 : index
    %c0_32 = arith.constant 0 : index
    %c0_33 = arith.constant 0 : index
    %65 = vector.load %arg3[%c3, %c0_32, %c0_33] : memref<9x128x128xbf16, #tpu.memory_space<vmem>>, vector<1x128x128xbf16>
    %66 = vector.shape_cast %65 : vector<1x128x128xbf16> to vector<128x128xbf16>
    %cst_34 = arith.constant dense<0.000000e+00> : vector<128x128xf32>
    %67 = tpu.matmul %64, %66, %cst_34 {dimension_numbers = #tpu.dot_dimension_numbers<[1], [0], [0], [1], [0, 0, 1, 1], [], []>} : vector<128x128xbf16>, vector<128x128xbf16>, vector<128x128xf32> -> vector<128x128xf32>
    %68 = arith.addf %52, %67 : vector<128x128xf32>
    %c1_i32_35 = arith.constant 1 : i32
    %69 = arith.addi %0, %c1_i32_35 : i32
    %c0_36 = arith.constant 0 : index
    %70 = arith.index_cast %69 : i32 to index
    %c1_37 = arith.constant 1 : index
    %c0_38 = arith.constant 0 : index
    %71 = vector.load %arg2[%c0_36, %70, %c1_37, %c0_38] : memref<1x18x18x128xf32, #tpu.memory_space<vmem>>, vector<1x8x16x128xf32>
    %72 = vector.shape_cast %71 : vector<1x8x16x128xf32> to vector<8x16x128xf32>
    %73 = vector.shape_cast %72 : vector<8x16x128xf32> to vector<128x128xf32>
    %74 = vector.broadcast %4 : vector<1x128xf32> to vector<128x128xf32>
    %75 = arith.mulf %73, %74 : vector<128x128xf32>
    %76 = vector.broadcast %5 : vector<1x128xf32> to vector<128x128xf32>
    %77 = arith.addf %75, %76 : vector<128x128xf32>
    %cst_39 = arith.constant 0.000000e+00 : f32
    %78 = vector.broadcast %cst_39 : f32 to vector<128x128xf32>
    %79 = arith.maximumf %77, %78 : vector<128x128xf32>
    %80 = arith.truncf %79 : vector<128x128xf32> to vector<128x128xbf16>
    %c4 = arith.constant 4 : index
    %c0_40 = arith.constant 0 : index
    %c0_41 = arith.constant 0 : index
    %81 = vector.load %arg3[%c4, %c0_40, %c0_41] : memref<9x128x128xbf16, #tpu.memory_space<vmem>>, vector<1x128x128xbf16>
    %82 = vector.shape_cast %81 : vector<1x128x128xbf16> to vector<128x128xbf16>
    %cst_42 = arith.constant dense<0.000000e+00> : vector<128x128xf32>
    %83 = tpu.matmul %80, %82, %cst_42 {dimension_numbers = #tpu.dot_dimension_numbers<[1], [0], [0], [1], [0, 0, 1, 1], [], []>} : vector<128x128xbf16>, vector<128x128xbf16>, vector<128x128xf32> -> vector<128x128xf32>
    %84 = arith.addf %68, %83 : vector<128x128xf32>
    %c1_i32_43 = arith.constant 1 : i32
    %85 = arith.addi %0, %c1_i32_43 : i32
    %c0_44 = arith.constant 0 : index
    %86 = arith.index_cast %85 : i32 to index
    %c2_45 = arith.constant 2 : index
    %c0_46 = arith.constant 0 : index
    %87 = vector.load %arg2[%c0_44, %86, %c2_45, %c0_46] : memref<1x18x18x128xf32, #tpu.memory_space<vmem>>, vector<1x8x16x128xf32>
    %88 = vector.shape_cast %87 : vector<1x8x16x128xf32> to vector<8x16x128xf32>
    %89 = vector.shape_cast %88 : vector<8x16x128xf32> to vector<128x128xf32>
    %90 = vector.broadcast %4 : vector<1x128xf32> to vector<128x128xf32>
    %91 = arith.mulf %89, %90 : vector<128x128xf32>
    %92 = vector.broadcast %5 : vector<1x128xf32> to vector<128x128xf32>
    %93 = arith.addf %91, %92 : vector<128x128xf32>
    %cst_47 = arith.constant 0.000000e+00 : f32
    %94 = vector.broadcast %cst_47 : f32 to vector<128x128xf32>
    %95 = arith.maximumf %93, %94 : vector<128x128xf32>
    %96 = arith.truncf %95 : vector<128x128xf32> to vector<128x128xbf16>
    %c5 = arith.constant 5 : index
    %c0_48 = arith.constant 0 : index
    %c0_49 = arith.constant 0 : index
    %97 = vector.load %arg3[%c5, %c0_48, %c0_49] : memref<9x128x128xbf16, #tpu.memory_space<vmem>>, vector<1x128x128xbf16>
    %98 = vector.shape_cast %97 : vector<1x128x128xbf16> to vector<128x128xbf16>
    %cst_50 = arith.constant dense<0.000000e+00> : vector<128x128xf32>
    %99 = tpu.matmul %96, %98, %cst_50 {dimension_numbers = #tpu.dot_dimension_numbers<[1], [0], [0], [1], [0, 0, 1, 1], [], []>} : vector<128x128xbf16>, vector<128x128xbf16>, vector<128x128xf32> -> vector<128x128xf32>
    %100 = arith.addf %84, %99 : vector<128x128xf32>
    %c2_i32 = arith.constant 2 : i32
    %101 = arith.addi %0, %c2_i32 : i32
    %c0_51 = arith.constant 0 : index
    %102 = arith.index_cast %101 : i32 to index
    %c0_52 = arith.constant 0 : index
    %c0_53 = arith.constant 0 : index
    %103 = vector.load %arg2[%c0_51, %102, %c0_52, %c0_53] : memref<1x18x18x128xf32, #tpu.memory_space<vmem>>, vector<1x8x16x128xf32>
    %104 = vector.shape_cast %103 : vector<1x8x16x128xf32> to vector<8x16x128xf32>
    %105 = vector.shape_cast %104 : vector<8x16x128xf32> to vector<128x128xf32>
    %106 = vector.broadcast %4 : vector<1x128xf32> to vector<128x128xf32>
    %107 = arith.mulf %105, %106 : vector<128x128xf32>
    %108 = vector.broadcast %5 : vector<1x128xf32> to vector<128x128xf32>
    %109 = arith.addf %107, %108 : vector<128x128xf32>
    %cst_54 = arith.constant 0.000000e+00 : f32
    %110 = vector.broadcast %cst_54 : f32 to vector<128x128xf32>
    %111 = arith.maximumf %109, %110 : vector<128x128xf32>
    %112 = arith.truncf %111 : vector<128x128xf32> to vector<128x128xbf16>
    %c6 = arith.constant 6 : index
    %c0_55 = arith.constant 0 : index
    %c0_56 = arith.constant 0 : index
    %113 = vector.load %arg3[%c6, %c0_55, %c0_56] : memref<9x128x128xbf16, #tpu.memory_space<vmem>>, vector<1x128x128xbf16>
    %114 = vector.shape_cast %113 : vector<1x128x128xbf16> to vector<128x128xbf16>
    %cst_57 = arith.constant dense<0.000000e+00> : vector<128x128xf32>
    %115 = tpu.matmul %112, %114, %cst_57 {dimension_numbers = #tpu.dot_dimension_numbers<[1], [0], [0], [1], [0, 0, 1, 1], [], []>} : vector<128x128xbf16>, vector<128x128xbf16>, vector<128x128xf32> -> vector<128x128xf32>
    %116 = arith.addf %100, %115 : vector<128x128xf32>
    %c2_i32_58 = arith.constant 2 : i32
    %117 = arith.addi %0, %c2_i32_58 : i32
    %c0_59 = arith.constant 0 : index
    %118 = arith.index_cast %117 : i32 to index
    %c1_60 = arith.constant 1 : index
    %c0_61 = arith.constant 0 : index
    %119 = vector.load %arg2[%c0_59, %118, %c1_60, %c0_61] : memref<1x18x18x128xf32, #tpu.memory_space<vmem>>, vector<1x8x16x128xf32>
    %120 = vector.shape_cast %119 : vector<1x8x16x128xf32> to vector<8x16x128xf32>
    %121 = vector.shape_cast %120 : vector<8x16x128xf32> to vector<128x128xf32>
    %122 = vector.broadcast %4 : vector<1x128xf32> to vector<128x128xf32>
    %123 = arith.mulf %121, %122 : vector<128x128xf32>
    %124 = vector.broadcast %5 : vector<1x128xf32> to vector<128x128xf32>
    %125 = arith.addf %123, %124 : vector<128x128xf32>
    %cst_62 = arith.constant 0.000000e+00 : f32
    %126 = vector.broadcast %cst_62 : f32 to vector<128x128xf32>
    %127 = arith.maximumf %125, %126 : vector<128x128xf32>
    %128 = arith.truncf %127 : vector<128x128xf32> to vector<128x128xbf16>
    %c7 = arith.constant 7 : index
    %c0_63 = arith.constant 0 : index
    %c0_64 = arith.constant 0 : index
    %129 = vector.load %arg3[%c7, %c0_63, %c0_64] : memref<9x128x128xbf16, #tpu.memory_space<vmem>>, vector<1x128x128xbf16>
    %130 = vector.shape_cast %129 : vector<1x128x128xbf16> to vector<128x128xbf16>
    %cst_65 = arith.constant dense<0.000000e+00> : vector<128x128xf32>
    %131 = tpu.matmul %128, %130, %cst_65 {dimension_numbers = #tpu.dot_dimension_numbers<[1], [0], [0], [1], [0, 0, 1, 1], [], []>} : vector<128x128xbf16>, vector<128x128xbf16>, vector<128x128xf32> -> vector<128x128xf32>
    %132 = arith.addf %116, %131 : vector<128x128xf32>
    %c2_i32_66 = arith.constant 2 : i32
    %133 = arith.addi %0, %c2_i32_66 : i32
    %c0_67 = arith.constant 0 : index
    %134 = arith.index_cast %133 : i32 to index
    %c2_68 = arith.constant 2 : index
    %c0_69 = arith.constant 0 : index
    %135 = vector.load %arg2[%c0_67, %134, %c2_68, %c0_69] : memref<1x18x18x128xf32, #tpu.memory_space<vmem>>, vector<1x8x16x128xf32>
    %136 = vector.shape_cast %135 : vector<1x8x16x128xf32> to vector<8x16x128xf32>
    %137 = vector.shape_cast %136 : vector<8x16x128xf32> to vector<128x128xf32>
    %138 = vector.broadcast %4 : vector<1x128xf32> to vector<128x128xf32>
    %139 = arith.mulf %137, %138 : vector<128x128xf32>
    %140 = vector.broadcast %5 : vector<1x128xf32> to vector<128x128xf32>
    %141 = arith.addf %139, %140 : vector<128x128xf32>
    %cst_70 = arith.constant 0.000000e+00 : f32
    %142 = vector.broadcast %cst_70 : f32 to vector<128x128xf32>
    %143 = arith.maximumf %141, %142 : vector<128x128xf32>
    %144 = arith.truncf %143 : vector<128x128xf32> to vector<128x128xbf16>
    %c8 = arith.constant 8 : index
    %c0_71 = arith.constant 0 : index
    %c0_72 = arith.constant 0 : index
    %145 = vector.load %arg3[%c8, %c0_71, %c0_72] : memref<9x128x128xbf16, #tpu.memory_space<vmem>>, vector<1x128x128xbf16>
    %146 = vector.shape_cast %145 : vector<1x128x128xbf16> to vector<128x128xbf16>
    %cst_73 = arith.constant dense<0.000000e+00> : vector<128x128xf32>
    %147 = tpu.matmul %144, %146, %cst_73 {dimension_numbers = #tpu.dot_dimension_numbers<[1], [0], [0], [1], [0, 0, 1, 1], [], []>} : vector<128x128xbf16>, vector<128x128xbf16>, vector<128x128xf32> -> vector<128x128xf32>
    %148 = arith.addf %132, %147 : vector<128x128xf32>
    %149 = vector.shape_cast %148 : vector<128x128xf32> to vector<8x16x128xf32>
    %c0_74 = arith.constant 0 : index
    %c0_75 = arith.constant 0 : index
    %c0_76 = arith.constant 0 : index
    %c0_77 = arith.constant 0 : index
    %150 = vector.load %arg6[%c0_74, %c0_75, %c0_76, %c0_77] : memref<1x8x16x128xf32, #tpu.memory_space<vmem>>, vector<1x8x16x128xf32>
    %151 = vector.shape_cast %150 : vector<1x8x16x128xf32> to vector<8x16x128xf32>
    %152 = vector.shape_cast %149 : vector<8x16x128xf32> to vector<1x8x16x128xf32>
    tpu.vector_store %arg6[%c0_74, %c0_75, %c0_76, %c0_77], %152 {strides = array<i32>} : memref<1x8x16x128xf32, #tpu.memory_space<vmem>>, vector<1x8x16x128xf32>,
    %c0_78 = arith.constant 0 : index
    %c0_79 = arith.constant 0 : index
    %c0_80 = arith.constant 0 : index
    %153 = vector.load %arg7[%c0_78, %c0_79, %c0_80] : memref<1x8x128xf32, #tpu.memory_space<vmem>>, vector<1x1x128xf32>
    %154 = vector.shape_cast %153 : vector<1x1x128xf32> to vector<1x128xf32>
    %cst_81 = arith.constant dense<0.000000e+00> : vector<128xf32>
    %155 = vector.multi_reduction <add>, %148, %cst_81 [0] : vector<128x128xf32> to vector<128xf32>
    %156 = vector.shape_cast %155 : vector<128xf32> to vector<1x128xf32>
    %157 = arith.addf %154, %156 : vector<1x128xf32>
    %c0_82 = arith.constant 0 : index
    %c0_83 = arith.constant 0 : index
    %c0_84 = arith.constant 0 : index
    %158 = vector.load %arg7[%c0_82, %c0_83, %c0_84] : memref<1x8x128xf32, #tpu.memory_space<vmem>>, vector<1x1x128xf32>
    %159 = vector.shape_cast %158 : vector<1x1x128xf32> to vector<1x128xf32>
    %160 = vector.shape_cast %157 : vector<1x128xf32> to vector<1x1x128xf32>
    tpu.vector_store %arg7[%c0_82, %c0_83, %c0_84], %160 {strides = array<i32>} : memref<1x8x128xf32, #tpu.memory_space<vmem>>, vector<1x1x128xf32>,
    %c0_85 = arith.constant 0 : index
    %c1_86 = arith.constant 1 : index
    %c0_87 = arith.constant 0 : index
    %161 = vector.load %arg7[%c0_85, %c1_86, %c0_87] : memref<1x8x128xf32, #tpu.memory_space<vmem>>, vector<1x1x128xf32>
    %162 = vector.shape_cast %161 : vector<1x1x128xf32> to vector<1x128xf32>
    %163 = arith.mulf %148, %148 : vector<128x128xf32>
    %cst_88 = arith.constant dense<0.000000e+00> : vector<128xf32>
    %164 = vector.multi_reduction <add>, %163, %cst_88 [0] : vector<128x128xf32> to vector<128xf32>
    %165 = vector.shape_cast %164 : vector<128xf32> to vector<1x128xf32>
    %166 = arith.addf %162, %165 : vector<1x128xf32>
    %c0_89 = arith.constant 0 : index
    %c1_90 = arith.constant 1 : index
    %c0_91 = arith.constant 0 : index
    %167 = vector.load %arg7[%c0_89, %c1_90, %c0_91] : memref<1x8x128xf32, #tpu.memory_space<vmem>>, vector<1x1x128xf32>
    %168 = vector.shape_cast %167 : vector<1x1x128xf32> to vector<1x128xf32>
    %169 = vector.shape_cast %166 : vector<1x128xf32> to vector<1x1x128xf32>
    tpu.vector_store %arg7[%c0_89, %c1_90, %c0_91], %169 {strides = array<i32>} : memref<1x8x128xf32, #tpu.memory_space<vmem>>, vector<1x1x128xf32>,
    return
  }
  func.func @transform_0(%arg0: i32, %arg1: i32) -> (i32, i32, i32, i32) {
    %c0_i32 = arith.constant 0 : i32
    %c0_i32_0 = arith.constant 0 : i32
    %c0_i32_1 = arith.constant 0 : i32
    %c0_i32_2 = arith.constant 0 : i32
    return %arg0, %c0_i32, %c0_i32_0, %c0_i32_1 : i32, i32, i32, i32
  }
  func.func @transform_1(%arg0: i32, %arg1: i32) -> (i32, i32, i32) {
    %c0_i32 = arith.constant 0 : i32
    %c0_i32_0 = arith.constant 0 : i32
    %c0_i32_1 = arith.constant 0 : i32
    %c0_i32_2 = arith.constant 0 : i32
    return %c0_i32, %c0_i32_0, %c0_i32_1 : i32, i32, i32
  }
  func.func @transform_2(%arg0: i32, %arg1: i32) -> (i32, i32) {
    %c0_i32 = arith.constant 0 : i32
    %c0_i32_0 = arith.constant 0 : i32
    %c0_i32_1 = arith.constant 0 : i32
    return %c0_i32, %c0_i32_0 : i32, i32
  }
  func.func @transform_3(%arg0: i32, %arg1: i32) -> (i32, i32) {
    %c0_i32 = arith.constant 0 : i32
    %c0_i32_0 = arith.constant 0 : i32
    %c0_i32_1 = arith.constant 0 : i32
    return %c0_i32, %c0_i32_0 : i32, i32
  }
  func.func @transform_4(%arg0: i32, %arg1: i32) -> (i32, i32, i32, i32) {
    %c0_i32 = arith.constant 0 : i32
    %c0_i32_0 = arith.constant 0 : i32
    %c0_i32_1 = arith.constant 0 : i32
    return %arg0, %arg1, %c0_i32, %c0_i32_0 : i32, i32, i32, i32
  }
  func.func @transform_5(%arg0: i32, %arg1: i32) -> (i32, i32, i32) {
    %c0_i32 = arith.constant 0 : i32
    %c0_i32_0 = arith.constant 0 : i32
    %c0_i32_1 = arith.constant 0 : i32
    return %arg0, %c0_i32, %c0_i32_0 : i32, i32, i32
  }
}

module attributes {stable_mosaic.version = 11 : i64} {
  func.func @_bn_residual_kernel(%arg0: i32, %arg1: i32, %arg2: memref<1x8x16x128xf32, #tpu.memory_space<vmem>>, %arg3: memref<1x8x16x128xf32, #tpu.memory_space<vmem>>, %arg4: memref<1x128xf32, #tpu.memory_space<vmem>>, %arg5: memref<1x128xf32, #tpu.memory_space<vmem>>, %arg6: memref<1x8x16x128xf32, #tpu.memory_space<vmem>>) attributes {dimension_semantics = [#tpu.dimension_semantics<parallel>, #tpu.dimension_semantics<parallel>], iteration_bounds = array<i64: 2, 2>, scalar_prefetch = 0 : i64, scratch_operands = 0 : i64, tpu.core_type = #tpu.core_type<tc>, window_params = [{transform_indices = @transform_0, window_bounds = array<i64: 1, 8, 16, 128>}, {transform_indices = @transform_1, window_bounds = array<i64: 1, 8, 16, 128>}, {pipeline_mode = #tpu.pipeline_mode<synchronous>, transform_indices = @transform_2, window_bounds = array<i64: 1, 128>}, {pipeline_mode = #tpu.pipeline_mode<synchronous>, transform_indices = @transform_3, window_bounds = array<i64: 1, 128>}, {transform_indices = @transform_4, window_bounds = array<i64: 1, 8, 16, 128>}]} {
    %c0 = arith.constant 0 : index
    %c0_0 = arith.constant 0 : index
    %c0_1 = arith.constant 0 : index
    %c0_2 = arith.constant 0 : index
    %0 = vector.load %arg2[%c0, %c0_0, %c0_1, %c0_2] : memref<1x8x16x128xf32, #tpu.memory_space<vmem>>, vector<1x8x16x128xf32>
    %c0_3 = arith.constant 0 : index
    %c0_4 = arith.constant 0 : index
    %c0_5 = arith.constant 0 : index
    %c0_6 = arith.constant 0 : index
    %1 = vector.load %arg3[%c0_3, %c0_4, %c0_5, %c0_6] : memref<1x8x16x128xf32, #tpu.memory_space<vmem>>, vector<1x8x16x128xf32>
    %c0_7 = arith.constant 0 : index
    %c0_8 = arith.constant 0 : index
    %2 = vector.load %arg4[%c0_7, %c0_8] : memref<1x128xf32, #tpu.memory_space<vmem>>, vector<1x128xf32>
    %3 = vector.shape_cast %2 : vector<1x128xf32> to vector<1x1x1x128xf32>
    %4 = vector.broadcast %3 : vector<1x1x1x128xf32> to vector<1x8x16x128xf32>
    %5 = arith.mulf %0, %4 : vector<1x8x16x128xf32>
    %6 = arith.addf %1, %5 : vector<1x8x16x128xf32>
    %c0_9 = arith.constant 0 : index
    %c0_10 = arith.constant 0 : index
    %7 = vector.load %arg5[%c0_9, %c0_10] : memref<1x128xf32, #tpu.memory_space<vmem>>, vector<1x128xf32>
    %8 = vector.shape_cast %7 : vector<1x128xf32> to vector<1x1x1x128xf32>
    %9 = vector.broadcast %8 : vector<1x1x1x128xf32> to vector<1x8x16x128xf32>
    %10 = arith.addf %6, %9 : vector<1x8x16x128xf32>
    %c0_11 = arith.constant 0 : index
    %c0_12 = arith.constant 0 : index
    %c0_13 = arith.constant 0 : index
    %c0_14 = arith.constant 0 : index
    %11 = vector.load %arg6[%c0_11, %c0_12, %c0_13, %c0_14] : memref<1x8x16x128xf32, #tpu.memory_space<vmem>>, vector<1x8x16x128xf32>
    tpu.vector_store %arg6[%c0_11, %c0_12, %c0_13, %c0_14], %10 {strides = array<i32>} : memref<1x8x16x128xf32, #tpu.memory_space<vmem>>, vector<1x8x16x128xf32>,
    return
  }
  func.func @transform_0(%arg0: i32, %arg1: i32) -> (i32, i32, i32, i32) {
    %c0_i32 = arith.constant 0 : i32
    %c0_i32_0 = arith.constant 0 : i32
    %c0_i32_1 = arith.constant 0 : i32
    return %arg0, %arg1, %c0_i32, %c0_i32_0 : i32, i32, i32, i32
  }
  func.func @transform_1(%arg0: i32, %arg1: i32) -> (i32, i32, i32, i32) {
    %c0_i32 = arith.constant 0 : i32
    %c0_i32_0 = arith.constant 0 : i32
    %c0_i32_1 = arith.constant 0 : i32
    return %arg0, %arg1, %c0_i32, %c0_i32_0 : i32, i32, i32, i32
  }
  func.func @transform_2(%arg0: i32, %arg1: i32) -> (i32, i32) {
    %c0_i32 = arith.constant 0 : i32
    %c0_i32_0 = arith.constant 0 : i32
    %c0_i32_1 = arith.constant 0 : i32
    return %c0_i32, %c0_i32_0 : i32, i32
  }
  func.func @transform_3(%arg0: i32, %arg1: i32) -> (i32, i32) {
    %c0_i32 = arith.constant 0 : i32
    %c0_i32_0 = arith.constant 0 : i32
    %c0_i32_1 = arith.constant 0 : i32
    return %c0_i32, %c0_i32_0 : i32, i32
  }
  func.func @transform_4(%arg0: i32, %arg1: i32) -> (i32, i32, i32, i32) {
    %c0_i32 = arith.constant 0 : i32
    %c0_i32_0 = arith.constant 0 : i32
    %c0_i32_1 = arith.constant 0 : i32
    return %arg0, %arg1, %c0_i32, %c0_i32_0 : i32, i32, i32, i32
  }
}

</mosaic_0001>

<bundles_post_ra>
// kernel: resnet_block_forward.5
= control target key start
LH: loop header
LB: loop body
LE: loop exit
PB: predicated region body
PF: predicated region fallthrough
CT: control target
= control target key end

     0   :  { %s637_s15 = smov 0   ;;  %s639_s16 = smov 0   ;;  %s787_s0 = inlined_call_operand.vmem [shape: f32[2,16,16,128], index: 0, kind: input, shape index: {}]   ;;  %s788_s1 = inlined_call_operand.vmem [shape: f32[2,16,16,128], index: 1, kind: input, shape index: {}]   ;;  %s789_s2 = inlined_call_operand.vmem [shape: f32[1,128], index: 2, kind: input, shape index: {}]   ;;  %s790_s3 = inlined_call_operand.vmem [shape: f32[1,128], index: 3, kind: input, shape index: {}]   ;;  %s791_s4 = inlined_call_operand.vmem [shape: f32[2,16,16,128], index: 4, kind: output, shape index: {}]  }
   0x1   :  { %s641_s17 = smov 0   ;;  %s643_s18 = smov 0  }
   0x2   :  { %s645_s19 = smov 0  }
   0x3 LB: > { %s23_s20 = sadd.s32 1, %s602_s17  ;;  %s26_s21 = sadd.s32 1, %s606_s18  ;;  %s610_s19 = sphi %s645_s19, %s14_s19   ;;  %s606_s18 = sphi %s643_s18, %s795_s18   ;;  %s602_s17 = sphi %s641_s17, %s794_s17   ;;  %s598_s16 = sphi %s639_s16, %s793_s16   ;;  %s594_s15 = sphi %s637_s15, %s792_s15  }
   0x4   : > { %p24_p0 = scmp.ge.s32.totalorder %s23_s20, 2  ;;  %p515_p1 = scmp.ge.s32.totalorder %s610_s19, 1 }
   0x5   : > { %p202_p2 = scmp.lt.s32.totalorder %s610_s19, 5 }
   0x6   : > { %s797_s20 = smov (%p24_p0, %s23_s20), 0  ;;  %s799_s21 = smov (!%p24_p0, %s26_s21), %s606_s18 }
   0x7   : > { %p203_p3 = pnand %p515_p1, %p202_p2  ;;  %p28_p4 = scmp.ge.s32.totalorder %s799_s21, 2 }
   0x8   : > { %s516_s22 = sshll.u32 (!%p203_p3), %s594_s15, 3  ;;  %p249_p5 = scmp.lt.s32.totalorder (!%p203_p3), %s598_s16, 1 }
   0x9   : > { %s801_s21 = smov (%p28_p4, %s799_s21), 0  ;;  %206 = sbr.rel (%p203_p3) target bundleno = 39 (0x27), region = 36 }
   0xa   : > { %p251_p6 = scmp.lt.s32.totalorder (!%p203_p3), %s516_s22, 15 }
   0xe   : > { %s803_s16 = smov (!%p249_p5, %s598_s16), 1  ;;  %s805_s22 = smov (!%p251_p6, %s516_s22), 15  ;;  %v670_v0 = vld [vmem:[%s789_s2] ss:$0 sm:$0xff] }
   0xf   : > { %s518_s23 = sshll.u32 %s803_s16, 5  ;;  %s517_s24 = sshll.u32 %s805_s22, 1  ;;  %v687_v3 = vld [vmem:[%s790_s3] ss:$0 sm:$0xff] }
  0x10   : > { %s255_s25 = sadd.s32 %s518_s23, %s517_s24 }
  0x11   : > { %s519_s26 = sshll.u32 %s255_s25, 3 }
  0x12   : > { %s675_s5 = scalar_lea.vmem %s787_s0, %s519_s26  ;;  %s680_s8 = scalar_lea.vmem %s788_s1, %s519_s26 }
  0x13   : > { %v281_v1 = vld [vmem:[%s675_s5] sm:$0xff]  ;;  %v282_v4 = vld [vmem:[%s675_s5 + $0x8] sm:$0xff]  ;;  %v283_v8 = vld [vmem:[%s675_s5 + $0x10] sm:$0xff]  ;;  %s707_s13 = scalar_lea.vmem %s791_s4, %s519_s26 }
  0x14   : > { %v297_v2 = vld [vmem:[%s680_s8] sm:$0xff]  ;;  %v320_v5 = vmul.f32 %v670_v0, %v281_v1  ;;  %v298_v6 = vld [vmem:[%s680_s8 + $0x8] sm:$0xff]  ;;  %v321_v7 = vmul.f32 %v670_v0, %v282_v4  ;;  %v299_v9 = vld [vmem:[%s680_s8 + $0x10] sm:$0xff]  ;;  %v322_v10 = vmul.f32 %v670_v0, %v283_v8 }
  0x15   : > { %v284_v11 = vld [vmem:[%s675_s5 + $0x18] sm:$0xff]  ;;  %v285_v13 = vld [vmem:[%s675_s5 + $0x20] sm:$0xff]  ;;  %v286_v19 = vld [vmem:[%s675_s5 + $0x28] sm:$0xff] }
  0x16   : > { %v300_v12 = vld [vmem:[%s680_s8 + $0x18] sm:$0xff]  ;;  %v336_v14 = vadd.f32 %v320_v5, %v297_v2  ;;  %v337_v15 = vadd.f32 %v321_v7, %v298_v6  ;;  %v323_v16 = vmul.f32 %v670_v0, %v284_v11  ;;  %v301_v17 = vld [vmem:[%s680_s8 + $0x20] sm:$0xff]  ;;  %v324_v18 = vmul.f32 %v670_v0, %v285_v13  ;;  %v302_v20 = vld [vmem:[%s680_s8 + $0x28] sm:$0xff] }
  0x17   : > { %v338_v21 = vadd.f32 %v322_v10, %v299_v9  ;;  %v325_v22 = vmul.f32 %v670_v0, %v286_v19  ;;  %v287_v23 = vld [vmem:[%s675_s5 + $0x30] sm:$0xff]  ;;  %v288_v25 = vld [vmem:[%s675_s5 + $0x38] sm:$0xff]  ;;  %v289_v31 = vld [vmem:[%s675_s5 + $0x40] sm:$0xff] }
  0x18   : > { %v303_v24 = vld [vmem:[%s680_s8 + $0x30] sm:$0xff]  ;;  %v359_v26 = vadd.f32 %v687_v3, %v336_v14  ;;  %v360_v27 = vadd.f32 %v687_v3, %v337_v15  ;;  %v339_v28 = vadd.f32 %v323_v16, %v300_v12  ;;  %v340_v29 = vadd.f32 %v324_v18, %v301_v17  ;;  %v304_v30 = vld [vmem:[%s680_s8 + $0x38] sm:$0xff]  ;;  %v305_v32 = vld [vmem:[%s680_s8 + $0x40] sm:$0xff] }
  0x19   : > { %v361_v33 = vadd.f32 %v687_v3, %v338_v21  ;;  %v341_v34 = vadd.f32 %v325_v22, %v302_v20  ;;  %v326_v35 = vmul.f32 %v670_v0, %v287_v23  ;;  %v327_v36 = vmul.f32 %v670_v0, %v288_v25  ;;  %v290_v37 = vld [vmem:[%s675_s5 + $0x48] sm:$0xff]  ;;  %v291_v39 = vld [vmem:[%s675_s5 + $0x50] sm:$0xff]  ;;  %v292_v45 = vld [vmem:[%s675_s5 + $0x58] sm:$0xff] }
  0x1a   : > { %v306_v38 = vld [vmem:[%s680_s8 + $0x48] sm:$0xff]  ;;  %375 = vst [vmem:[%s707_s13] sm:$0xff] %v359_v26  ;;  %376 = vst [vmem:[%s707_s13 + $0x8] sm:$0xff] %v360_v27  ;;  %v362_v40 = vadd.f32 %v687_v3, %v339_v28  ;;  %v363_v41 = vadd.f32 %v687_v3, %v340_v29  ;;  %v328_v42 = vmul.f32 %v670_v0, %v289_v31  ;;  %v307_v44 = vld [vmem:[%s680_s8 + $0x50] sm:$0xff] }
  0x1b   : > { %v329_v43 = vmul.f32 %v670_v0, %v290_v37  ;;  %v308_v46 = vld [vmem:[%s680_s8 + $0x58] sm:$0xff]  ;;  %377 = vst [vmem:[%s707_s13 + $0x10] sm:$0xff] %v361_v33  ;;  %v364_v47 = vadd.f32 %v687_v3, %v341_v34  ;;  %v342_v48 = vadd.f32 %v326_v35, %v303_v24  ;;  %v343_v49 = vadd.f32 %v327_v36, %v304_v30  ;;  %v293_v51 = vld [vmem:[%s675_s5 + $0x60] sm:$0xff]  ;;  %v294_v53 = vld [vmem:[%s675_s5 + $0x68] sm:$0xff] }
  0x1c   : > { %v330_v50 = vmul.f32 %v670_v0, %v291_v39  ;;  %v309_v52 = vld [vmem:[%s680_s8 + $0x60] sm:$0xff]  ;;  %378 = vst [vmem:[%s707_s13 + $0x18] sm:$0xff] %v362_v40  ;;  %379 = vst [vmem:[%s707_s13 + $0x20] sm:$0xff] %v363_v41  ;;  %v344_v54 = vadd.f32 %v328_v42, %v305_v32  ;;  %v331_v56 = vmul.f32 %v670_v0, %v292_v45  ;;  %v310_v58 = vld [vmem:[%s680_s8 + $0x68] sm:$0xff] }
  0x1d   : > { %v345_v55 = vadd.f32 %v329_v43, %v306_v38  ;;  %v332_v57 = vmul.f32 %v670_v0, %v293_v51  ;;  %v295_v59 = vld [vmem:[%s675_s5 + $0x70] sm:$0xff]  ;;  %380 = vst [vmem:[%s707_s13 + $0x28] sm:$0xff] %v364_v47  ;;  %v365_v60 = vadd.f32 %v687_v3, %v342_v48  ;;  %v366_v61 = vadd.f32 %v687_v3, %v343_v49  ;;  %v296_v1 = vld [vmem:[%s675_s5 + $0x78] sm:$0xff] }
  0x1e   : > { %v346_v62 = vadd.f32 %v330_v50, %v307_v44  ;;  %v333_v63 = vmul.f32 %v670_v0, %v294_v53  ;;  %v367_v2 = vadd.f32 %v687_v3, %v344_v54  ;;  %v347_v5 = vadd.f32 %v331_v56, %v308_v46  ;;  %v311_v7 = vld [vmem:[%s680_s8 + $0x70] sm:$0xff]  ;;  %v312_v8 = vld [vmem:[%s680_s8 + $0x78] sm:$0xff] }
  0x1f   : > { %v368_v4 = vadd.f32 %v687_v3, %v345_v55  ;;  %v348_v6 = vadd.f32 %v332_v57, %v309_v52  ;;  %381 = vst [vmem:[%s707_s13 + $0x30] sm:$0xff] %v365_v60  ;;  %382 = vst [vmem:[%s707_s13 + $0x38] sm:$0xff] %v366_v61  ;;  %v334_v11 = vmul.f32 %v670_v0, %v295_v59 }
  0x20   : > { %v369_v9 = vadd.f32 %v687_v3, %v346_v62  ;;  %v349_v10 = vadd.f32 %v333_v63, %v310_v58  ;;  %v335_v12 = vmul.f32 %v670_v0, %v296_v1  ;;  %383 = vst [vmem:[%s707_s13 + $0x40] sm:$0xff] %v367_v2  ;;  %v370_v13 = vadd.f32 %v687_v3, %v347_v5 }
  0x21   : > { %384 = vst [vmem:[%s707_s13 + $0x48] sm:$0xff] %v368_v4  ;;  %v371_v14 = vadd.f32 %v687_v3, %v348_v6  ;;  %v350_v16 = vadd.f32 %v334_v11, %v311_v7 }
  0x22   : > { %385 = vst [vmem:[%s707_s13 + $0x50] sm:$0xff] %v369_v9  ;;  %v372_v15 = vadd.f32 %v687_v3, %v349_v10  ;;  %v351_v17 = vadd.f32 %v335_v12, %v312_v8  ;;  %386 = vst [vmem:[%s707_s13 + $0x58] sm:$0xff] %v370_v13 }
  0x23   : > { %387 = vst [vmem:[%s707_s13 + $0x60] sm:$0xff] %v371_v14  ;;  %v373_v18 = vadd.f32 %v687_v3, %v350_v16 }
  0x24   : > { %388 = vst [vmem:[%s707_s13 + $0x68] sm:$0xff] %v372_v15  ;;  %v374_v19 = vadd.f32 %v687_v3, %v351_v17 }
  0x25   : > { %389 = vst [vmem:[%s707_s13 + $0x70] sm:$0xff] %v373_v18 }
  0x26   : > { %390 = vst [vmem:[%s707_s13 + $0x78] sm:$0xff] %v374_v19 }
  0x27 PF: > { %s14_s19 = sadd.s32 1, %s610_s19   ;;  %s792_s15 = smov %s602_s17 }
  0x28   : > { %p11_p7 = scmp.ge.s32.totalorder %s14_s19, 6   ;;  %s793_s16 = smov %s606_s18 }
  0x29   : > { %s794_s17 = smov %s797_s20  ;;  %s795_s18 = smov %s801_s21 }
  0x2a   :  { %13 = sbr.rel (!%p11_p7) target bundleno = 3 (0x3), region = 69 }

// kernel: resnet_block_forward.4
= control target key start
LH: loop header
LB: loop body
LE: loop exit
PB: predicated region body
PF: predicated region fallthrough
CT: control target
= control target key end

     0   :  { %s3671_s18 = smov 0   ;;  %s3673_s19 = smov 0   ;;  %s4650_s0 = inlined_call_operand.vmem [shape: f32[2,18,18,128], index: 0, kind: input, shape index: {}]   ;;  %s4651_s1 = inlined_call_operand.vmem [shape: bf16[9,128,128], index: 1, kind: input, shape index: {}]   ;;  %s4652_s2 = inlined_call_operand.vmem [shape: f32[1,128], index: 2, kind: input, shape index: {}]   ;;  %s4653_s3 = inlined_call_operand.vmem [shape: f32[1,128], index: 3, kind: input, shape index: {}]   ;;  %s4654_s4 = inlined_call_operand.vmem [shape: f32[2,16,16,128], index: 4, kind: output, shape index: {0}]   ;;  %s4655_s5 = inlined_call_operand.vmem [shape: f32[2,8,128], index: 5, kind: output, shape index: {1}]  }
   0x1   :  { %s3675_s20 = smov 0   ;;  %s3677_s21 = smov 0  }
   0x2   :  { %s3679_s22 = smov 0  }
   0x3 LB: > { %s25_s23 = sadd.s32 1, %s3630_s20  ;;  %s28_s24 = sadd.s32 1, %s3634_s21  ;;  %s3638_s22 = sphi %s3679_s22, %s16_s22   ;;  %s3634_s21 = sphi %s3677_s21, %s4695_s21   ;;  %s3630_s20 = sphi %s3675_s20, %s4694_s20   ;;  %s3626_s19 = sphi %s3673_s19, %s4693_s19   ;;  %s3622_s18 = sphi %s3671_s18, %s4692_s18  }
   0x4   : > { %p26_p0 = scmp.ge.s32.totalorder %s25_s23, 2  ;;  %p2722_p1 = scmp.ge.s32.totalorder %s3638_s22, 1 }
   0x5   : > { %p204_p2 = scmp.lt.s32.totalorder %s3638_s22, 5 }
   0x6   : > { %s4697_s23 = smov (%p26_p0, %s25_s23), 0  ;;  %s4699_s24 = smov (!%p26_p0, %s28_s24), %s3634_s21 }
   0x7   : > { %p205_p3 = pnand %p2722_p1, %p204_p2  ;;  %p30_p4 = scmp.ge.s32.totalorder %s4699_s24, 2 }
   0x9   : > { %s4701_s24 = smov (%p30_p4, %s4699_s24), 0  ;;  %208 = sbr.rel (%p205_p3) target bundleno = 437 (0x1b5), region = 36 }
   0xe   : > { %p241_p5 = scmp.lt.s32.totalorder %s3626_s19, 1  ;;  %s2724_s25 = sshll.u32 %s3622_s18, 3 }
   0xf   : > { %p249_p6 = scmp.lt.s32.totalorder %s2724_s25, 15  ;;  %p2730_p7 = scmp.ne.s32.totalorder %s3622_s18, 0 }
  0x10   : > { %s4703_s19 = smov (!%p241_p5, %s3626_s19), 1 }
  0x11   : > { %s4705_s25 = smov (!%p249_p6, %s2724_s25), 15  ;;  %s3484_s26 = smul.u32 432, %s4703_s19 }
  0x12   : > { %s2726_s27 = sshll.u32 %s4703_s19, 5  ;;  %s2725_s28 = sshll.u32 %s4705_s25, 1 }
  0x13   : > { %s2728_s29 = sshll.u32 %s4703_s19, 3  ;;  %s3707_s7 = scalar_lea.vmem %s4650_s0, %s3484_s26 }
  0x14   : > { %s253_s8 = sadd.s32 %s2726_s27, %s2725_s28  ;;  %s3712_s12 = scalar_lea.vmem %s4655_s5, %s2728_s29 }
  0x15   : > { %s2727_s9 = sshll.u32 %s253_s8, 3  ;;  %266 = sbr.rel (%p2730_p7) target bundleno = 28 (0x1c), region = 40 }
  0x16   : > { %s3717_s15 = scalar_lea.vmem %s4654_s4, %s2727_s9 }
  0x1a   : > { %v3640_v0 = vmov 0.0  }
  0x1b   : > { %267 = vst [vmem:[%s3712_s12] sm:$0xff] %v3640_v0 }
  0x1c PF: > { %v3526_v1 = vld [vmem:[%s4651_s1 + $0x78] sm:$0xff]   ;;  %v3528_v3 = vld [vmem:[%s4651_s1 + $0x70] sm:$0xff]   ;;  %v3530_v5 = vld [vmem:[%s4651_s1 + $0x68] sm:$0xff]   ;;  %s2731_s16 = smul.u32 192, %s3622_s18 }
  0x1d   : > { %v3527_v2 = vld [vmem:[%s4651_s1 + $0x38] sm:$0xff]   ;;  %3180 = vmatprep.subr.bf16.mxu0 %v3526_v1  ;;  %v3529_v4 = vld [vmem:[%s4651_s1 + $0x30] sm:$0xff]   ;;  %v3531_v6 = vld [vmem:[%s4651_s1 + $0x28] sm:$0xff]  }
  0x1e   : > { %3212 = vmatprep.subr.bf16.mxu1 %v3527_v2  ;;  %3181 = vmatpush3.bf16.msra.mxu0 %v3526_v1  ;;  %v3532_v7 = vld [vmem:[%s4651_s1 + $0x60] sm:$0xff]   ;;  %v3534_v9 = vld [vmem:[%s4651_s1 + $0x58] sm:$0xff]   ;;  %s3753_s27 = scalar_lea.vmem %s3707_s7, %s2731_s16  ;;  %v3536_v11 = vld [vmem:[%s4651_s1 + $0x50] sm:$0xff]  }
  0x1f   : > { %3213 = vmatpush3.bf16.msra.mxu1 %v3527_v2  ;;  %3182 = vmatprep.subr.bf16.mxu0 %v3528_v3  ;;  %v3533_v8 = vld [vmem:[%s4651_s1 + $0x20] sm:$0xff]   ;;  %v3535_v10 = vld [vmem:[%s4651_s1 + $0x18] sm:$0xff]   ;;  %v3537_v12 = vld [vmem:[%s4651_s1 + $0x10] sm:$0xff]  }
  0x20   : > { %3214 = vmatprep.subr.bf16.mxu1 %v3529_v4  ;;  %v3764_v13 = vld [vmem:[%s4652_s2] ss:$0 sm:$0xff]  ;;  %v372_v15 = vld [vmem:[%s3753_s27 + $0x1] sm:$0xff]  ;;  %v373_v16 = vld [vmem:[%s3753_s27 + $0x9] sm:$0xff] }
  0x21   : > { %v3769_v14 = vld [vmem:[%s4653_s3] ss:$0 sm:$0xff]  ;;  %v388_v17 = vmul.f32 %v3764_v13, %v372_v15  ;;  %v273_v19 = vld [vmem:[%s3753_s27 + $0x8] sm:$0xff]  ;;  %v389_v20 = vmul.f32 %v3764_v13, %v373_v16  ;;  %v274_v25 = vld [vmem:[%s3753_s27 + $0x18] sm:$0xff] }
  0x22   : > { %3183 = vmatpush3.bf16.msra.mxu0 %v3528_v3  ;;  %v272_v18 = vld [vmem:[%s3753_s27] sm:$0xff]  ;;  %v295_v22 = vmul.f32 %v3764_v13, %v273_v19  ;;  %v296_v30 = vmul.f32 %v3764_v13, %v274_v25  ;;  %v3538_v31 = vld [vmem:[%s4651_s1 + $0x48] sm:$0xff]   ;;  %v376_v47 = vld [vmem:[%s3753_s27 + $0x31] sm:$0xff] }
  0x23   : > { %3215 = vmatpush3.bf16.msra.mxu1 %v3529_v4  ;;  %3184 = vmatprep.subr.bf16.mxu0 %v3530_v5  ;;  %v294_v21 = vmul.f32 %v3764_v13, %v272_v18  ;;  %v374_v23 = vld [vmem:[%s3753_s27 + $0x19] sm:$0xff]  ;;  %v375_v24 = vld [vmem:[%s3753_s27 + $0x21] sm:$0xff]  ;;  %v404_v26 = vadd.f32 %v3769_v14, %v388_v17  ;;  %v405_v32 = vadd.f32 %v3769_v14, %v389_v20  ;;  %v276_v53 = vld [vmem:[%s3753_s27 + $0x30] sm:$0xff] }
  0x24   : > { %3216 = vmatprep.subr.bf16.mxu1 %v3531_v6  ;;  %v390_v27 = vmul.f32 %v3764_v13, %v374_v23  ;;  %v391_v28 = vmul.f32 %v3764_v13, %v375_v24  ;;  %v275_v29 = vld [vmem:[%s3753_s27 + $0x20] sm:$0xff]  ;;  %v317_v34 = vadd.f32 %v3769_v14, %v295_v22  ;;  %v3539_v35 = vld [vmem:[%s4651_s1 + $0x8] sm:$0xff]   ;;  %v318_v44 = vadd.f32 %v3769_v14, %v296_v30  ;;  %v277_v54 = vld [vmem:[%s3753_s27 + $0x38] sm:$0xff] }
  0x25   : > { %v316_v33 = vadd.f32 %v3769_v14, %v294_v21  ;;  %v420_v36 = vmax.f32 %v404_v26, 0.0  ;;  %v297_v39 = vmul.f32 %v3764_v13, %v275_v29  ;;  %v3540_v40 = vld [vmem:[%s4651_s1 + $0x40] sm:$0xff]   ;;  %v421_v41 = vmax.f32 %v405_v32, 0.0  ;;  %v378_v59 = vld [vmem:[%s3753_s27 + $0x49] sm:$0xff]  ;;  %v379_v60 = vld [vmem:[%s3753_s27 + $0x51] sm:$0xff] }
  0x26   : > { %3185 = vmatpush3.bf16.msra.mxu0 %v3530_v5  ;;  %v406_v37 = vadd.f32 %v3769_v14, %v390_v27  ;;  %v407_v38 = vadd.f32 %v3769_v14, %v391_v28  ;;  %v333_v43 = vmax.f32 %v317_v34, 0.0  ;;  %v3541_v45 = vld [vmem:[%s4651_s1] sm:$0xff]   ;;  %v3810_v52 = vmul.f32 %v3764_v13, %v376_v47  ;;  %v278_v61 = vld [vmem:[%s3753_s27 + $0x48] sm:$0xff]  ;;  %v279_v2 = vld [vmem:[%s3753_s27 + $0x50] sm:$0xff] }
  0x27   : > { %3217 = vmatpush3.bf16.msra.mxu1 %v3531_v6  ;;  %3186 = vmatprep.subr.bf16.mxu0 %v3532_v7  ;;  %v332_v42 = vmax.f32 %v316_v33, 0.0  ;;  %v319_v46 = vadd.f32 %v3769_v14, %v297_v39  ;;  %v436_v48 = vpack.c.bf16 %v421_v41, %v420_v36  ;;  %v377_v51 = vld [vmem:[%s3753_s27 + $0x39] sm:$0xff]  ;;  %v334_v56 = vmax.f32 %v318_v44, 0.0  ;;  %v3544_v20 = vld [vmem:[%s4651_s1 + $0xb0] sm:$0xff]   ;;  %v3858_v23 = vld [vmem:[%s3753_s27 + $0x61] sm:$0xff] }
  0x28   : > { %3218 = vmatprep.subr.bf16.mxu1 %v3533_v8  ;;  %v422_v50 = vmax.f32 %v406_v37, 0.0  ;;  %v423_v55 = vmax.f32 %v407_v38, 0.0  ;;  %v3815_v57 = vmul.f32 %v3764_v13, %v377_v51  ;;  %v298_v58 = vmul.f32 %v3764_v13, %v276_v53  ;;  %v3542_v6 = vld [vmem:[%s4651_s1 + $0xb8] sm:$0xff]   ;;  %v3861_v24 = vld [vmem:[%s3753_s27 + $0x69] sm:$0xff]  ;;  %v280_v29 = vld [vmem:[%s3753_s27 + $0x60] sm:$0xff] }
  0x29   : > { %v348_v49 = vpack.c.bf16 %v333_v43, %v332_v42  ;;  %3196 = vmatprep.mubr.bf16.mxu0 %v436_v48  ;;  %v335_v62 = vmax.f32 %v319_v46, 0.0  ;;  %v408_v63 = vadd.f32 %v3769_v14, %v3810_v52  ;;  %v299_v0 = vmul.f32 %v3764_v13, %v277_v54  ;;  %v281_v30 = vld [vmem:[%s3753_s27 + $0x68] sm:$0xff]  ;;  %v3545_v32 = vld [vmem:[%s4651_s1 + $0xf0] sm:$0xff]   ;;  %v282_v38 = vld [vmem:[%s3753_s27 + $0x78] sm:$0xff] }
  0x2a   : > { %3187 = vmatpush3.bf16.msra.mxu0 %v3532_v7  ;;  %v3825_v1 = vmul.f32 %v3764_v13, %v378_v59  ;;  %v409_v3 = vadd.f32 %v3769_v14, %v3815_v57  ;;  %v320_v4 = vadd.f32 %v3769_v14, %v298_v58  ;;  %v3832_v5 = vmul.f32 %v3764_v13, %v379_v60  ;;  %v3881_v37 = vld [vmem:[%s3753_s27 + $0x81] sm:$0xff] }
  0x2b   : > { %3219 = vmatpush3.bf16.msra.mxu1 %v3533_v8  ;;  %3188 = vmatprep.subr.bf16.mxu0 %v3534_v9  ;;  %v424_v7 = vmax.f32 %v408_v63, 0.0  ;;  %v321_v8 = vadd.f32 %v3769_v14, %v299_v0  ;;  %v301_v17 = vmul.f32 %v3764_v13, %v279_v2  ;;  %v3849_v18 = vpack.c.bf16 %v423_v55, %v422_v50  ;;  %v283_v47 = vld [vmem:[%s3753_s27 + $0x80] sm:$0xff]  ;;  %v3546_v48 = vld [vmem:[%s4651_s1 + $0xa8] sm:$0xff]  }
  0x2c   : > { %3220 = vmatprep.subr.bf16.mxu1 %v3535_v10  ;;  %3228 = vmatprep.mubr.bf16.mxu1 %v348_v49  ;;  %v336_v15 = vmax.f32 %v320_v4, 0.0  ;;  %v411_v16 = vadd.f32 %v3769_v14, %v3832_v5  ;;  %v3851_v19 = vpack.c.bf16 %v335_v62, %v334_v56  ;;  %v396_v28 = vmul.f32 %v3764_v13, %v3858_v23  ;;  %v3547_v58 = vld [vmem:[%s4651_s1 + $0xe8] sm:$0xff]   ;;  %v3910_v62 = vld [vmem:[%s3753_s27 + $0x91] sm:$0xff]  ;;  %v3913_v63 = vld [vmem:[%s3753_s27 + $0x99] sm:$0xff] }
  0x2d   : > { %v337_v21 = vmax.f32 %v321_v8, 0.0  ;;  %v323_v27 = vadd.f32 %v3769_v14, %v301_v17  ;;  %v302_v36 = vmul.f32 %v3764_v13, %v280_v29  ;;  %v303_v42 = vmul.f32 %v3764_v13, %v281_v30  ;;  %v284_v4 = vld [vmem:[%s3753_s27 + $0x90] sm:$0xff]  ;;  %v3548_v8 = vld [vmem:[%s4651_s1 + $0xa0] sm:$0xff]  }
  0x2e   : > { %3189 = vmatpush3.bf16.msra.mxu0 %v3534_v9  ;;  %v3840_v9 = vadd.f32 %v3769_v14, %v3825_v1  ;;  %v427_v34 = vmax.f32 %v411_v16, 0.0  ;;  %v412_v41 = vadd.f32 %v3769_v14, %v396_v28  ;;  %v399_v46 = vmul.f32 %v3764_v13, %v3881_v37  ;;  %v286_v16 = vld [vmem:[%s3753_s27 + $0xa8] sm:$0xff]  ;;  %v3549_v17 = vld [vmem:[%s4651_s1 + $0xe0] sm:$0xff]   ;;  %v287_v30 = vld [vmem:[%s3753_s27 + $0xb0] sm:$0xff] }
  0x2f   : > { %3221 = vmatpush3.bf16.msra.mxu1 %v3535_v10  ;;  %3190 = vmatprep.subr.bf16.mxu0 %v3536_v11  ;;  %v300_v10 = vmul.f32 %v3764_v13, %v278_v61  ;;  %v3875_v33 = vpack.c.bf16 %v337_v21, %v336_v15  ;;  %v324_v44 = vadd.f32 %v3769_v14, %v302_v36  ;;  %v3932_v15 = vld [vmem:[%s3753_s27 + $0xb1] sm:$0xff] }
  0x30   : > { %3222 = vmatprep.subr.bf16.mxu1 %v3537_v12  ;;  %v426_v26 = vmax.f32 %v3840_v9, 0.0  ;;  %v428_v49 = vmax.f32 %v412_v41, 0.0  ;;  %v325_v50 = vadd.f32 %v3769_v14, %v303_v42  ;;  %v304_v51 = vmul.f32 %v3764_v13, %v282_v38 }
  0x31   : > { %v322_v22 = vadd.f32 %v3769_v14, %v300_v10  ;;  %v340_v54 = vmax.f32 %v324_v44, 0.0  ;;  %v415_v56 = vadd.f32 %v3769_v14, %v399_v46  ;;  %v305_v60 = vmul.f32 %v3764_v13, %v283_v47  ;;  %v751_v46 = vld [vmem:[%s3753_s27 + $0x2] sm:$0xff]  ;;  %v752_v47 = vld [vmem:[%s3753_s27 + $0xa] sm:$0xff] }
  0x32   : > { %3191 = vmatpush3.bf16.msra.mxu0 %v3536_v11  ;;  %v3543_v11 = vld [vmem:[%s4651_s1 + $0xf8] sm:$0xff]   ;;  %v341_v59 = vmax.f32 %v325_v50, 0.0  ;;  %v3907_v61 = vadd.f32 %v3769_v14, %v304_v51  ;;  %v439_v0 = vpack.c.bf16 %v427_v34, %v426_v26  ;;  %v403_v36 = vmul.f32 %v3764_v13, %v3932_v15 }
  0x33   : > { %3223 = vmatpush3.bf16.msra.mxu1 %v3537_v12  ;;  %3192 = vmatprep.subr.bf16.mxu0 %v3538_v31  ;;  %v425_v12 = vmax.f32 %v409_v3, 0.0  ;;  %v338_v39 = vmax.f32 %v322_v22, 0.0  ;;  %v400_v3 = vmul.f32 %v3764_v13, %v3910_v62  ;;  %v431_v21 = vmax.f32 %v415_v56, 0.0  ;;  %v3550_v34 = vld [vmem:[%s4651_s1 + $0x98] sm:$0xff]  }
  0x34   : > { %3224 = vmatprep.subr.bf16.mxu1 %v3539_v35  ;;  %v342_v26 = vmax.f32 %v3907_v61, 0.0  ;;  %v308_v38 = vmul.f32 %v3764_v13, %v286_v16  ;;  %v767_v50 = vmul.f32 %v3764_v13, %v751_v46  ;;  %v753_v51 = vld [vmem:[%s3753_s27 + $0x1a] sm:$0xff]  ;;  %v3552_v61 = vld [vmem:[%s4651_s1 + $0x90] sm:$0xff]  }
  0x35   : > { %v438_v25 = vpack.c.bf16 %v425_v12, %v424_v7  ;;  %v3923_v7 = vld [vmem:[%s3753_s27 + $0xa9] sm:$0xff]  ;;  %v401_v12 = vmul.f32 %v3764_v13, %v3913_v63  ;;  %v416_v22 = vadd.f32 %v3769_v14, %v400_v3 }
  0x36   : > { %3193 = vmatpush3.bf16.msra.mxu0 %v3538_v31  ;;  %v3870_v31 = vld [vmem:[%s3753_s27 + $0x79] sm:$0xff]  ;;  %v402_v29 = vmul.f32 %v3764_v13, %v3923_v7  ;;  %v783_v3 = vadd.f32 %v3769_v14, %v767_v50 }
  0x37   : > { %3225 = vmatpush3.bf16.msra.mxu1 %v3539_v35  ;;  %3194 = vmatprep.subr.bf16.mxu0 %v3540_v40  ;;  %v397_v35 = vmul.f32 %v3764_v13, %v3861_v24 }
  0x38   : > { %3226 = vmatprep.subr.bf16.mxu1 %v3541_v45  ;;  %v418_v44 = vadd.f32 %v3769_v14, %v402_v29 }
  0x39   : > { %v413_v43 = vadd.f32 %v3769_v14, %v397_v35 }
  0x3a   : > { %3195 = vmatpush3.bf16.msra.mxu0 %v3540_v40  ;;  %v339_v40 = vmax.f32 %v323_v27, 0.0  ;;  %v417_v27 = vadd.f32 %v3769_v14, %v401_v12  ;;  %v755_v12 = vld [vmem:[%s3753_s27 + $0x32] sm:$0xff] }
  0x3b   : > { %3227 = vmatpush3.bf16.msra.mxu1 %v3541_v45  ;;  %3244 = vmatprep.subr.bf16.mxu0 %v3542_v6  ;;  %v398_v45 = vmul.f32 %v3764_v13, %v3870_v31  ;;  %v429_v53 = vmax.f32 %v413_v43, 0.0  ;;  %v3551_v43 = vld [vmem:[%s4651_s1 + $0xd8] sm:$0xff]  }
  0x3c   : > { %3276 = vmatprep.subr.bf16.mxu1 %v3543_v11  ;;  %v3916_v2 = vpack.c.bf16 %v339_v40, %v338_v39  ;;  %v432_v39 = vmax.f32 %v416_v22, 0.0  ;;  %v433_v40 = vmax.f32 %v417_v27, 0.0  ;;  %v756_v22 = vld [vmem:[%s3753_s27 + $0x3a] sm:$0xff]  ;;  %v799_v27 = vmax.f32 %v783_v3, 0.0  ;;  %v4052_v3 = vld [vmem:[%s3753_s27 + $0x82] sm:$0xff] }
  0x3d   : > { %3197 = vmatmul.mubr.bf16.vlgmr.msra.gmra.mxu0 %v3849_v18  ;;  %v414_v55 = vadd.f32 %v3769_v14, %v398_v45  ;;  %v440_v9 = vpack.c.bf16 %v429_v53, %v428_v49  ;;  %v309_v45 = vmul.f32 %v3764_v13, %v287_v30  ;;  %v330_v49 = vadd.f32 %v3769_v14, %v308_v38  ;;  %v754_v53 = vld [vmem:[%s3753_s27 + $0x22] sm:$0xff] }
  0x3e   : > { %3229 = vmatmul.mubr.bf16.vlgmr.msra.gmra.mxu1 %v3851_v19  ;;  %3245 = vmatpush3.bf16.msra.mxu0 %v3542_v6  ;;  %v285_v6 = vld [vmem:[%s3753_s27 + $0x98] sm:$0xff]  ;;  %v4001_v30 = vmul.f32 %v3764_v13, %v756_v22  ;;  %v778_v22 = vmul.f32 %v3764_v13, %v4052_v3 }
  0x3f   : > { %3277 = vmatpush3.bf16.msra.mxu1 %v3543_v11  ;;  %3246 = vmatprep.subr.bf16.mxu0 %v3544_v20  ;;  %v430_v10 = vmax.f32 %v414_v55, 0.0  ;;  %v327_v11 = vadd.f32 %v3769_v14, %v305_v60  ;;  %v307_v28 = vmul.f32 %v3764_v13, %v285_v6  ;;  %v331_v56 = vadd.f32 %v3769_v14, %v309_v45 }
  0x40   : > { %3278 = vmatprep.subr.bf16.mxu1 %v3545_v32  ;;  %3200 = vmatprep.mubr.bf16.mxu0 %v438_v25  ;;  %v306_v25 = vmul.f32 %v3764_v13, %v284_v4  ;;  %v442_v60 = vpack.c.bf16 %v433_v40, %v432_v39  ;;  %v769_v4 = vmul.f32 %v3764_v13, %v753_v51  ;;  %v3556_v39 = vld [vmem:[%s4651_s1 + $0x80] sm:$0xff]  }
  0x41   : > { %3232 = vmatprep.mubr.bf16.mxu1 %v3875_v33  ;;  %v329_v41 = vadd.f32 %v3769_v14, %v307_v28  ;;  %v441_v42 = vpack.c.bf16 %v431_v21, %v430_v10  ;;  %v770_v6 = vmul.f32 %v3764_v13, %v754_v53  ;;  %v346_v10 = vmax.f32 %v330_v49, 0.0  ;;  %v3554_v21 = vld [vmem:[%s4651_s1 + $0x88] sm:$0xff]  }
  0x42   : > { %3247 = vmatpush3.bf16.msra.mxu0 %v3544_v20  ;;  %v3938_v20 = vpack.c.bf16 %v341_v59, %v340_v54  ;;  %v328_v35 = vadd.f32 %v3769_v14, %v306_v25  ;;  %v3555_v25 = vld [vmem:[%s4651_s1 + $0xc8] sm:$0xff]   ;;  %v785_v28 = vadd.f32 %v3769_v14, %v769_v4  ;;  %v3560_v4 = vld [vmem:[%s4651_s1 + $0x130] sm:$0xff]  }
  0x43   : > { %3279 = vmatpush3.bf16.msra.mxu1 %v3545_v32  ;;  %3248 = vmatprep.subr.bf16.mxu0 %v3546_v48  ;;  %v343_v32 = vmax.f32 %v327_v11, 0.0  ;;  %v345_v55 = vmax.f32 %v329_v41, 0.0  ;;  %v786_v29 = vadd.f32 %v3769_v14, %v770_v6  ;;  %v788_v41 = vadd.f32 %v3769_v14, %v4001_v30  ;;  %v4030_v49 = vld [vmem:[%s3753_s27 + $0x6a] sm:$0xff] }
  0x44   : > { %3280 = vmatprep.subr.bf16.mxu1 %v3547_v58  ;;  %v344_v54 = vmax.f32 %v328_v35, 0.0  ;;  %v4007_v35 = vld [vmem:[%s3753_s27 + $0x52] sm:$0xff]  ;;  %v801_v46 = vmax.f32 %v785_v28, 0.0  ;;  %v3563_v28 = vld [vmem:[%s4651_s1 + $0x168] sm:$0xff]  }
  0x45   : > { %3201 = vmatmul.mubr.bf16.gmra.mxu0 %v439_v0  ;;  %v3972_v59 = vpack.c.bf16 %v343_v32, %v342_v26  ;;  %v434_v0 = vmax.f32 %v418_v44, 0.0  ;;  %v3996_v26 = vmul.f32 %v3764_v13, %v755_v12  ;;  %v4004_v32 = vld [vmem:[%s3753_s27 + $0x4a] sm:$0xff]  ;;  %v774_v44 = vmul.f32 %v3764_v13, %v4007_v35 }
  0x46   : > { %3233 = vmatmul.mubr.bf16.gmra.mxu1 %v3916_v2  ;;  %3249 = vmatpush3.bf16.msra.mxu0 %v3546_v48  ;;  %v419_v48 = vadd.f32 %v3769_v14, %v403_v36  ;;  %v3985_v16 = vpack.c.bf16 %v345_v55, %v344_v54  ;;  %v804_v51 = vmax.f32 %v788_v41, 0.0  ;;  %v3558_v54 = vld [vmem:[%s4651_s1 + $0x138] sm:$0xff]  }
  0x47   : > { %3281 = vmatpush3.bf16.msra.mxu1 %v3547_v58  ;;  %3250 = vmatprep.subr.bf16.mxu0 %v3548_v8  ;;  %v768_v58 = vmul.f32 %v3764_v13, %v752_v47  ;;  %v787_v40 = vadd.f32 %v3769_v14, %v3996_v26  ;;  %v802_v47 = vmax.f32 %v786_v29, 0.0  ;;  %v790_v55 = vadd.f32 %v3769_v14, %v774_v44  ;;  %v3564_v44 = vld [vmem:[%s4651_s1 + $0x120] sm:$0xff]  }
  0x48   : > { %3282 = vmatprep.subr.bf16.mxu1 %v3549_v17  ;;  %3204 = vmatprep.mubr.bf16.mxu0 %v440_v9  ;;  %v435_v9 = vmax.f32 %v419_v48, 0.0  ;;  %v4027_v48 = vld [vmem:[%s3753_s27 + $0x62] sm:$0xff] }
  0x49   : > { %3236 = vmatprep.mubr.bf16.mxu1 %v3938_v20  ;;  %v784_v11 = vadd.f32 %v3769_v14, %v768_v58  ;;  %v803_v50 = vmax.f32 %v787_v40, 0.0  ;;  %v775_v58 = vmul.f32 %v3764_v13, %v4027_v48  ;;  %v2806_v40 = vld [vmem:[%s3753_s27 + $0xc0] sm:$0xff] }
  0x4a   : > { %3251 = vmatpush3.bf16.msra.mxu0 %v3548_v8  ;;  %v3553_v8 = vld [vmem:[%s4651_s1 + $0xd0] sm:$0xff]   ;;  %v443_v36 = vpack.c.bf16 %v435_v9, %v434_v0  ;;  %v4049_v0 = vpack.c.bf16 %v802_v47, %v801_v46  ;;  %v806_v9 = vmax.f32 %v790_v55, 0.0 }
  0x4b   : > { %3283 = vmatpush3.bf16.msra.mxu1 %v3549_v17  ;;  %3252 = vmatprep.subr.bf16.mxu0 %v3550_v34  ;;  %v347_v17 = vmax.f32 %v331_v56, 0.0  ;;  %v3559_v56 = vld [vmem:[%s4651_s1 + $0x178] sm:$0xff]   ;;  %v791_v12 = vadd.f32 %v3769_v14, %v775_v58 }
  0x4c   : > { %3284 = vmatprep.subr.bf16.mxu1 %v3551_v43  ;;  %v3566_v58 = vld [vmem:[%s4651_s1 + $0x118] sm:$0xff]  }
  0x4d   : > { %3205 = vmatmul.mubr.bf16.gmra.mxu0 %v441_v42  ;;  %v4010_v38 = vpack.c.bf16 %v347_v17, %v346_v10  ;;  %v773_v42 = vmul.f32 %v3764_v13, %v4004_v32  ;;  %v4058_v10 = vld [vmem:[%s3753_s27 + $0x92] sm:$0xff] }
  0x4e   : > { %3237 = vmatmul.mubr.bf16.gmra.mxu1 %v3972_v59  ;;  %3253 = vmatpush3.bf16.msra.mxu0 %v3550_v34  ;;  %v800_v34 = vmax.f32 %v784_v11, 0.0  ;;  %v4061_v11 = vld [vmem:[%s3753_s27 + $0x9a] sm:$0xff]  ;;  %v779_v29 = vmul.f32 %v3764_v13, %v4058_v10 }
  0x4f   : > { %3285 = vmatpush3.bf16.msra.mxu1 %v3551_v43  ;;  %3254 = vmatprep.subr.bf16.mxu0 %v3552_v61  ;;  %v3557_v43 = vld [vmem:[%s4651_s1 + $0xc0] sm:$0xff]   ;;  %v789_v53 = vadd.f32 %v3769_v14, %v773_v42 }
  0x50   : > { %3286 = vmatprep.subr.bf16.mxu1 %v3553_v8  ;;  %3208 = vmatprep.mubr.bf16.mxu0 %v442_v60  ;;  %v815_v45 = vpack.c.bf16 %v800_v34, %v799_v27  ;;  %v776_v60 = vmul.f32 %v3764_v13, %v4030_v49  ;;  %v4077_v27 = vld [vmem:[%s3753_s27 + $0xaa] sm:$0xff]  ;;  %v780_v34 = vmul.f32 %v3764_v13, %v4061_v11 }
  0x51   : > { %3240 = vmatprep.mubr.bf16.mxu1 %v3985_v16  ;;  %v805_v6 = vmax.f32 %v789_v53, 0.0  ;;  %v795_v46 = vadd.f32 %v3769_v14, %v779_v29 }
  0x52   : > { %3255 = vmatpush3.bf16.msra.mxu0 %v3552_v61  ;;  %v4046_v61 = vld [vmem:[%s3753_s27 + $0x7a] sm:$0xff]  ;;  %v792_v17 = vadd.f32 %v3769_v14, %v776_v60  ;;  %v796_v47 = vadd.f32 %v3769_v14, %v780_v34 }
  0x53   : > { %3287 = vmatpush3.bf16.msra.mxu1 %v3553_v8  ;;  %3256 = vmatprep.subr.bf16.mxu0 %v3554_v21  ;;  %v817_v8 = vpack.c.bf16 %v804_v51, %v803_v50  ;;  %v781_v50 = vmul.f32 %v3764_v13, %v4077_v27  ;;  %v2807_v51 = vld [vmem:[%s3753_s27 + $0xc8] sm:$0xff]  ;;  %v811_v60 = vmax.f32 %v795_v46, 0.0 }
  0x54   : > { %3288 = vmatprep.subr.bf16.mxu1 %v3555_v25  ;;  %v808_v41 = vmax.f32 %v792_v17, 0.0 }
  0x55   : > { %3209 = vmatmul.mubr.bf16.gmra.mxu0 %v443_v36  ;;  %v4088_v36 = vld [vmem:[%s3753_s27 + $0xb2] sm:$0xff] }
  0x56   : > { %3241 = vmatmul.mubr.bf16.gmra.mxu1 %v4010_v38  ;;  %3257 = vmatpush3.bf16.msra.mxu0 %v3554_v21  ;;  %v777_v21 = vmul.f32 %v3764_v13, %v4046_v61 }
  0x57   : > { %3289 = vmatpush3.bf16.msra.mxu1 %v3555_v25  ;;  %3258 = vmatprep.subr.bf16.mxu0 %v3556_v39  ;;  %v3562_v25 = vld [vmem:[%s4651_s1 + $0x128] sm:$0xff]  }
  0x58   : > { %3290 = vmatprep.subr.bf16.mxu1 %v3557_v43  ;;  %3260 = vmatprep.mubr.bf16.mxu0 %v815_v45  ;;  %v793_v42 = vadd.f32 %v3769_v14, %v777_v21  ;;  %v3565_v45 = vld [vmem:[%s4651_s1 + $0x160] sm:$0xff]  }
  0x59   : > { %3292 = vmatprep.mubr.bf16.mxu1 %v3851_v19  ;;  %v3561_v19 = vld [vmem:[%s4651_s1 + $0x170] sm:$0xff]  }
  0x5a   : > { %3259 = vmatpush3.bf16.msra.mxu0 %v3556_v39  ;;  %v818_v39 = vpack.c.bf16 %v806_v9, %v805_v6  ;;  %v1035_v6 = vmul.f32 %v2807_v51, %v3764_v13 }
  0x5b   : > { %3291 = vmatpush3.bf16.msra.mxu1 %v3557_v43  ;;  %3308 = vmatprep.subr.bf16.mxu0 %v3558_v54  ;;  %v794_v43 = vadd.f32 %v3769_v14, %v778_v22 }
  0x5c   : > { %3340 = vmatprep.subr.bf16.mxu1 %v3559_v56  ;;  %v1051_v17 = vadd.f32 %v3769_v14, %v1035_v6 }
  0x5d   : > { %3261 = vmatmul.mubr.bf16.vlgmr.msra.gmra.mxu0 %v4049_v0  ;;  %v810_v55 = vmax.f32 %v794_v43, 0.0 }
  0x5e   : > { %3293 = vmatmul.mubr.bf16.vlgmr.msra.gmra.mxu1 %v3875_v33  ;;  %3309 = vmatpush3.bf16.msra.mxu0 %v3558_v54  ;;  %v807_v33 = vmax.f32 %v791_v12, 0.0  ;;  %v809_v54 = vmax.f32 %v793_v42, 0.0 }
  0x5f   : > { %3341 = vmatpush3.bf16.msra.mxu1 %v3559_v56  ;;  %3310 = vmatprep.subr.bf16.mxu0 %v3560_v4  ;;  %v1034_v56 = vmul.f32 %v2806_v40, %v3764_v13 }
  0x60   : > { %3342 = vmatprep.subr.bf16.mxu1 %v3561_v19  ;;  %3264 = vmatprep.mubr.bf16.mxu0 %v817_v8  ;;  %v819_v53 = vpack.c.bf16 %v808_v41, %v807_v33  ;;  %v797_v8 = vadd.f32 %v3769_v14, %v781_v50  ;;  %v4144_v33 = vld [vmem:[%s4653_s3] ss:$0 sm:$0xff] }
  0x61   : > { %3296 = vmatprep.mubr.bf16.mxu1 %v3916_v2  ;;  %v782_v2 = vmul.f32 %v3764_v13, %v4088_v36  ;;  %v1050_v12 = vadd.f32 %v3769_v14, %v1034_v56  ;;  %v3568_v13 = vld [vmem:[%s4651_s1 + $0x110] sm:$0xff]   ;;  %v1288_v41 = vadd.f32 %v4144_v33, %v3810_v52  ;;  %v1538_v43 = vadd.f32 %v4144_v33, %v3996_v26 }
  0x62   : > { %3311 = vmatpush3.bf16.msra.mxu0 %v3560_v4  ;;  %v812_v4 = vmax.f32 %v796_v47, 0.0  ;;  %v813_v22 = vmax.f32 %v797_v8, 0.0  ;;  %v1290_v52 = vadd.f32 %v4144_v33, %v3825_v1  ;;  %v3573_v1 = vld [vmem:[%s4651_s1 + $0x140] sm:$0xff]  }
  0x63   : > { %3343 = vmatpush3.bf16.msra.mxu1 %v3561_v19  ;;  %3312 = vmatprep.subr.bf16.mxu0 %v3562_v25  ;;  %v798_v9 = vadd.f32 %v3769_v14, %v782_v2  ;;  %v3567_v19 = vld [vmem:[%s4651_s1 + $0x158] sm:$0xff]   ;;  %v1066_v29 = vmax.f32 %v1050_v12, 0.0  ;;  %v3570_v14 = vld [vmem:[%s4651_s1 + $0x108] sm:$0xff]   ;;  %v1304_v47 = vmax.f32 %v1288_v41, 0.0  ;;  %v1554_v2 = vmax.f32 %v1538_v43, 0.0  ;;  %v3576_v12 = vld [vmem:[%s4651_s1 + $0x1b0] sm:$0xff]  }
  0x64   : > { %3344 = vmatprep.subr.bf16.mxu1 %v3563_v28  ;;  %v821_v21 = vpack.c.bf16 %v812_v4, %v811_v60  ;;  %v1306_v51 = vmax.f32 %v1290_v52, 0.0  ;;  %v2847_v43 = vld [vmem:[%s3753_s27 + $0xc9] sm:$0xff] }
  0x65   : > { %3265 = vmatmul.mubr.bf16.gmra.mxu0 %v818_v39  ;;  %v4134_v39 = vld [vmem:[%s4652_s2] ss:$0 sm:$0xff] }
  0x66   : > { %3297 = vmatmul.mubr.bf16.gmra.mxu1 %v3938_v20  ;;  %3313 = vmatpush3.bf16.msra.mxu0 %v3562_v25  ;;  %v820_v20 = vpack.c.bf16 %v810_v55, %v809_v54  ;;  %v814_v25 = vmax.f32 %v798_v9, 0.0  ;;  %v1524_v40 = vmul.f32 %v4134_v39, %v4004_v32  ;;  %v1525_v42 = vmul.f32 %v4134_v39, %v4007_v35 }
  0x67   : > { %3345 = vmatpush3.bf16.msra.mxu1 %v3563_v28  ;;  %3314 = vmatprep.subr.bf16.mxu0 %v3564_v44  ;;  %v3569_v28 = vld [vmem:[%s4651_s1 + $0x150] sm:$0xff]   ;;  %v1289_v32 = vadd.f32 %v4144_v33, %v3815_v57  ;;  %v1291_v35 = vadd.f32 %v4144_v33, %v3832_v5  ;;  %v3572_v57 = vld [vmem:[%s4651_s1 + $0x100] sm:$0xff]   ;;  %v1526_v46 = vmul.f32 %v4134_v39, %v4027_v48 }
  0x68   : > { %3346 = vmatprep.subr.bf16.mxu1 %v3565_v45  ;;  %3268 = vmatprep.mubr.bf16.mxu0 %v819_v53  ;;  %v822_v34 = vpack.c.bf16 %v814_v25, %v813_v22  ;;  %v1540_v26 = vadd.f32 %v4144_v33, %v1524_v40  ;;  %v1541_v5 = vadd.f32 %v4144_v33, %v1525_v42  ;;  %v3574_v53 = vld [vmem:[%s4651_s1 + $0x1b8] sm:$0xff]  }
  0x69   : > { %3300 = vmatprep.mubr.bf16.mxu1 %v3972_v59  ;;  %v1067_v59 = vmax.f32 %v1051_v17, 0.0  ;;  %v1305_v50 = vmax.f32 %v1289_v32, 0.0  ;;  %v1307_v54 = vmax.f32 %v1291_v35, 0.0  ;;  %v1542_v60 = vadd.f32 %v4144_v33, %v1526_v46  ;;  %v2846_v32 = vld [vmem:[%s3753_s27 + $0xc1] sm:$0xff] }
  0x6a   : > { %3315 = vmatpush3.bf16.msra.mxu0 %v3564_v44  ;;  %v1556_v48 = vmax.f32 %v1540_v26, 0.0  ;;  %v1278_v4 = vmul.f32 %v4134_v39, %v3870_v31  ;;  %v1279_v6 = vmul.f32 %v4134_v39, %v3881_v37  ;;  %v1528_v9 = vmul.f32 %v4134_v39, %v4046_v61  ;;  %v3577_v61 = vld [vmem:[%s4651_s1 + $0x1f0] sm:$0xff]   ;;  %v2886_v46 = vld [vmem:[%s3753_s27 + $0xc2] sm:$0xff] }
  0x6b   : > { %3347 = vmatpush3.bf16.msra.mxu1 %v3565_v45  ;;  %3316 = vmatprep.subr.bf16.mxu0 %v3566_v58  ;;  %v4155_v44 = vpack.c.bf16 %v1067_v59, %v1066_v29  ;;  %v1539_v45 = vadd.f32 %v4144_v33, %v4001_v30  ;;  %v1277_v30 = vmul.f32 %v4134_v39, %v3861_v24 }
  0x6c   : > { %3348 = vmatprep.subr.bf16.mxu1 %v3567_v19  ;;  %v1527_v24 = vmul.f32 %v4134_v39, %v4030_v49  ;;  %v1557_v49 = vmax.f32 %v1541_v5, 0.0  ;;  %v1319_v8 = vpack.c.bf16 %v1305_v50, %v1304_v47  ;;  %v1320_v37 = vpack.c.bf16 %v1307_v54, %v1306_v51  ;;  %v2887_v47 = vld [vmem:[%s3753_s27 + $0xca] sm:$0xff]  ;;  %v3581_v50 = vld [vmem:[%s4651_s1 + $0x1e0] sm:$0xff]  }
  0x6d   : > { %3269 = vmatmul.mubr.bf16.gmra.mxu0 %v820_v20  ;;  %v1293_v56 = vadd.f32 %v4144_v33, %v1277_v30  ;;  %v1294_v17 = vadd.f32 %v4144_v33, %v1278_v4  ;;  %v1544_v22 = vadd.f32 %v4144_v33, %v1528_v9  ;;  %v1281_v29 = vmul.f32 %v4134_v39, %v3913_v63  ;;  %v2954_v4 = vld [vmem:[%s3753_s27 + $0x31] sm:$0xff] }
  0x6e   : > { %3301 = vmatmul.mubr.bf16.gmra.mxu1 %v3985_v16  ;;  %3317 = vmatpush3.bf16.msra.mxu0 %v3566_v58  ;;  %v3571_v16 = vld [vmem:[%s4651_s1 + $0x148] sm:$0xff]   ;;  %v3575_v58 = vld [vmem:[%s4651_s1 + $0x1f8] sm:$0xff]   ;;  %v1543_v31 = vadd.f32 %v4144_v33, %v1527_v24  ;;  %v1531_v40 = vmul.f32 %v4134_v39, %v4061_v11  ;;  %v1283_v41 = vmul.f32 %v4134_v39, %v3932_v15 }
  0x6f   : > { %3349 = vmatpush3.bf16.msra.mxu1 %v3567_v19  ;;  %3318 = vmatprep.subr.bf16.mxu0 %v3568_v13  ;;  %v1310_v42 = vmax.f32 %v1294_v17, 0.0  ;;  %v1532_v11 = vmul.f32 %v4134_v39, %v4077_v27  ;;  %v1297_v15 = vadd.f32 %v4144_v33, %v1281_v29  ;;  %v1285_v5 = vmul.f32 %v4134_v39, %v2847_v43  ;;  %v2917_v29 = vld [vmem:[%s3753_s27 + $0x50] sm:$0xff] }
  0x70   : > { %3350 = vmatprep.subr.bf16.mxu1 %v3569_v28  ;;  %3272 = vmatprep.mubr.bf16.mxu0 %v821_v21  ;;  %v1295_v21 = vadd.f32 %v4144_v33, %v1279_v6  ;;  %v1559_v59 = vmax.f32 %v1543_v31, 0.0  ;;  %v1547_v27 = vadd.f32 %v4144_v33, %v1531_v40  ;;  %v1299_v30 = vadd.f32 %v4144_v33, %v1283_v41  ;;  %v2955_v6 = vld [vmem:[%s3753_s27 + $0x39] sm:$0xff]  ;;  %v2956_v40 = vld [vmem:[%s3753_s27 + $0x49] sm:$0xff] }
  0x71   : > { %3304 = vmatprep.mubr.bf16.mxu1 %v4010_v38  ;;  %v1276_v38 = vmul.f32 %v4134_v39, %v3858_v23  ;;  %v1555_v23 = vmax.f32 %v1539_v45, 0.0  ;;  %v1560_v45 = vmax.f32 %v1544_v22, 0.0  ;;  %v1313_v54 = vmax.f32 %v1297_v15, 0.0  ;;  %v3583_v31 = vld [vmem:[%s4651_s1 + $0x1d8] sm:$0xff]   ;;  %v2959_v15 = vld [vmem:[%s3753_s27 + $0x69] sm:$0xff] }
  0x72   : > { %3319 = vmatpush3.bf16.msra.mxu0 %v3568_v13  ;;  %v1570_v13 = vpack.c.bf16 %v1557_v49, %v1556_v48  ;;  %v2914_v48 = vld [vmem:[%s3753_s27 + $0x30] sm:$0xff]  ;;  %v1534_v49 = vmul.f32 %v4134_v39, %v2886_v46  ;;  %v2024_v17 = vmul.f32 %v4134_v39, %v2955_v6  ;;  %v3587_v46 = vld [vmem:[%s4651_s1 + $0x1c8] sm:$0xff]  }
  0x73   : > { %3351 = vmatpush3.bf16.msra.mxu1 %v3569_v28  ;;  %3320 = vmatprep.subr.bf16.mxu0 %v3570_v14  ;;  %v1292_v55 = vadd.f32 %v4144_v33, %v1276_v38  ;;  %v1569_v19 = vpack.c.bf16 %v1555_v23, %v1554_v2  ;;  %v1280_v28 = vmul.f32 %v4134_v39, %v3910_v62 }
  0x74   : > { %3352 = vmatprep.subr.bf16.mxu1 %v3571_v16  ;;  %v1282_v62 = vmul.f32 %v4134_v39, %v3923_v7  ;;  %v1533_v7 = vmul.f32 %v4134_v39, %v4088_v36  ;;  %v3580_v36 = vld [vmem:[%s4651_s1 + $0x1a0] sm:$0xff]   ;;  %v1548_v23 = vadd.f32 %v4144_v33, %v1532_v11  ;;  %v1550_v22 = vadd.f32 %v4144_v33, %v1534_v49 }
  0x75   : > { %3273 = vmatmul.mubr.bf16.gmra.mxu0 %v822_v34  ;;  %v1308_v20 = vmax.f32 %v1292_v55, 0.0  ;;  %v3578_v34 = vld [vmem:[%s4651_s1 + $0x1a8] sm:$0xff]   ;;  %v1296_v35 = vadd.f32 %v4144_v33, %v1280_v28  ;;  %v2915_v55 = vld [vmem:[%s3753_s27 + $0x38] sm:$0xff]  ;;  %v2918_v11 = vld [vmem:[%s3753_s27 + $0x60] sm:$0xff]  ;;  %v2040_v43 = vadd.f32 %v4144_v33, %v2024_v17 }
  0x76   : > { %3305 = vmatmul.mubr.bf16.gmra.mxu1 %v4155_v44  ;;  %3321 = vmatpush3.bf16.msra.mxu0 %v3570_v14  ;;  %v1530_v14 = vmul.f32 %v4134_v39, %v4058_v10  ;;  %v1311_v10 = vmax.f32 %v1295_v21, 0.0  ;;  %v1298_v38 = vadd.f32 %v4144_v33, %v1282_v62  ;;  %v1549_v51 = vadd.f32 %v4144_v33, %v1533_v7  ;;  %v2916_v28 = vld [vmem:[%s3753_s27 + $0x48] sm:$0xff]  ;;  %v2957_v62 = vld [vmem:[%s3753_s27 + $0x51] sm:$0xff]  ;;  %v2921_v49 = vld [vmem:[%s3753_s27 + $0x80] sm:$0xff] }
  0x77   : > { %3353 = vmatpush3.bf16.msra.mxu1 %v3571_v16  ;;  %3322 = vmatprep.subr.bf16.mxu0 %v3572_v57  ;;  %v3579_v16 = vld [vmem:[%s4651_s1 + $0x1e8] sm:$0xff]   ;;  %v2923_v17 = vld [vmem:[%s3753_s27 + $0x98] sm:$0xff] }
  0x78   : > { %3354 = vmatprep.subr.bf16.mxu1 %v3573_v1  ;;  %3324 = vmatprep.mubr.bf16.mxu0 %v3849_v18  ;;  %v1529_v18 = vmul.f32 %v4134_v39, %v4052_v3  ;;  %v1558_v3 = vmax.f32 %v1542_v60, 0.0  ;;  %v1546_v26 = vadd.f32 %v4144_v33, %v1530_v14  ;;  %v1322_v2 = vpack.c.bf16 %v1311_v10, %v1310_v42  ;;  %v2919_v7 = vld [vmem:[%s3753_s27 + $0x68] sm:$0xff] }
  0x79   : > { %3356 = vmatprep.mubr.bf16.mxu1 %v4049_v0  ;;  %v1309_v0 = vmax.f32 %v1293_v56, 0.0  ;;  %v1535_v60 = vmul.f32 %v4134_v39, %v2887_v47  ;;  %v1314_v9 = vmax.f32 %v1298_v38, 0.0  ;;  %v2026_v38 = vmul.f32 %v4134_v39, %v2957_v62 }
  0x7a   : > { %3323 = vmatpush3.bf16.msra.mxu0 %v3572_v57  ;;  %v1545_v25 = vadd.f32 %v4144_v33, %v1529_v18  ;;  %v1571_v57 = vpack.c.bf16 %v1559_v59, %v1558_v3  ;;  %v1562_v56 = vmax.f32 %v1546_v26, 0.0  ;;  %v1315_v18 = vmax.f32 %v1299_v30, 0.0  ;;  %v3584_v59 = vld [vmem:[%s4651_s1 + $0x190] sm:$0xff]   ;;  %v3586_v30 = vld [vmem:[%s4651_s1 + $0x188] sm:$0xff]  }
  0x7b   : > { %3355 = vmatpush3.bf16.msra.mxu1 %v3573_v1  ;;  %3372 = vmatprep.subr.bf16.mxu0 %v3574_v53  ;;  %v1321_v63 = vpack.c.bf16 %v1309_v0, %v1308_v20  ;;  %v1284_v1 = vmul.f32 %v4134_v39, %v2846_v32  ;;  %v1565_v20 = vmax.f32 %v1549_v51, 0.0  ;;  %v1773_v0 = vmul.f32 %v4134_v39, %v2914_v48  ;;  %v2920_v51 = vld [vmem:[%s3753_s27 + $0x78] sm:$0xff] }
  0x7c   : > { %3404 = vmatprep.subr.bf16.mxu1 %v3575_v58  ;;  %v1561_v52 = vmax.f32 %v1545_v25, 0.0  ;;  %v2023_v3 = vmul.f32 %v4134_v39, %v2954_v4  ;;  %v1551_v25 = vadd.f32 %v4144_v33, %v1535_v60  ;;  %v3588_v60 = vld [vmem:[%s4651_s1 + $0x180] sm:$0xff]  }
  0x7d   : > { %3325 = vmatmul.mubr.bf16.vlgmr.msra.gmra.mxu0 %v1319_v8  ;;  %v3582_v8 = vld [vmem:[%s4651_s1 + $0x198] sm:$0xff]   ;;  %v1789_v42 = vadd.f32 %v4144_v33, %v1773_v0 }
  0x7e   : > { %3357 = vmatmul.mubr.bf16.vlgmr.msra.gmra.mxu1 %v1569_v19  ;;  %3373 = vmatpush3.bf16.msra.mxu0 %v3574_v53  ;;  %v1572_v24 = vpack.c.bf16 %v1561_v52, %v1560_v45  ;;  %v1312_v53 = vmax.f32 %v1296_v35, 0.0  ;;  %v1300_v19 = vadd.f32 %v4144_v33, %v1284_v1  ;;  %v2039_v32 = vadd.f32 %v4144_v33, %v2023_v3  ;;  %v2958_v35 = vld [vmem:[%s3753_s27 + $0x61] sm:$0xff]  ;;  %v2922_v3 = vld [vmem:[%s3753_s27 + $0x90] sm:$0xff] }
  0x7f   : > { %3405 = vmatpush3.bf16.msra.mxu1 %v3575_v58  ;;  %3374 = vmatprep.subr.bf16.mxu0 %v3576_v12  ;;  %v1563_v58 = vmax.f32 %v1547_v27, 0.0  ;;  %v1775_v45 = vmul.f32 %v4134_v39, %v2916_v28  ;;  %v1776_v52 = vmul.f32 %v4134_v39, %v2917_v29  ;;  %v1567_v26 = vmax.f32 %v1551_v25, 0.0  ;;  %v2962_v29 = vld [vmem:[%s3753_s27 + $0x91] sm:$0xff] }
  0x80   : > { %3406 = vmatprep.subr.bf16.mxu1 %v3577_v61  ;;  %3328 = vmatprep.mubr.bf16.mxu0 %v1320_v37  ;;  %v1564_v37 = vmax.f32 %v1548_v23, 0.0  ;;  %v2025_v27 = vmul.f32 %v4134_v39, %v2956_v40  ;;  %v1777_v1 = vmul.f32 %v4134_v39, %v2918_v11  ;;  %v1805_v47 = vmax.f32 %v1789_v42, 0.0 }
  0x81   : > { %3360 = vmatprep.mubr.bf16.mxu1 %v1570_v13  ;;  %v1323_v13 = vpack.c.bf16 %v1313_v54, %v1312_v53  ;;  %v1573_v21 = vpack.c.bf16 %v1563_v58, %v1562_v56  ;;  %v2028_v23 = vmul.f32 %v4134_v39, %v2959_v15  ;;  %v2056_v53 = vmax.f32 %v2040_v43, 0.0  ;;  %v2924_v43 = vld [vmem:[%s3753_s27 + $0xa8] sm:$0xff]  ;;  %v2925_v15 = vld [vmem:[%s3753_s27 + $0xb0] sm:$0xff] }
  0x82   : > { %3375 = vmatpush3.bf16.msra.mxu0 %v3576_v12  ;;  %v1301_v12 = vadd.f32 %v4144_v33, %v1285_v5  ;;  %v1574_v41 = vpack.c.bf16 %v1565_v20, %v1564_v37  ;;  %v1778_v5 = vmul.f32 %v4134_v39, %v2919_v7  ;;  %v1791_v54 = vadd.f32 %v4144_v33, %v1775_v45 }
  0x83   : > { %3407 = vmatpush3.bf16.msra.mxu1 %v3577_v61  ;;  %3376 = vmatprep.subr.bf16.mxu0 %v3578_v34  ;;  %v1774_v61 = vmul.f32 %v4134_v39, %v2915_v55  ;;  %v1792_v48 = vadd.f32 %v4144_v33, %v1776_v52  ;;  %v2041_v56 = vadd.f32 %v4144_v33, %v2025_v27 }
  0x84   : > { %3408 = vmatprep.subr.bf16.mxu1 %v3579_v16  ;;  %v1317_v14 = vmax.f32 %v1301_v12, 0.0  ;;  %v2042_v58 = vadd.f32 %v4144_v33, %v2026_v38  ;;  %v1793_v4 = vadd.f32 %v4144_v33, %v1777_v1  ;;  %v1794_v6 = vadd.f32 %v4144_v33, %v1778_v5  ;;  %v2964_v38 = vld [vmem:[%s3753_s27 + $0xa9] sm:$0xff] }
  0x85   : > { %3329 = vmatmul.mubr.bf16.gmra.mxu0 %v1321_v63  ;;  %v3585_v63 = vld [vmem:[%s4651_s1 + $0x1d0] sm:$0xff]   ;;  %v1790_v10 = vadd.f32 %v4144_v33, %v1774_v61  ;;  %v2044_v37 = vadd.f32 %v4144_v33, %v2028_v23  ;;  %v1807_v0 = vmax.f32 %v1791_v54, 0.0  ;;  %v1808_v61 = vmax.f32 %v1792_v48, 0.0 }
  0x86   : > { %3361 = vmatmul.mubr.bf16.gmra.mxu1 %v1571_v57  ;;  %3377 = vmatpush3.bf16.msra.mxu0 %v3578_v34  ;;  %v1316_v34 = vmax.f32 %v1300_v19, 0.0  ;;  %v1566_v57 = vmax.f32 %v1550_v22, 0.0  ;;  %v3589_v19 = vld [vmem:[%s4651_s1 + $0x1c0] sm:$0xff]   ;;  %v2058_v22 = vmax.f32 %v2042_v58, 0.0  ;;  %v1810_v40 = vmax.f32 %v1794_v6, 0.0 }
  0x87   : > { %3409 = vmatpush3.bf16.msra.mxu1 %v3579_v16  ;;  %3378 = vmatprep.subr.bf16.mxu0 %v3580_v36  ;;  %v1324_v16 = vpack.c.bf16 %v1315_v18, %v1314_v9  ;;  %v2960_v9 = vld [vmem:[%s3753_s27 + $0x79] sm:$0xff]  ;;  %v2961_v18 = vld [vmem:[%s3753_s27 + $0x81] sm:$0xff]  ;;  %v1782_v42 = vmul.f32 %v4134_v39, %v2923_v17  ;;  %v2031_v7 = vmul.f32 %v4134_v39, %v2962_v29 }
  0x88   : > { %3410 = vmatprep.subr.bf16.mxu1 %v3581_v50  ;;  %3332 = vmatprep.mubr.bf16.mxu0 %v1322_v2  ;;  %v2027_v2 = vmul.f32 %v4134_v39, %v2958_v35  ;;  %v4309_v55 = vpack.c.bf16 %v1567_v26, %v1566_v57  ;;  %v2029_v25 = vmul.f32 %v4134_v39, %v2960_v9  ;;  %v3591_v57 = vld [vmem:[%s4651_s1 + $0x230] sm:$0xff]  }
  0x89   : > { %3364 = vmatprep.mubr.bf16.mxu1 %v1572_v24  ;;  %v2055_v24 = vmax.f32 %v2039_v32, 0.0  ;;  %v2030_v28 = vmul.f32 %v4134_v39, %v2961_v18  ;;  %v2033_v54 = vmul.f32 %v4134_v39, %v2964_v38  ;;  %v2994_v17 = vld [vmem:[%s3753_s27 + $0x32] sm:$0xff] }
  0x8a   : > { %3379 = vmatpush3.bf16.msra.mxu0 %v3580_v36  ;;  %v4294_v36 = vpack.c.bf16 %v1317_v14, %v1316_v34  ;;  %v3590_v34 = vld [vmem:[%s4651_s1 + $0x238] sm:$0xff]   ;;  %v1809_v14 = vmax.f32 %v1793_v4, 0.0  ;;  %v2045_v52 = vadd.f32 %v4144_v33, %v2029_v25  ;;  %v3595_v38 = vld [vmem:[%s4651_s1 + $0x210] sm:$0xff]  }
  0x8b   : > { %3411 = vmatpush3.bf16.msra.mxu1 %v3581_v50  ;;  %3380 = vmatprep.subr.bf16.mxu0 %v3582_v8  ;;  %v1806_v50 = vmax.f32 %v1790_v10, 0.0  ;;  %v2071_v20 = vpack.c.bf16 %v2056_v53, %v2055_v24  ;;  %v1822_v10 = vpack.c.bf16 %v1808_v61, %v1807_v0  ;;  %v2046_v35 = vadd.f32 %v4144_v33, %v2030_v28  ;;  %v2968_v0 = vld [vmem:[%s3753_s27 + $0xd9] sm:$0xff]  ;;  %v2969_v61 = vld [vmem:[%s3753_s27 + $0xe1] sm:$0xff] }
  0x8c   : > { %3412 = vmatprep.subr.bf16.mxu1 %v3583_v31  ;;  %v1823_v26 = vpack.c.bf16 %v1810_v40, %v1809_v14  ;;  %v2061_v24 = vmax.f32 %v2045_v52, 0.0  ;;  %v2997_v52 = vld [vmem:[%s3753_s27 + $0x52] sm:$0xff] }
  0x8d   : > { %3333 = vmatmul.mubr.bf16.gmra.mxu0 %v1323_v13  ;;  %v1821_v12 = vpack.c.bf16 %v1806_v50, %v1805_v47  ;;  %v1780_v13 = vmul.f32 %v4134_v39, %v2921_v49  ;;  %v1783_v47 = vmul.f32 %v4134_v39, %v2924_v43  ;;  %v2062_v53 = vmax.f32 %v2046_v35, 0.0 }
  0x8e   : > { %3365 = vmatmul.mubr.bf16.gmra.mxu1 %v1573_v21  ;;  %3381 = vmatpush3.bf16.msra.mxu0 %v3582_v8  ;;  %v1779_v8 = vmul.f32 %v4134_v39, %v2920_v51  ;;  %v2057_v21 = vmax.f32 %v2041_v56, 0.0  ;;  %v1784_v51 = vmul.f32 %v4134_v39, %v2925_v15  ;;  %v3592_v56 = vld [vmem:[%s4651_s1 + $0x228] sm:$0xff]  }
  0x8f   : > { %3413 = vmatpush3.bf16.msra.mxu1 %v3583_v31  ;;  %3382 = vmatprep.subr.bf16.mxu0 %v3584_v59  ;;  %v2043_v31 = vadd.f32 %v4144_v33, %v2027_v2  ;;  %v1796_v11 = vadd.f32 %v4144_v33, %v1780_v13  ;;  %v2047_v2 = vadd.f32 %v4144_v33, %v2031_v7 }
  0x90   : > { %3414 = vmatprep.subr.bf16.mxu1 %v3585_v63  ;;  %3336 = vmatprep.mubr.bf16.mxu0 %v1324_v16  ;;  %v1795_v62 = vadd.f32 %v4144_v33, %v1779_v8  ;;  %v2060_v16 = vmax.f32 %v2044_v37, 0.0  ;;  %v2072_v45 = vpack.c.bf16 %v2058_v22, %v2057_v21  ;;  %v1800_v9 = vadd.f32 %v4144_v33, %v1784_v51  ;;  %v2929_v37 = vld [vmem:[%s3753_s27 + $0xe0] sm:$0xff] }
  0x91   : > { %3368 = vmatprep.mubr.bf16.mxu1 %v1574_v41  ;;  %v1781_v41 = vmul.f32 %v4134_v39, %v2922_v3  ;;  %v1812_v50 = vmax.f32 %v1796_v11, 0.0  ;;  %v2063_v6 = vmax.f32 %v2047_v2, 0.0  ;;  %v2074_v18 = vpack.c.bf16 %v2062_v53, %v2061_v24  ;;  %v2995_v21 = vld [vmem:[%s3753_s27 + $0x3a] sm:$0xff] }
  0x92   : > { %3383 = vmatpush3.bf16.msra.mxu0 %v3584_v59  ;;  %v2963_v59 = vld [vmem:[%s3753_s27 + $0x99] sm:$0xff]  ;;  %v1811_v27 = vmax.f32 %v1795_v62, 0.0  ;;  %v1816_v25 = vmax.f32 %v1800_v9, 0.0  ;;  %v1788_v29 = vmul.f32 %v4134_v39, %v2929_v37  ;;  %v2037_v62 = vmul.f32 %v4134_v39, %v2968_v0 }
  0x93   : > { %3415 = vmatpush3.bf16.msra.mxu1 %v3585_v63  ;;  %3384 = vmatprep.subr.bf16.mxu0 %v3586_v30  ;;  %v2059_v63 = vmax.f32 %v2043_v31, 0.0  ;;  %v2032_v32 = vmul.f32 %v4134_v39, %v2963_v59  ;;  %v1797_v5 = vadd.f32 %v4144_v33, %v1781_v41  ;;  %v2928_v31 = vld [vmem:[%s3753_s27 + $0xd8] sm:$0xff]  ;;  %v2273_v41 = vmul.f32 %v4134_v39, %v2994_v17  ;;  %v3009_v17 = vld [vmem:[%s3753_s27 + $0xe2] sm:$0xff] }
  0x94   : > { %3416 = vmatprep.subr.bf16.mxu1 %v3587_v46  ;;  %v1824_v4 = vpack.c.bf16 %v1812_v50, %v1811_v27  ;;  %v1787_v28 = vmul.f32 %v4134_v39, %v2928_v31  ;;  %v3002_v59 = vld [vmem:[%s3753_s27 + $0x92] sm:$0xff]  ;;  %v1804_v43 = vadd.f32 %v4144_v33, %v1788_v29  ;;  %v2053_v15 = vadd.f32 %v4144_v33, %v2037_v62 }
  0x95   : > { %3337 = vmatmul.mubr.bf16.gmra.mxu0 %v4294_v36  ;;  %v2073_v1 = vpack.c.bf16 %v2060_v16, %v2059_v63  ;;  %v2048_v23 = vadd.f32 %v4144_v33, %v2032_v32  ;;  %v1813_v58 = vmax.f32 %v1797_v5, 0.0  ;;  %v2038_v63 = vmul.f32 %v4134_v39, %v2969_v61  ;;  %v3594_v16 = vld [vmem:[%s4651_s1 + $0x218] sm:$0xff]   ;;  %v2998_v5 = vld [vmem:[%s3753_s27 + $0x62] sm:$0xff] }
  0x96   : > { %3369 = vmatmul.mubr.bf16.gmra.mxu1 %v4309_v55  ;;  %3385 = vmatpush3.bf16.msra.mxu0 %v3586_v30  ;;  %v2965_v30 = vld [vmem:[%s3753_s27 + $0xb1] sm:$0xff]  ;;  %v1803_v32 = vadd.f32 %v4144_v33, %v1787_v28  ;;  %v1820_v24 = vmax.f32 %v1804_v43, 0.0  ;;  %v3000_v61 = vld [vmem:[%s3753_s27 + $0x7a] sm:$0xff] }
  0x97   : > { %3417 = vmatpush3.bf16.msra.mxu1 %v3587_v46  ;;  %3386 = vmatprep.subr.bf16.mxu0 %v3588_v60  ;;  %v1798_v46 = vadd.f32 %v4144_v33, %v1782_v42  ;;  %v2034_v48 = vmul.f32 %v4134_v39, %v2965_v30  ;;  %v2064_v8 = vmax.f32 %v2048_v23, 0.0  ;;  %v2274_v42 = vmul.f32 %v4134_v39, %v2995_v21  ;;  %v3005_v27 = vld [vmem:[%s3753_s27 + $0xb2] sm:$0xff] }
  0x98   : > { %3418 = vmatprep.subr.bf16.mxu1 %v3589_v19  ;;  %3388 = vmatprep.mubr.bf16.mxu0 %v1821_v12  ;;  %v2289_v30 = vadd.f32 %v4144_v33, %v2273_v41  ;;  %v2276_v23 = vmul.f32 %v4134_v39, %v2997_v52  ;;  %v1819_v51 = vmax.f32 %v1803_v32, 0.0 }
  0x99   : > { %3420 = vmatprep.mubr.bf16.mxu1 %v2071_v20  ;;  %v1814_v49 = vmax.f32 %v1798_v46, 0.0  ;;  %v2050_v12 = vadd.f32 %v4144_v33, %v2034_v48  ;;  %v3593_v20 = vld [vmem:[%s4651_s1 + $0x220] sm:$0xff]   ;;  %v2075_v22 = vpack.c.bf16 %v2064_v8, %v2063_v6  ;;  %v2999_v46 = vld [vmem:[%s3753_s27 + $0x6a] sm:$0xff]  ;;  %v2069_v48 = vmax.f32 %v2053_v15, 0.0 }
  0x9a   : > { %3387 = vmatpush3.bf16.msra.mxu0 %v3588_v60  ;;  %v1799_v60 = vadd.f32 %v4144_v33, %v1783_v47 }
  0x9b   : > { %3419 = vmatpush3.bf16.msra.mxu1 %v3589_v19  ;;  %3436 = vmatprep.subr.bf16.mxu0 %v3590_v34  ;;  %v2049_v19 = vadd.f32 %v4144_v33, %v2033_v54  ;;  %v1825_v13 = vpack.c.bf16 %v1814_v49, %v1813_v58  ;;  %v2066_v40 = vmax.f32 %v2050_v12, 0.0  ;;  %v2284_v54 = vmul.f32 %v4134_v39, %v3005_v27 }
  0x9c   : > { %3468 = vmatprep.subr.bf16.mxu1 %v3590_v34  ;;  %v1815_v3 = vmax.f32 %v1799_v60, 0.0  ;;  %v2277_v58 = vmul.f32 %v4134_v39, %v2998_v5  ;;  %v2278_v49 = vmul.f32 %v4134_v39, %v2999_v46  ;;  %v3596_v60 = vld [vmem:[%s4651_s1 + $0x208] sm:$0xff]   ;;  %v1828_v12 = vpack.c.bf16 %v1820_v24, %v1819_v51 }
  0x9d   : > { %3389 = vmatmul.mubr.bf16.vlgmr.msra.gmra.mxu0 %v1822_v10  ;;  %v2065_v14 = vmax.f32 %v2049_v19, 0.0  ;;  %v2281_v10 = vmul.f32 %v4134_v39, %v3002_v59  ;;  %v2292_v19 = vadd.f32 %v4144_v33, %v2276_v23  ;;  %v2300_v37 = vadd.f32 %v4144_v33, %v2284_v54 }
  0x9e   : > { %3421 = vmatmul.mubr.bf16.vlgmr.msra.gmra.mxu1 %v2072_v45  ;;  %3437 = vmatpush3.bf16.msra.mxu0 %v3590_v34  ;;  %v1826_v7 = vpack.c.bf16 %v1816_v25, %v1815_v3  ;;  %v2996_v45 = vld [vmem:[%s3753_s27 + $0x4a] sm:$0xff]  ;;  %v2293_v0 = vadd.f32 %v4144_v33, %v2277_v58  ;;  %v3597_v3 = vld [vmem:[%s4651_s1 + $0x200] sm:$0xff]  }
  0x9f   : > { %3476 = vmatpush3.bf16.msra.mxu1 %v3590_v34  ;;  %3438 = vmatprep.subr.bf16.mxu0 %v3591_v57  ;;  %v3003_v34 = vld [vmem:[%s3753_s27 + $0x9a] sm:$0xff]  ;;  %v2076_v35 = vpack.c.bf16 %v2066_v40, %v2065_v14  ;;  %v2297_v47 = vadd.f32 %v4144_v33, %v2281_v10  ;;  %v2275_v2 = vmul.f32 %v4134_v39, %v2996_v45  ;;  %v2308_v28 = vmax.f32 %v2292_v19, 0.0 }
  0xa0   : > { %3469 = vmatprep.subr.bf16.mxu1 %v3591_v57  ;;  %3392 = vmatprep.mubr.bf16.mxu0 %v1823_v26  ;;  %v2282_v11 = vmul.f32 %v4134_v39, %v3003_v34  ;;  %v3004_v26 = vld [vmem:[%s3753_s27 + $0xaa] sm:$0xff]  ;;  %v2316_v59 = vmax.f32 %v2300_v37, 0.0  ;;  %v2279_v34 = vmul.f32 %v4134_v39, %v3000_v61  ;;  %v2309_v40 = vmax.f32 %v2293_v0, 0.0 }
  0xa1   : > { %3424 = vmatprep.mubr.bf16.mxu1 %v2073_v1  ;;  %v2290_v1 = vadd.f32 %v4144_v33, %v2274_v42  ;;  %v2283_v53 = vmul.f32 %v4134_v39, %v3004_v26  ;;  %v2313_v8 = vmax.f32 %v2297_v47, 0.0 }
  0xa2   : > { %3439 = vmatpush3.bf16.msra.mxu0 %v3591_v57  ;;  %v2298_v50 = vadd.f32 %v4144_v33, %v2282_v11  ;;  %v2295_v42 = vadd.f32 %v4144_v33, %v2279_v34 }
  0xa3   : > { %3477 = vmatpush3.bf16.msra.mxu1 %v3591_v57  ;;  %3440 = vmatprep.subr.bf16.mxu0 %v3592_v56  ;;  %v2054_v57 = vadd.f32 %v4144_v33, %v2038_v63  ;;  %v2306_v6 = vmax.f32 %v2290_v1, 0.0  ;;  %v2299_v31 = vadd.f32 %v4144_v33, %v2283_v53 }
  0xa4   : > { %3470 = vmatprep.subr.bf16.mxu1 %v3592_v56  ;;  %v2314_v9 = vmax.f32 %v2298_v50, 0.0 }
  0xa5   : > { %3393 = vmatmul.mubr.bf16.gmra.mxu0 %v1824_v4  ;;  %v2305_v4 = vmax.f32 %v2289_v30, 0.0  ;;  %v2315_v29 = vmax.f32 %v2299_v31, 0.0 }
  0xa6   : > { %3425 = vmatmul.mubr.bf16.gmra.mxu1 %v2074_v18  ;;  %3441 = vmatpush3.bf16.msra.mxu0 %v3592_v56  ;;  %v2291_v18 = vadd.f32 %v4144_v33, %v2275_v2 }
  0xa7   : > { %3478 = vmatpush3.bf16.msra.mxu1 %v3592_v56  ;;  %3442 = vmatprep.subr.bf16.mxu0 %v3593_v20  ;;  %v2070_v56 = vmax.f32 %v2054_v57, 0.0  ;;  %v2321_v21 = vpack.c.bf16 %v2306_v6, %v2305_v4  ;;  %v2326_v11 = vpack.c.bf16 %v2316_v59, %v2315_v29 }
  0xa8   : > { %3471 = vmatprep.subr.bf16.mxu1 %v3593_v20  ;;  %3396 = vmatprep.mubr.bf16.mxu0 %v1825_v13  ;;  %v3001_v13 = vld [vmem:[%s3753_s27 + $0x82] sm:$0xff]  ;;  %v2307_v25 = vmax.f32 %v2291_v18, 0.0 }
  0xa9   : > { %3428 = vmatprep.mubr.bf16.mxu1 %v2075_v22  ;;  %v2325_v22 = vpack.c.bf16 %v2314_v9, %v2313_v8  ;;  %v2280_v14 = vmul.f32 %v4134_v39, %v3001_v13 }
  0xaa   : > { %3443 = vmatpush3.bf16.msra.mxu0 %v3593_v20  ;;  %v2322_v41 = vpack.c.bf16 %v2308_v28, %v2307_v25 }
  0xab   : > { %3479 = vmatpush3.bf16.msra.mxu1 %v3593_v20  ;;  %3444 = vmatprep.subr.bf16.mxu0 %v3594_v16  ;;  %v2078_v20 = vpack.c.bf16 %v2070_v56, %v2069_v48  ;;  %v2296_v10 = vadd.f32 %v4144_v33, %v2280_v14 }
  0xac   : > { %3472 = vmatprep.subr.bf16.mxu1 %v3594_v16 }
  0xad   : > { %3397 = vmatmul.mubr.bf16.gmra.mxu0 %v1826_v7  ;;  %v2312_v45 = vmax.f32 %v2296_v10, 0.0 }
  0xae   : > { %3429 = vmatmul.mubr.bf16.gmra.mxu1 %v2076_v35  ;;  %3445 = vmatpush3.bf16.msra.mxu0 %v3594_v16 }
  0xaf   : > { %3480 = vmatpush3.bf16.msra.mxu1 %v3594_v16  ;;  %3446 = vmatprep.subr.bf16.mxu0 %v3595_v38  ;;  %v2288_v16 = vmul.f32 %v4134_v39, %v3009_v17 }
  0xb0   : > { %3473 = vmatprep.subr.bf16.mxu1 %v3595_v38  ;;  %3400 = vmatprep.mubr.bf16.mxu0 %v4155_v44  ;;  %v2294_v44 = vadd.f32 %v4144_v33, %v2278_v49 }
  0xb1   : > { %3432 = vmatprep.mubr.bf16.mxu1 %v4294_v36  ;;  %v3008_v36 = vld [vmem:[%s3753_s27 + $0xda] sm:$0xff]  ;;  %v2304_v43 = vadd.f32 %v4144_v33, %v2288_v16 }
  0xb2   : > { %3447 = vmatpush3.bf16.msra.mxu0 %v3595_v38  ;;  %v2310_v62 = vmax.f32 %v2294_v44, 0.0  ;;  %v2287_v63 = vmul.f32 %v4134_v39, %v3008_v36  ;;  %v2311_v39 = vmax.f32 %v2295_v42, 0.0 }
  0xb3   : > { %3481 = vmatpush3.bf16.msra.mxu1 %v3595_v38  ;;  %3448 = vmatprep.subr.bf16.mxu0 %v3596_v60  ;;  %v2320_v35 = vmax.f32 %v2304_v43, 0.0 }
  0xb4   : > { %3474 = vmatprep.subr.bf16.mxu1 %v3596_v60  ;;  %v2323_v7 = vpack.c.bf16 %v2310_v62, %v2309_v40  ;;  %v2303_v32 = vadd.f32 %v4144_v33, %v2287_v63  ;;  %v2324_v15 = vpack.c.bf16 %v2312_v45, %v2311_v39 }
  0xb5   : > { %3401 = vmatmul.mubr.bf16.gmra.mxu0 %v1828_v12 }
  0xb6   : > { %3433 = vmatmul.mubr.bf16.gmra.mxu1 %v2078_v20  ;;  %3449 = vmatpush3.bf16.msra.mxu0 %v3596_v60  ;;  %v2319_v52 = vmax.f32 %v2303_v32, 0.0 }
  0xb7   : > { %3482 = vmatpush3.bf16.msra.mxu1 %v3596_v60  ;;  %3450 = vmatprep.subr.bf16.mxu0 %v3597_v3 }
  0xb8   : > { %3475 = vmatprep.subr.bf16.mxu1 %v3597_v3  ;;  %3452 = vmatprep.mubr.bf16.mxu0 %v2321_v21  ;;  %v2328_v57 = vpack.c.bf16 %v2320_v35, %v2319_v52 }
  0xb9   : > { %3460 = vmatprep.mubr.bf16.mxu1 %v2325_v22 }
  0xba   : > { %3451 = vmatpush3.bf16.msra.mxu0 %v3597_v3 }
  0xbb   : > { %3483 = vmatpush3.bf16.msra.mxu1 %v3597_v3 }
  0xbd   : > { %3453 = vmatmul.mubr.bf16.vlgmr.msra.gmra.mxu0 %v2322_v41 }
  0xbe   : > { %3461 = vmatmul.mubr.bf16.vlgmr.msra.gmra.mxu1 %v2326_v11  ;;  %3456 = vmatprep.mubr.bf16.mxu0 %v2323_v7 }
  0xbf   : > { %3464 = vmatprep.mubr.bf16.mxu1 %v4309_v55 }
  0xc5   : > { %3457 = vmatmul.mubr.bf16.gmra.mxu0 %v2324_v15 }
  0xc6   : > { %3465 = vmatmul.mubr.bf16.gmra.mxu1 %v2328_v57 }
  0xfd   : > { %v3198_v26 = vpop.f32.mrf.mxu0 }
  0xfe   : > { %v3230_v27 = vpop.f32.mrf.mxu1 }
  0xff   : > { %v697_v38 = vadd.f32 %v3230_v27, %v3198_v26  ;;  %v543_v30 = vpop.f32.mrf.mxu0 }
 0x100   : > { %v688_v1 = vpop.f32.mrf.mxu1 }
 0x101   : > { %v689_v33 = vadd.f32 %v688_v1, %v543_v30  ;;  %v3199_v5 = vpop.f32.mrf.mxu0 }
 0x102   : > { %v3231_v46 = vpop.f32.mrf.mxu1 }
 0x103   : > { %v700_v47 = vadd.f32 %v3231_v46, %v3199_v5  ;;  %v546_v50 = vpop.f32.mrf.mxu0 }
 0x104   : > { %v691_v2 = vpop.f32.mrf.mxu1 }
 0x105   : > { %v692_v23 = vadd.f32 %v691_v2, %v546_v50  ;;  %v3202_v51 = vpop.f32.mrf.mxu0 }
 0x106   : > { %v3234_v24 = vpop.f32.mrf.mxu1 }
 0x107   : > { %v713_v53 = vadd.f32 %v3234_v24, %v3202_v51  ;;  %v559_v55 = vpop.f32.mrf.mxu0 }
 0x108   : > { %v704_v54 = vpop.f32.mrf.mxu1 }
 0x109   : > { %v705_v48 = vadd.f32 %v704_v54, %v559_v55  ;;  %v3203_v56 = vpop.f32.mrf.mxu0 }
 0x10a   : > { %v3235_v58 = vpop.f32.mrf.mxu1 }
 0x10b   : > { %v716_v49 = vadd.f32 %v3235_v58, %v3203_v56  ;;  %v562_v60 = vpop.f32.mrf.mxu0 }
 0x10c   : > { %v707_v4 = vpop.f32.mrf.mxu1 }
 0x10d   : > { %v708_v6 = vadd.f32 %v707_v4, %v562_v60  ;;  %v3206_v8 = vpop.f32.mrf.mxu0 }
 0x10e   : > { %v3238_v9 = vpop.f32.mrf.mxu1 }
 0x10f   : > { %v729_v18 = vadd.f32 %v3238_v9, %v3206_v8  ;;  %v575_v19 = vpop.f32.mrf.mxu0 }
 0x110   : > { %v720_v12 = vpop.f32.mrf.mxu1 }
 0x111   : > { %v721_v31 = vadd.f32 %v720_v12, %v575_v19  ;;  %v3207_v37 = vpop.f32.mrf.mxu0 }
 0x112   : > { %v3239_v20 = vpop.f32.mrf.mxu1 }
 0x113   : > { %v732_v0 = vadd.f32 %v3239_v20, %v3207_v37  ;;  %v578_v44 = vpop.f32.mrf.mxu0 }
 0x114   : > { %v723_v61 = vpop.f32.mrf.mxu1 }
 0x115   : > { %v724_v13 = vadd.f32 %v723_v61, %v578_v44  ;;  %v3210_v3 = vpop.f32.mrf.mxu0 }
 0x116   : > { %v3242_v36 = vpop.f32.mrf.mxu1 }
 0x117   : > { %v745_v17 = vadd.f32 %v3242_v36, %v3210_v3  ;;  %v591_v21 = vpop.f32.mrf.mxu0 }
 0x118   : > { %v736_v22 = vpop.f32.mrf.mxu1 }
 0x119   : > { %v737_v25 = vadd.f32 %v736_v22, %v591_v21  ;;  %v3211_v28 = vpop.f32.mrf.mxu0 }
 0x11a   : > { %v3243_v29 = vpop.f32.mrf.mxu1 }
 0x11b   : > { %v748_v59 = vadd.f32 %v3243_v29, %v3211_v28  ;;  %v594_v34 = vpop.f32.mrf.mxu0 }
 0x11c   : > { %v739_v14 = vpop.f32.mrf.mxu1 }
 0x11d   : > { %v740_v40 = vadd.f32 %v739_v14, %v594_v34  ;;  %v3262_v62 = vpop.f32.mrf.mxu0 }
 0x11e   : > { %v987_v63 = vadd.f32 %v3262_v62, %v697_v38  ;;  %v3294_v16 = vpop.f32.mrf.mxu1 }
 0x11f   : > { %v922_v41 = vpop.f32.mrf.mxu0 }
 0x120   : > { %v4441_v42 = vadd.f32 %v3294_v16, %v987_v63  ;;  %v985_v10 = vadd.f32 %v922_v41, %v689_v33  ;;  %v1175_v11 = vpop.f32.mrf.mxu1 }
 0x121   : > { %v3263_v7 = vpop.f32.mrf.mxu0 }
 0x122   : > { %v4443_v32 = vadd.f32 %v1175_v11, %v985_v10  ;;  %v988_v43 = vadd.f32 %v3263_v7, %v700_v47  ;;  %v3295_v39 = vpop.f32.mrf.mxu1 }
 0x123   : > { %v925_v45 = vpop.f32.mrf.mxu0 }
 0x124   : > { %v4445_v52 = vadd.f32 %v3295_v39, %v988_v43  ;;  %v986_v35 = vadd.f32 %v925_v45, %v692_v23  ;;  %v1178_v15 = vpop.f32.mrf.mxu1 }
 0x125   : > { %v3266_v57 = vpop.f32.mrf.mxu0 }
 0x126   : > { %v4447_v26 = vadd.f32 %v1178_v15, %v986_v35  ;;  %v991_v27 = vadd.f32 %v3266_v57, %v713_v53  ;;  %v3298_v38 = vpop.f32.mrf.mxu1 }
 0x127   : > { %v938_v30 = vpop.f32.mrf.mxu0 }
 0x128   : > { %v4449_v1 = vadd.f32 %v3298_v38, %v991_v27  ;;  %v989_v33 = vadd.f32 %v938_v30, %v705_v48  ;;  %v1191_v5 = vpop.f32.mrf.mxu1 }
 0x129   : > { %v3267_v46 = vpop.f32.mrf.mxu0 }
 0x12a   : > { %v4451_v50 = vadd.f32 %v1191_v5, %v989_v33  ;;  %v992_v47 = vadd.f32 %v3267_v46, %v716_v49  ;;  %v3299_v2 = vpop.f32.mrf.mxu1 }
 0x12b   : > { %v941_v51 = vpop.f32.mrf.mxu0 }
 0x12c   : > { %v4453_v24 = vadd.f32 %v3299_v2, %v992_v47  ;;  %v990_v23 = vadd.f32 %v941_v51, %v708_v6  ;;  %v1194_v55 = vpop.f32.mrf.mxu1 }
 0x12d   : > { %v3270_v54 = vpop.f32.mrf.mxu0 }
 0x12e   : > { %v4455_v56 = vadd.f32 %v1194_v55, %v990_v23  ;;  %v995_v53 = vadd.f32 %v3270_v54, %v729_v18  ;;  %v3302_v58 = vpop.f32.mrf.mxu1 }
 0x12f   : > { %v954_v60 = vpop.f32.mrf.mxu0 }
 0x130   : > { %v4457_v4 = vadd.f32 %v3302_v58, %v995_v53  ;;  %v993_v48 = vadd.f32 %v954_v60, %v721_v31  ;;  %v1207_v8 = vpop.f32.mrf.mxu1 }
 0x131   : > { %v3271_v9 = vpop.f32.mrf.mxu0 }
 0x132   : > { %v4459_v19 = vadd.f32 %v1207_v8, %v993_v48  ;;  %v996_v49 = vadd.f32 %v3271_v9, %v732_v0  ;;  %v3303_v12 = vpop.f32.mrf.mxu1 }
 0x133   : > { %v957_v37 = vpop.f32.mrf.mxu0 }
 0x134   : > { %v4461_v20 = vadd.f32 %v3303_v12, %v996_v49  ;;  %v994_v6 = vadd.f32 %v957_v37, %v724_v13  ;;  %v1210_v44 = vpop.f32.mrf.mxu1 }
 0x135   : > { %v3274_v61 = vpop.f32.mrf.mxu0 }
 0x136   : > { %v4463_v3 = vadd.f32 %v1210_v44, %v994_v6  ;;  %v999_v18 = vadd.f32 %v3274_v61, %v745_v17  ;;  %v3306_v36 = vpop.f32.mrf.mxu1 }
 0x137   : > { %v970_v21 = vpop.f32.mrf.mxu0 }
 0x138   : > { %v4465_v22 = vadd.f32 %v3306_v36, %v999_v18  ;;  %v997_v31 = vadd.f32 %v970_v21, %v737_v25  ;;  %v1223_v28 = vpop.f32.mrf.mxu1 }
 0x139   : > { %v3275_v29 = vpop.f32.mrf.mxu0 }
 0x13a   : > { %v4467_v34 = vadd.f32 %v1223_v28, %v997_v31  ;;  %v1000_v0 = vadd.f32 %v3275_v29, %v748_v59  ;;  %v3307_v14 = vpop.f32.mrf.mxu1 }
 0x13b   : > { %v973_v62 = vpop.f32.mrf.mxu0 }
 0x13c   : > { %v4469_v63 = vadd.f32 %v3307_v14, %v1000_v0  ;;  %v998_v13 = vadd.f32 %v973_v62, %v740_v40  ;;  %v1226_v16 = vpop.f32.mrf.mxu1 }
 0x13d   : > { %v3326_v41 = vpop.f32.mrf.mxu0 }
 0x13e   : > { %v4471_v10 = vadd.f32 %v1226_v16, %v998_v13  ;;  %v3358_v17 = vpop.f32.mrf.mxu1 }
 0x13f   : > { %v1425_v11 = vpop.f32.mrf.mxu0 }
 0x140   : > { %4656 = vst [vmem:[#allocation2_spill] sm:$0xff] %v4471_v10  ;;  %v4473_v7 = vpop.f32.mrf.mxu1 }
 0x141   : > { %v3327_v43 = vpop.f32.mrf.mxu0 }
 0x142   : > { %v4475_v25 = vpop.f32.mrf.mxu1 }
 0x143   : > { %v1428_v39 = vpop.f32.mrf.mxu0 }
 0x144   : > { %v4477_v45 = vpop.f32.mrf.mxu1  ;;  %v1489_v10 = vadd.f32 %v1428_v39, %v4447_v26 }
 0x145   : > { %v3330_v59 = vpop.f32.mrf.mxu0 }
 0x146   : > { %v4479_v35 = vpop.f32.mrf.mxu1 }
 0x147   : > { %v1441_v15 = vpop.f32.mrf.mxu0 }
 0x148   : > { %v4481_v57 = vpop.f32.mrf.mxu1 }
 0x149   : > { %v3331_v40 = vpop.f32.mrf.mxu0 }
 0x14a   : > { %v4483_v27 = vpop.f32.mrf.mxu1 }
 0x14b   : > { %v4485_v38 = vpop.f32.mrf.mxu0 }
 0x14c   : > { %v4487_v30 = vpop.f32.mrf.mxu1 }
 0x14d   : > { %4657 = vst [vmem:[#allocation3_spill] sm:$0xff] %v4487_v30  ;;  %v3334_v33 = vpop.f32.mrf.mxu0 }
 0x14e   : > { %v3366_v5 = vpop.f32.mrf.mxu1 }
 0x14f   : > { %v1457_v46 = vpop.f32.mrf.mxu0 }
 0x150   : > { %v1707_v47 = vpop.f32.mrf.mxu1 }
 0x151   : > { %v3335_v2 = vpop.f32.mrf.mxu0 }
 0x152   : > { %v4489_v51 = vpop.f32.mrf.mxu1 }
 0x153   : > { %v1460_v23 = vpop.f32.mrf.mxu0 }
 0x154   : > { %v4491_v55 = vpop.f32.mrf.mxu1 }
 0x155   : > { %v3338_v54 = vpop.f32.mrf.mxu0 }
 0x156   : > { %v4493_v53 = vpop.f32.mrf.mxu1 }
 0x157   : > { %v4495_v58 = vpop.f32.mrf.mxu0 }
 0x158   : > { %v4497_v60 = vpop.f32.mrf.mxu1 }
 0x159   : > { %4658 = vst [vmem:[#allocation4_spill] sm:$0xff] %v4497_v60  ;;  %v4499_v48 = vpop.f32.mrf.mxu0 }
 0x15a   : > { %v4501_v8 = vpop.f32.mrf.mxu1 }
 0x15b   : > { %4659 = vst [vmem:[#allocation5_spill] sm:$0xff] %v4501_v8  ;;  %v4503_v9 = vpop.f32.mrf.mxu0 }
 0x15c   : > { %4660 = vst [vmem:[#allocation6_spill] sm:$0xff] %v4503_v9  ;;  %v4505_v49 = vpop.f32.mrf.mxu1 }
 0x15d   : > { %4661 = vst [vmem:[#allocation7_spill] sm:$0xff] %v4505_v49  ;;  %v3390_v12 = vpop.f32.mrf.mxu0 }
 0x15e   : > { %v3422_v37 = vpop.f32.mrf.mxu1 }
 0x15f   : > { %v1928_v6 = vpop.f32.mrf.mxu0 }
 0x160   : > { %v4507_v44 = vpop.f32.mrf.mxu1 }
 0x161   : > { %4662 = vst [vmem:[#allocation8_spill] sm:$0xff] %v4507_v44  ;;  %v3391_v61 = vpop.f32.mrf.mxu0 }
 0x162   : > { %v4509_v18 = vpop.f32.mrf.mxu1 }
 0x163   : > { %4663 = vst [vmem:[#allocation9_spill] sm:$0xff] %v4509_v18  ;;  %v4511_v36 = vpop.f32.mrf.mxu0 }
 0x164   : > { %4664 = vst [vmem:[#allocation10_spill] sm:$0xff] %v4511_v36  ;;  %v4513_v21 = vpop.f32.mrf.mxu1  ;;  %v1494_v36 = vadd.f32 %v3330_v59, %v4449_v1  ;;  %v1502_v1 = vadd.f32 %v3338_v54, %v4465_v22 }
 0x165   : > { %4665 = vst [vmem:[#allocation11_spill] sm:$0xff] %v4513_v21  ;;  %v4515_v31 = vpop.f32.mrf.mxu0 }
 0x166   : > { %4666 = vst [vmem:[#allocation12_spill] sm:$0xff] %v4515_v31  ;;  %v4517_v28 = vpop.f32.mrf.mxu1  ;;  %v1490_v31 = vadd.f32 %v3326_v41, %v4441_v42  ;;  %v1492_v42 = vadd.f32 %v1441_v15, %v4451_v50 }
 0x167   : > { %4667 = vst [vmem:[#allocation13_spill] sm:$0xff] %v4517_v28  ;;  %v4519_v29 = vpop.f32.mrf.mxu0 }
 0x168   : > { %4668 = vst [vmem:[#allocation14_spill] sm:$0xff] %v4519_v29  ;;  %v4521_v0 = vpop.f32.mrf.mxu1  ;;  %v1498_v29 = vadd.f32 %v3334_v33, %v4457_v4  ;;  %v1740_v9 = vadd.f32 %v3358_v17, %v1490_v31  ;;  %v1495_v4 = vadd.f32 %v3331_v40, %v4453_v24  ;;  %v1497_v17 = vadd.f32 %v1460_v23, %v4463_v3  ;;  %v4674_v23 = vld [vmem:[#allocation8_spill] sm:$0xff] }
 0x169   : > { %4669 = vst [vmem:[#allocation15_spill] sm:$0xff] %v4521_v0  ;;  %v4523_v14 = vpop.f32.mrf.mxu0  ;;  %v1488_v0 = vadd.f32 %v1425_v11, %v4443_v32  ;;  %v1499_v32 = vadd.f32 %v3335_v2, %v4461_v20  ;;  %v1739_v24 = vadd.f32 %v4477_v45, %v1489_v10  ;;  %v1744_v20 = vadd.f32 %v4479_v35, %v1494_v36 }
 0x16a   : > { %4670 = vst [vmem:[#allocation16_spill] sm:$0xff] %v4523_v14  ;;  %v4525_v62 = vpop.f32.mrf.mxu1  ;;  %v1748_v41 = vadd.f32 %v3366_v5, %v1498_v29  ;;  %v1993_v33 = vadd.f32 %v3390_v12, %v1740_v9  ;;  %v1742_v3 = vadd.f32 %v4481_v57, %v1492_v42  ;;  %v1500_v57 = vadd.f32 %v4495_v58, %v4467_v34  ;;  %v4677_v12 = vld [vmem:[#allocation6_spill] sm:$0xff] }
 0x16b   : > { %4671 = vst [vmem:[#allocation17_spill] sm:$0xff] %v4525_v62  ;;  %v4527_v13 = vpop.f32.mrf.mxu0  ;;  %v1496_v62 = vadd.f32 %v1457_v46, %v4459_v19  ;;  %v1738_v19 = vadd.f32 %v4473_v7, %v1488_v0  ;;  %v1745_v7 = vadd.f32 %v4483_v27, %v1495_v4  ;;  %v1749_v40 = vadd.f32 %v4489_v51, %v1499_v32  ;;  %v4681_v0 = vld [vmem:[#allocation4_spill] sm:$0xff]  ;;  %v4682_v4 = vld [vmem:[#allocation3_spill] sm:$0xff]  ;;  %v4683_v32 = vld [vmem:[#allocation5_spill] sm:$0xff] }
 0x16c   : > { %4672 = vst [vmem:[#allocation18_spill] sm:$0xff] %v4527_v13  ;;  %v4529_v16 = vpop.f32.mrf.mxu1  ;;  %v1493_v46 = vadd.f32 %v4485_v38, %v4455_v56  ;;  %v2243_v10 = vadd.f32 %v3422_v37, %v1993_v33  ;;  %v1503_v51 = vadd.f32 %v4499_v48, %v4469_v63  ;;  %v4675_v38 = vld [vmem:[#allocation10_spill] sm:$0xff] }
 0x16d   : > { %4673 = vst [vmem:[#allocation19_spill] sm:$0xff] %v4529_v16  ;;  %v3398_v49 = vpop.f32.mrf.mxu0  ;;  %v1491_v16 = vadd.f32 %v3327_v43, %v4445_v52  ;;  %v1746_v26 = vadd.f32 %v1707_v47, %v1496_v62  ;;  %v1991_v59 = vadd.f32 %v1928_v6, %v1738_v19  ;;  %v1752_v47 = vadd.f32 %v4493_v53, %v1502_v1 }
 0x16e   : > { %v3430_v8 = vpop.f32.mrf.mxu1  ;;  %v2001_v43 = vadd.f32 %v3398_v49, %v1748_v41  ;;  %v4676_v49 = vld [vmem:[#allocation2_spill] sm:$0xff]  ;;  %v1750_v62 = vadd.f32 %v4681_v0, %v1500_v57  ;;  %v1743_v41 = vadd.f32 %v4682_v4, %v1493_v46  ;;  %v1753_v19 = vadd.f32 %v4683_v32, %v1503_v51 }
 0x16f   : > { %v1960_v30 = vpop.f32.mrf.mxu0  ;;  %v1741_v50 = vadd.f32 %v4475_v25, %v1491_v16  ;;  %v1747_v25 = vadd.f32 %v4491_v55, %v1497_v17  ;;  %v2241_v56 = vadd.f32 %v4674_v23, %v1991_v59  ;;  %v1992_v55 = vadd.f32 %v4675_v38, %v1739_v24  ;;  %v4680_v48 = vld [vmem:[#allocation14_spill] sm:$0xff]  ;;  %v4684_v17 = vld [vmem:[#allocation11_spill] sm:$0xff] }
 0x170   : > { %v2210_v21 = vpop.f32.mrf.mxu1  ;;  %v1999_v5 = vadd.f32 %v1960_v30, %v1746_v26  ;;  %v2251_v27 = vadd.f32 %v3430_v8, %v2001_v43  ;;  %v1501_v53 = vadd.f32 %v4677_v12, %v4676_v49  ;;  %v1995_v36 = vadd.f32 %v4680_v48, %v1742_v3  ;;  %v4686_v59 = vld [vmem:[#allocation7_spill] sm:$0xff] }
 0x171   : > { %v3399_v60 = vpop.f32.mrf.mxu0  ;;  %v1994_v45 = vadd.f32 %v3391_v61, %v1741_v50  ;;  %v4679_v61 = vld [vmem:[#allocation12_spill] sm:$0xff]  ;;  %v2242_v33 = vadd.f32 %v4684_v17, %v1992_v55  ;;  %v4688_v46 = vld [vmem:[#allocation15_spill] sm:$0xff] }
 0x172   : > { %v3431_v28 = vpop.f32.mrf.mxu1  ;;  %v2002_v2 = vadd.f32 %v3399_v60, %v1749_v40  ;;  %v2249_v37 = vadd.f32 %v2210_v21, %v1999_v5  ;;  %v4678_v60 = vld [vmem:[#allocation9_spill] sm:$0xff]  ;;  %v1997_v63 = vadd.f32 %v4679_v61, %v1744_v20  ;;  %v4685_v43 = vld [vmem:[#allocation16_spill] sm:$0xff]  ;;  %v1751_v3 = vadd.f32 %v4686_v59, %v1501_v53 }
 0x173   : > { %v1963_v18 = vpop.f32.mrf.mxu0  ;;  %v2244_v8 = vadd.f32 %v4678_v60, %v1994_v45  ;;  %v1998_v50 = vadd.f32 %v4685_v43, %v1745_v7  ;;  %v4687_v40 = vld [vmem:[#allocation13_spill] sm:$0xff] }
 0x174   : > { %v4534_v14 = vpop.f32.mrf.mxu1  ;;  %v2000_v6 = vadd.f32 %v1963_v18, %v1747_v25  ;;  %v2252_v16 = vadd.f32 %v3431_v28, %v2002_v2  ;;  %v2247_v5 = vadd.f32 %v4687_v40, %v1997_v63  ;;  %v2245_v25 = vadd.f32 %v4688_v46, %v1995_v36  ;;  %v4690_v38 = vld [vmem:[#allocation17_spill] sm:$0xff]  ;;  %v4691_v60 = vld [vmem:[#allocation19_spill] sm:$0xff] }
 0x175   : > { %v3402_v13 = vpop.f32.mrf.mxu0  ;;  %v2248_v55 = vadd.f32 %v4690_v38, %v1998_v50 }
 0x176   : > { %v4540_v44 = vpop.f32.mrf.mxu1  ;;  %v2005_v42 = vadd.f32 %v3402_v13, %v1752_v47  ;;  %v2250_v28 = vadd.f32 %v4534_v14, %v2000_v6  ;;  %v4689_v47 = vld [vmem:[#allocation18_spill] sm:$0xff] }
 0x177   : > { %v1976_v11 = vpop.f32.mrf.mxu0  ;;  %v1996_v7 = vadd.f32 %v4689_v47, %v1743_v41 }
 0x178   : > { %v4547_v52 = vpop.f32.mrf.mxu1  ;;  %v2003_v13 = vadd.f32 %v1976_v11, %v1750_v62  ;;  %v2255_v14 = vadd.f32 %v4540_v44, %v2005_v42 }
 0x179   : > { %v4550_v39 = vpop.f32.mrf.mxu0 }
 0x17a   : > { %v4555_v15 = vpop.f32.mrf.mxu1  ;;  %v2006_v11 = vadd.f32 %v4550_v39, %v1753_v19 }
 0x17b   : > { %v4560_v22 = vpop.f32.mrf.mxu0 }
 0x17c   : > { %v4565_v35 = vpop.f32.mrf.mxu1  ;;  %v2004_v44 = vadd.f32 %v4560_v22, %v1751_v3  ;;  %v2256_v61 = vadd.f32 %v4555_v15, %v2006_v11 }
 0x17d   : > { %v3454_v30 = vpop.f32.mrf.mxu0 }
 0x17e   : > { %v2493_v54 = vadd.f32 %v3454_v30, %v2243_v10  ;;  %v3462_v9 = vpop.f32.mrf.mxu1 }
 0x17f   : > { %v4576_v34 = vadd.f32 %v3462_v9, %v2251_v27  ;;  %v2428_v58 = vpop.f32.mrf.mxu0  ;;  %v2253_v9 = vadd.f32 %v4547_v52, %v2003_v13 }
 0x180   : > { %2509 = vst [vmem:[%s3717_s15 + $0x10] sm:$0xff] %v2493_v54  ;;  %v2491_v31 = vadd.f32 %v2428_v58, %v2241_v56  ;;  %v2460_v29 = vpop.f32.mrf.mxu1  ;;  %v2550_v12 = vmul.f32 %v2493_v54, %v2493_v54 }
 0x181   : > { %2517 = vst [vmem:[%s3717_s15 + $0x50] sm:$0xff] %v4576_v34  ;;  %v4585_v18 = vadd.f32 %v2460_v29, %v2249_v37  ;;  %v3455_v21 = vpop.f32.mrf.mxu0  ;;  %v2254_v29 = vadd.f32 %v4565_v35, %v2004_v44 }
 0x182   : > { %2507 = vst [vmem:[%s3717_s15] sm:$0xff] %v2491_v31  ;;  %v2494_v26 = vadd.f32 %v3455_v21, %v2244_v8  ;;  %v3463_v1 = vpop.f32.mrf.mxu1  ;;  %v2548_v2 = vmul.f32 %v2491_v31, %v2491_v31  ;;  %v2246_v8 = vadd.f32 %v4691_v60, %v1996_v7 }
 0x183   : > { %2515 = vst [vmem:[%s3717_s15 + $0x40] sm:$0xff] %v4585_v18  ;;  %v4595_v24 = vadd.f32 %v3463_v1, %v2252_v16  ;;  %v2431_v20 = vpop.f32.mrf.mxu0 }
 0x184   : > { %2510 = vst [vmem:[%s3717_s15 + $0x18] sm:$0xff] %v2494_v26  ;;  %v2492_v10 = vadd.f32 %v2431_v20, %v2242_v33  ;;  %v2463_v45 = vpop.f32.mrf.mxu1  ;;  %v2551_v22 = vmul.f32 %v2494_v26, %v2494_v26 }
 0x185   : > { %2518 = vst [vmem:[%s3717_s15 + $0x58] sm:$0xff] %v4595_v24  ;;  %v2500_v57 = vadd.f32 %v2463_v45, %v2250_v28  ;;  %v3458_v27 = vpop.f32.mrf.mxu0  ;;  %v2556_v28 = vmul.f32 %v4585_v18, %v4585_v18 }
 0x186   : > { %2508 = vst [vmem:[%s3717_s15 + $0x8] sm:$0xff] %v2492_v10  ;;  %v2524_v30 = vadd.f32 %v2492_v10, %v2491_v31  ;;  %v2549_v51 = vmul.f32 %v2492_v10, %v2492_v10  ;;  %v2497_v23 = vadd.f32 %v3458_v27, %v2247_v5  ;;  %v3466_v56 = vpop.f32.mrf.mxu1  ;;  %v2558_v5 = vmul.f32 %v4576_v34, %v4576_v34 }
 0x187   : > { %2516 = vst [vmem:[%s3717_s15 + $0x48] sm:$0xff] %v2500_v57  ;;  %v2505_v39 = vadd.f32 %v3466_v56, %v2255_v14  ;;  %v2444_v49 = vpop.f32.mrf.mxu0  ;;  %v2557_v59 = vmul.f32 %v2500_v57, %v2500_v57  ;;  %v2559_v10 = vmul.f32 %v4595_v24, %v4595_v24 }
 0x188   : > { %v2525_v53 = vadd.f32 %v2524_v30, %v2493_v54  ;;  %v2564_v37 = vadd.f32 %v2549_v51, %v2548_v2  ;;  %2513 = vst [vmem:[%s3717_s15 + $0x30] sm:$0xff] %v2497_v23  ;;  %v2495_v6 = vadd.f32 %v2444_v49, %v2245_v25  ;;  %v2476_v58 = vpop.f32.mrf.mxu1  ;;  %v2554_v33 = vmul.f32 %v2497_v23, %v2497_v23 }
 0x189   : > { %2521 = vst [vmem:[%s3717_s15 + $0x70] sm:$0xff] %v2505_v39  ;;  %v2503_v52 = vadd.f32 %v2476_v58, %v2253_v9  ;;  %v3459_v63 = vpop.f32.mrf.mxu0  ;;  %v2562_v30 = vmul.f32 %v2505_v39, %v2505_v39  ;;  %v2523_v58 = vld [vmem:[%s3712_s12] sm:$0x1] }
 0x18a   : > { %v2565_v48 = vadd.f32 %v2564_v37, %v2550_v12  ;;  %2511 = vst [vmem:[%s3717_s15 + $0x20] sm:$0xff] %v2495_v6  ;;  %v2526_v36 = vadd.f32 %v2525_v53, %v2494_v26  ;;  %v2498_v54 = vadd.f32 %v3459_v63, %v2248_v55  ;;  %v3467_v31 = vpop.f32.mrf.mxu1  ;;  %v2552_v15 = vmul.f32 %v2495_v6, %v2495_v6 }
 0x18b   : > { %2519 = vst [vmem:[%s3717_s15 + $0x60] sm:$0xff] %v2503_v52  ;;  %v2506_v0 = vadd.f32 %v3467_v31, %v2256_v61  ;;  %v2447_v62 = vpop.f32.mrf.mxu0  ;;  %v2560_v7 = vmul.f32 %v2503_v52, %v2503_v52 }
 0x18c   : > { %v2527_v16 = vadd.f32 %v2526_v36, %v2495_v6  ;;  %v2566_v42 = vadd.f32 %v2565_v48, %v2551_v22  ;;  %2514 = vst [vmem:[%s3717_s15 + $0x38] sm:$0xff] %v2498_v54  ;;  %v2496_v21 = vadd.f32 %v2447_v62, %v2246_v8  ;;  %v2479_v4 = vpop.f32.mrf.mxu1  ;;  %v2555_v1 = vmul.f32 %v2498_v54, %v2498_v54  ;;  %v2547_v8 = vld [vmem:[%s3712_s12 + $0x1] sm:$0x1] }
 0x18d   : > { %2522 = vst [vmem:[%s3717_s15 + $0x78] sm:$0xff] %v2506_v0  ;;  %v2504_v41 = vadd.f32 %v2479_v4, %v2254_v29 }
 0x18e   : > { %v2567_v32 = vadd.f32 %v2566_v42, %v2552_v15  ;;  %2512 = vst [vmem:[%s3717_s15 + $0x28] sm:$0xff] %v2496_v21  ;;  %v2528_v19 = vadd.f32 %v2527_v16, %v2496_v21  ;;  %v2553_v17 = vmul.f32 %v2496_v21, %v2496_v21 }
 0x18f   : > { %2520 = vst [vmem:[%s3717_s15 + $0x68] sm:$0xff] %v2504_v41  ;;  %v2561_v27 = vmul.f32 %v2504_v41, %v2504_v41 }
 0x190   : > { %v2529_v26 = vadd.f32 %v2528_v19, %v2497_v23  ;;  %v2568_v35 = vadd.f32 %v2567_v32, %v2553_v17  ;;  %v2563_v23 = vmul.f32 %v2506_v0, %v2506_v0 }
 0x192   : > { %v2530_v43 = vadd.f32 %v2529_v26, %v2498_v54  ;;  %v2569_v50 = vadd.f32 %v2568_v35, %v2554_v33 }
 0x194   : > { %v2531_v13 = vadd.f32 %v2530_v43, %v4585_v18  ;;  %v2570_v20 = vadd.f32 %v2569_v50, %v2555_v1 }
 0x196   : > { %v2571_v3 = vadd.f32 %v2570_v20, %v2556_v28  ;;  %v2532_v40 = vadd.f32 %v2531_v13, %v2500_v57 }
 0x198   : > { %v2533_v46 = vadd.f32 %v2532_v40, %v4576_v34  ;;  %v2572_v25 = vadd.f32 %v2571_v3, %v2557_v59 }
 0x19a   : > { %v2534_v45 = vadd.f32 %v2533_v46, %v4595_v24  ;;  %v2573_v47 = vadd.f32 %v2572_v25, %v2558_v5 }
 0x19c   : > { %v2535_v14 = vadd.f32 %v2534_v45, %v2503_v52  ;;  %v2574_v11 = vadd.f32 %v2573_v47, %v2559_v10 }
 0x19e   : > { %v2536_v18 = vadd.f32 %v2535_v14, %v2504_v41  ;;  %v2575_v2 = vadd.f32 %v2574_v11, %v2560_v7 }
 0x1a0   : > { %v2537_v57 = vadd.f32 %v2536_v18, %v2505_v39  ;;  %v2576_v51 = vadd.f32 %v2575_v2, %v2561_v27 }
 0x1a2   : > { %v2538_v34 = vadd.f32 %v2537_v57, %v2506_v0  ;;  %v2577_v56 = vadd.f32 %v2576_v51, %v2562_v30 }
 0x1a4   : > { %v2539_v38 = vrot.slane %v2538_v34, 4  ;;  %v2578_v55 = vadd.f32 %v2577_v56, %v2563_v23 }
 0x1a6   : > { %v2540_v9 = vadd.f32 %v2539_v38, %v2538_v34  ;;  %v2579_v24 = vrot.slane %v2578_v55, 4 }
 0x1a8   : > { %v2541_v44 = vrot.slane %v2540_v9, 2  ;;  %v2580_v49 = vadd.f32 %v2579_v24, %v2578_v55 }
 0x1aa   : > { %v2542_v12 = vadd.f32 %v2541_v44, %v2540_v9  ;;  %v2581_v53 = vrot.slane %v2580_v49, 2 }
 0x1ac   : > { %v2543_v37 = vrot.slane %v2542_v12, 1  ;;  %v2582_v6 = vadd.f32 %v2581_v53, %v2580_v49 }
 0x1ae   : > { %v2544_v60 = vadd.f32 %v2543_v37, %v2542_v12  ;;  %v2583_v39 = vrot.slane %v2582_v6, 1 }
 0x1b0   : > { %v2545_v61 = vadd.f32 %v2544_v60, %v2523_v58  ;;  %v2584_v52 = vadd.f32 %v2583_v39, %v2582_v6 }
 0x1b2   : > { %2546 = vst [vmem:[%s3712_s12] sm:$0x1] %v2545_v61  ;;  %v2585_v63 = vadd.f32 %v2584_v52, %v2547_v8 }
 0x1b4   : > { %2586 = vst [vmem:[%s3712_s12 + $0x1] sm:$0x1] %v2585_v63 }
 0x1b5 PF: > { %s16_s22 = sadd.s32 1, %s3638_s22   ;;  %s4692_s18 = smov %s3630_s20 }
 0x1b6   : > { %p13_p8 = scmp.ge.s32.totalorder %s16_s22, 6   ;;  %s4693_s19 = smov %s3634_s21 }
 0x1b7   : > { %s4694_s20 = smov %s4697_s23  ;;  %s4695_s21 = smov %s4701_s24 }
 0x1b8   :  { %15 = sbr.rel (!%p13_p8) target bundleno = 3 (0x3), region = 93 }

// kernel: resnet_block_forward.3
= control target key start
LH: loop header
LB: loop body
LE: loop exit
PB: predicated region body
PF: predicated region fallthrough
CT: control target
= control target key end

     0   :  { %s4344_s12 = smov 0   ;;  %s4346_s13 = smov 0   ;;  %s5407_s0 = inlined_call_operand.vmem [shape: bf16[2,18,18,128], index: 0, kind: input, shape index: {}]   ;;  %s5408_s1 = inlined_call_operand.vmem [shape: bf16[9,128,128], index: 1, kind: input, shape index: {}]   ;;  %s5409_s2 = inlined_call_operand.vmem [shape: f32[2,16,16,128], index: 2, kind: output, shape index: {0}]   ;;  %s5410_s3 = inlined_call_operand.vmem [shape: f32[2,8,128], index: 3, kind: output, shape index: {1}]  }
   0x1   :  { %s4348_s14 = smov 0   ;;  %s4350_s15 = smov 0  }
   0x2   :  { %s4352_s16 = smov 0  }
   0x3 LB: > { %s23_s17 = sadd.s32 1, %s4313_s14  ;;  %s26_s18 = sadd.s32 1, %s4317_s15  ;;  %s4321_s16 = sphi %s4352_s16, %s14_s16   ;;  %s4317_s15 = sphi %s4350_s15, %s5452_s15   ;;  %s4313_s14 = sphi %s4348_s14, %s5451_s14   ;;  %s4309_s13 = sphi %s4346_s13, %s5450_s13   ;;  %s4305_s12 = sphi %s4344_s12, %s5449_s12  }
   0x4   : > { %p24_p0 = scmp.ge.s32.totalorder %s23_s17, 2  ;;  %p3287_p1 = scmp.ge.s32.totalorder %s4321_s16, 1 }
   0x5   : > { %p154_p2 = scmp.lt.s32.totalorder %s4321_s16, 5 }
   0x6   : > { %s5454_s17 = smov (%p24_p0, %s23_s17), 0  ;;  %s5456_s18 = smov (!%p24_p0, %s26_s18), %s4317_s15 }
   0x7   : > { %p155_p3 = pnand %p3287_p1, %p154_p2  ;;  %p28_p4 = scmp.ge.s32.totalorder %s5456_s18, 2 }
   0x9   : > { %s5458_s18 = smov (%p28_p4, %s5456_s18), 0  ;;  %158 = sbr.rel (%p155_p3) target bundleno = 443 (0x1bb), region = 28 }
   0xe   : > { %p187_p5 = scmp.lt.s32.totalorder %s4309_s13, 1  ;;  %s3289_s19 = sshll.u32 %s4305_s12, 3 }
   0xf   : > { %p195_p6 = scmp.lt.s32.totalorder %s3289_s19, 15  ;;  %p3295_p7 = scmp.ne.s32.totalorder %s4305_s12, 0 }
  0x10   : > { %s5460_s13 = smov (!%p187_p5, %s4309_s13), 1 }
  0x11   : > { %s5462_s19 = smov (!%p195_p6, %s3289_s19), 15  ;;  %s4145_s20 = smul.u32 216, %s5460_s13 }
  0x12   : > { %s3291_s21 = sshll.u32 %s5460_s13, 5  ;;  %s3290_s22 = sshll.u32 %s5462_s19, 1 }
  0x13   : > { %s3293_s23 = sshll.u32 %s5460_s13, 3  ;;  %s4380_s26 = scalar_lea.vmem %s5407_s0, %s4145_s20 }
  0x14   : > { %s199_s27 = sadd.s32 %s3291_s21, %s3290_s22  ;;  %s4385_s4 = scalar_lea.vmem %s5410_s3, %s3293_s23 }
  0x15   : > { %s3292_s28 = sshll.u32 %s199_s27, 3  ;;  %212 = sbr.rel (%p3295_p7) target bundleno = 28 (0x1c), region = 32 }
  0x16   : > { %s4390_s7 = scalar_lea.vmem %s5409_s2, %s3292_s28 }
  0x1a   : > { %v4323_v0 = vmov 0.0  }
  0x1b   : > { %213 = vst [vmem:[%s4385_s4] sm:$0xff] %v4323_v0 }
  0x1c PF: > { %v4187_v1 = vld [vmem:[%s5408_s1 + $0x78] sm:$0xff]   ;;  %v4189_v3 = vld [vmem:[%s5408_s1 + $0x70] sm:$0xff]   ;;  %v4191_v5 = vld [vmem:[%s5408_s1 + $0x68] sm:$0xff]   ;;  %s3696_s5 = smul.u32 96, %s4305_s12  ;;  %vm257_vm0 = vsmask.f32 3328 }
  0x1d   : > { %v4188_v2 = vld [vmem:[%s5408_s1 + $0x38] sm:$0xff]   ;;  %3841 = vmatprep.subr.bf16.mxu0 %v4187_v1  ;;  %v4190_v4 = vld [vmem:[%s5408_s1 + $0x30] sm:$0xff]   ;;  %v4192_v6 = vld [vmem:[%s5408_s1 + $0x28] sm:$0xff]   ;;  %vm258_vm1 = vsmask.f32 7440  ;;  %vm863_vm3 = vcmask 1042432  }
  0x1e   : > { %3873 = vmatprep.subr.bf16.mxu1 %v4188_v2  ;;  %3842 = vmatpush3.bf16.msra.mxu0 %v4187_v1  ;;  %v4193_v7 = vld [vmem:[%s5408_s1 + $0x60] sm:$0xff]   ;;  %v4195_v9 = vld [vmem:[%s5408_s1 + $0x58] sm:$0xff]   ;;  %s4426_s11 = scalar_lea.vmem %s4380_s26, %s3696_s5  ;;  %v4197_v11 = vld [vmem:[%s5408_s1 + $0x50] sm:$0xff]   ;;  %vm864_vm4 = vcmask 1046532  }
  0x1f   : > { %3874 = vmatpush3.bf16.msra.mxu1 %v4188_v2  ;;  %3843 = vmatprep.subr.bf16.mxu0 %v4189_v3  ;;  %v4194_v8 = vld [vmem:[%s5408_s1 + $0x20] sm:$0xff]   ;;  %v4196_v10 = vld [vmem:[%s5408_s1 + $0x18] sm:$0xff]   ;;  %v4198_v12 = vld [vmem:[%s5408_s1 + $0x10] sm:$0xff]  }
  0x20   : > { %3875 = vmatprep.subr.bf16.mxu1 %v4190_v4  ;;  %v217_v13 = vld [vmem:[%s4426_s11] sm:$0xf]  ;;  %v4436_v14 = vld [vmem:[%s4426_s11 + $0x4] sm:$0xf]  ;;  %v4439_v15 = vld [vmem:[%s4426_s11 + $0x8] sm:$0x1] }
  0x21   : > { %v261_v16 = vshrl.u32 %v217_v13, 16  ;;  %v264_v17 = vshll.u32 %v217_v13, 16  ;;  %v270_v18 = vshll.u32 %v4436_v14, 16  ;;  %v274_v19 = vshrl.u32 %v4436_v14, 16  ;;  %v4445_v21 = vld [vmem:[%s4426_s11 + $0xc] sm:$0xf]  ;;  %vm4469_vm2 = vmor %vm257_vm0, %vm258_vm1 }
  0x22   : > { %3844 = vmatpush3.bf16.msra.mxu0 %v4189_v3  ;;  %v280_v20 = vshll.u32 %v4439_v15, 16  ;;  %v3330_v24 = vcombine.low %v217_v13, %v4436_v14  ;;  %v4449_v25 = vld [vmem:[%s4426_s11 + $0x10] sm:$0xf]  ;;  %v4452_v26 = vld [vmem:[%s4426_s11 + $0x14] sm:$0x1]  ;;  %v4199_v27 = vld [vmem:[%s5408_s1 + $0x48] sm:$0xff]  }
  0x23   : > { %3876 = vmatpush3.bf16.msra.mxu1 %v4190_v4  ;;  %3845 = vmatprep.subr.bf16.mxu0 %v4191_v5  ;;  %v263_v22 = vrot.slane %v261_v16, 4  ;;  %v266_v23 = vrot.slane %v264_v17, 5  ;;  %v272_v28 = vrot.slane %v270_v18, 5  ;;  %v276_v29 = vrot.slane %v274_v19, 4  ;;  %v4200_v31 = vld [vmem:[%s5408_s1 + $0x8] sm:$0xff]   ;;  %v4201_v36 = vld [vmem:[%s5408_s1 + $0x40] sm:$0xff]   ;;  %vm4642_vm5 = vmor %vm863_vm3, %vm864_vm4 }
  0x24   : > { %3877 = vmatprep.subr.bf16.mxu1 %v4192_v6  ;;  %v285_v30 = vshrl.u32 %v4445_v21, 16  ;;  %3889 = vmatprep.mubr.bf16.mxu1 %v3330_v24  ;;  %v288_v33 = vshll.u32 %v4445_v21, 16  ;;  %v294_v34 = vshll.u32 %v4449_v25, 16  ;;  %v298_v35 = vshrl.u32 %v4449_v25, 16  ;;  %v4202_v48 = vld [vmem:[%s5408_s1] sm:$0xff]   ;;  %v4205_v56 = vld [vmem:[%s5408_s1 + $0xb8] sm:$0xff]  }
  0x25   : > { %v267_v32 = vor.u32 %v266_v23, %v263_v22  ;;  %v277_v38 = vor.u32 %v276_v29, %v272_v28  ;;  %v282_v39 = vrot.slane %v280_v20, 5  ;;  %v304_v41 = vshll.u32 %v4452_v26, 16  ;;  %v4489_v57 = vld [vmem:[%s4426_s11 + $0x18] sm:$0xf]  ;;  %v4492_v58 = vld [vmem:[%s4426_s11 + $0x1c] sm:$0xf] }
  0x26   : > { %3846 = vmatpush3.bf16.msra.mxu0 %v4191_v5  ;;  %v287_v40 = vrot.slane %v285_v30, 4  ;;  %v290_v43 = vrot.slane %v288_v33, 5  ;;  %v296_v44 = vrot.slane %v294_v34, 5  ;;  %v300_v45 = vrot.slane %v298_v35, 4  ;;  %v4206_v62 = vld [vmem:[%s5408_s1 + $0xf8] sm:$0xff]   ;;  %v4207_v13 = vld [vmem:[%s5408_s1 + $0xb0] sm:$0xff]  }
  0x27   : > { %3878 = vmatpush3.bf16.msra.mxu1 %v4192_v6  ;;  %3847 = vmatprep.subr.bf16.mxu0 %v4193_v7  ;;  %v268_v42 = vrot.slane %v267_v32, 4  ;;  %v278_v46 = vrot.slane %v277_v38, 4  ;;  %v871_v47 = vrot.slane %v4439_v15, 5  ;;  %v306_v52 = vrot.slane %v304_v41, 5  ;;  %v4498_v63 = vld [vmem:[%s4426_s11 + $0x20] sm:$0x1] }
  0x28   : > { %3879 = vmatprep.subr.bf16.mxu1 %v4194_v8  ;;  %v291_v50 = vor.u32 %v290_v43, %v287_v40  ;;  %v301_v51 = vor.u32 %v300_v45, %v296_v44  ;;  %v878_v54 = vrot.slane %v4452_v26, 5  ;;  %v3331_v55 = vcombine.low %v4445_v21, %v4449_v25  ;;  %v4506_v5 = vld [vmem:[%s4426_s11 + $0x24] sm:$0xf]  ;;  %v4208_v29 = vld [vmem:[%s5408_s1 + $0xf0] sm:$0xff]   ;;  %v4211_v45 = vld [vmem:[%s5408_s1 + $0xa8] sm:$0xff]  }
  0x29   : > { %v273_v49 = vsel %vm4469_vm2, %v268_v42, %v272_v28  ;;  %v283_v53 = vsel %vm4469_vm2, %v278_v46, %v282_v39  ;;  %v309_v0 = vshrl.u32 %v4489_v57, 16  ;;  %v312_v1 = vshll.u32 %v4489_v57, 16  ;;  %v4535_v41 = vld [vmem:[%s4426_s11 + $0x30] sm:$0xf]  ;;  %v4545_v46 = vld [vmem:[%s4426_s11 + $0x34] sm:$0xf] }
  0x2a   : > { %3848 = vmatpush3.bf16.msra.mxu0 %v4193_v7  ;;  %v3314_v59 = vcombine.low %v273_v49, %v283_v53  ;;  %v292_v60 = vrot.slane %v291_v50, 4  ;;  %v302_v61 = vrot.slane %v301_v51, 4  ;;  %v318_v2 = vshll.u32 %v4492_v58, 16 }
  0x2b   : > { %3880 = vmatpush3.bf16.msra.mxu1 %v4194_v8  ;;  %3849 = vmatprep.subr.bf16.mxu0 %v4195_v9  ;;  %v322_v3 = vshrl.u32 %v4492_v58, 16  ;;  %v328_v4 = vshll.u32 %v4498_v63, 16  ;;  %v311_v8 = vrot.slane %v309_v0, 4  ;;  %v314_v16 = vrot.slane %v312_v1, 5  ;;  %v4213_v1 = vld [vmem:[%s5408_s1 + $0xa0] sm:$0xff]  }
  0x2c   : > { %3881 = vmatprep.subr.bf16.mxu1 %v4196_v10  ;;  %3857 = vmatprep.mubr.bf16.mxu0 %v3314_v59  ;;  %v297_v6 = vsel %vm4469_vm2, %v292_v60, %v296_v44  ;;  %v307_v7 = vsel %vm4469_vm2, %v302_v61, %v306_v52  ;;  %v320_v17 = vrot.slane %v318_v2, 5  ;;  %v333_v20 = vshrl.u32 %v4506_v5, 16  ;;  %v4212_v52 = vld [vmem:[%s5408_s1 + $0xe8] sm:$0xff]  }
  0x2d   : > { %v324_v18 = vrot.slane %v322_v3, 4  ;;  %v330_v19 = vrot.slane %v328_v4, 5  ;;  %v336_v21 = vshll.u32 %v4506_v5, 16  ;;  %v315_v23 = vor.u32 %v314_v16, %v311_v8 }
  0x2e   : > { %3850 = vmatpush3.bf16.msra.mxu0 %v4195_v9  ;;  %v4513_v9 = vld [vmem:[%s4426_s11 + $0x28] sm:$0xf]  ;;  %v3332_v30 = vcombine.low %v4489_v57, %v4492_v58  ;;  %v357_v49 = vshrl.u32 %v4535_v41, 16  ;;  %v360_v53 = vshll.u32 %v4535_v41, 16  ;;  %v370_v60 = vshrl.u32 %v4545_v46, 16 }
  0x2f   : > { %3882 = vmatpush3.bf16.msra.mxu1 %v4196_v10  ;;  %3851 = vmatprep.subr.bf16.mxu0 %v4197_v11  ;;  %v4516_v10 = vld [vmem:[%s4426_s11 + $0x2c] sm:$0x1]  ;;  %v342_v22 = vshll.u32 %v4513_v9, 16  ;;  %v325_v24 = vor.u32 %v324_v18, %v320_v17  ;;  %v338_v32 = vrot.slane %v336_v21, 5  ;;  %v316_v34 = vrot.slane %v315_v23, 4 }
  0x30   : > { %3883 = vmatprep.subr.bf16.mxu1 %v4198_v12  ;;  %v352_v28 = vshll.u32 %v4516_v10, 16  ;;  %v3333_v40 = vcombine.low %v4506_v5, %v4513_v9  ;;  %v359_v59 = vrot.slane %v357_v49, 4  ;;  %v362_v2 = vrot.slane %v360_v53, 5  ;;  %v4572_v5 = vld [vmem:[%s4426_s11 + $0x44] sm:$0x1] }
  0x31   : > { %v344_v33 = vrot.slane %v342_v22, 5  ;;  %v326_v35 = vrot.slane %v325_v24, 4  ;;  %v321_v42 = vsel %vm4469_vm2, %v316_v34, %v320_v17  ;;  %v3334_v4 = vcombine.low %v4535_v41, %v4545_v46 }
  0x32   : > { %3852 = vmatpush3.bf16.msra.mxu0 %v4197_v11  ;;  %v868_v11 = vrot.slane %v4436_v14, 5  ;;  %v354_v38 = vrot.slane %v352_v28, 5  ;;  %v372_v8 = vrot.slane %v370_v60, 4  ;;  %v363_v17 = vor.u32 %v362_v2, %v359_v59 }
  0x33   : > { %3884 = vmatpush3.bf16.msra.mxu1 %v4198_v12  ;;  %3853 = vmatprep.subr.bf16.mxu0 %v4199_v27  ;;  %v3315_v12 = vcombine.low %v297_v6, %v307_v7  ;;  %v331_v43 = vsel %vm4469_vm2, %v326_v35, %v330_v19  ;;  %v4214_v7 = vld [vmem:[%s5408_s1 + $0xe0] sm:$0xff]   ;;  %v400_v23 = vshll.u32 %v4572_v5, 16  ;;  %v896_v26 = vrot.slane %v4545_v46, 5 }
  0x34   : > { %3885 = vmatprep.subr.bf16.mxu1 %v4200_v31  ;;  %v3316_v50 = vcombine.low %v321_v42, %v331_v43  ;;  %v364_v24 = vrot.slane %v363_v17, 4  ;;  %v4601_v42 = vld [vmem:[%s4426_s11 + $0x50] sm:$0x1] }
  0x36   : > { %3854 = vmatpush3.bf16.msra.mxu0 %v4199_v27  ;;  %v346_v27 = vshrl.u32 %v4513_v9, 16 }
  0x37   : > { %3886 = vmatpush3.bf16.msra.mxu1 %v4200_v31  ;;  %3855 = vmatprep.subr.bf16.mxu0 %v4201_v36  ;;  %v335_v31 = vrot.slane %v333_v20, 4 }
  0x38   : > { %3887 = vmatprep.subr.bf16.mxu1 %v4202_v48 }
  0x39   : > { %v339_v39 = vor.u32 %v338_v32, %v335_v31  ;;  %v402_v32 = vrot.slane %v400_v23, 5 }
  0x3a   : > { %3856 = vmatpush3.bf16.msra.mxu0 %v4201_v36  ;;  %v348_v36 = vrot.slane %v346_v27, 4 }
  0x3b   : > { %3888 = vmatpush3.bf16.msra.mxu1 %v4202_v48  ;;  %3905 = vmatprep.subr.bf16.mxu0 %v4205_v56  ;;  %v4548_v48 = vld [vmem:[%s4426_s11 + $0x38] sm:$0x1]  ;;  %v340_v51 = vrot.slane %v339_v39, 4  ;;  %v4596_v39 = vld [vmem:[%s4426_s11 + $0x4c] sm:$0xf] }
  0x3c   : > { %3937 = vmatprep.subr.bf16.mxu1 %v4206_v62  ;;  %v349_v44 = vor.u32 %v348_v36, %v344_v33  ;;  %v376_v61 = vshll.u32 %v4548_v48, 16  ;;  %v418_v53 = vshrl.u32 %v4596_v39, 16 }
  0x3d   : > { %3858 = vmatmul.mubr.bf16.vlgmr.msra.gmra.mxu0 %v3315_v12  ;;  %v345_v0 = vsel %vm4469_vm2, %v340_v51, %v344_v33  ;;  %v4218_v33 = vld [vmem:[%s5408_s1 + $0xd8] sm:$0xff]   ;;  %v4219_v51 = vld [vmem:[%s5408_s1 + $0x90] sm:$0xff]  }
  0x3e   : > { %3890 = vmatmul.mubr.bf16.vlgmr.msra.gmra.mxu1 %v3331_v55  ;;  %3906 = vmatpush3.bf16.msra.mxu0 %v4205_v56  ;;  %v366_v55 = vshll.u32 %v4545_v46, 16  ;;  %v4557_v56 = vld [vmem:[%s4426_s11 + $0x3c] sm:$0xf]  ;;  %v350_v57 = vrot.slane %v349_v44, 4  ;;  %v378_v12 = vrot.slane %v376_v61, 5  ;;  %v424_v61 = vshll.u32 %v4601_v42, 16 }
  0x3f   : > { %3938 = vmatpush3.bf16.msra.mxu1 %v4206_v62  ;;  %3907 = vmatprep.subr.bf16.mxu0 %v4207_v13  ;;  %v4562_v62 = vld [vmem:[%s4426_s11 + $0x40] sm:$0xf]  ;;  %v384_v18 = vshll.u32 %v4557_v56, 16 }
  0x40   : > { %3939 = vmatprep.subr.bf16.mxu1 %v4208_v29  ;;  %3893 = vmatprep.mubr.bf16.mxu1 %v3332_v30  ;;  %v368_v3 = vrot.slane %v366_v55, 5  ;;  %v355_v6 = vsel %vm4469_vm2, %v350_v57, %v354_v38  ;;  %v390_v19 = vshll.u32 %v4562_v62, 16  ;;  %v394_v22 = vshrl.u32 %v4562_v62, 16  ;;  %v229_v38 = vld [vmem:[%s4426_s11 + $0x48] sm:$0xf]  ;;  %v4220_v57 = vld [vmem:[%s5408_s1 + $0xd0] sm:$0xff]  }
  0x41   : > { %3861 = vmatprep.mubr.bf16.mxu0 %v3316_v50  ;;  %v3317_v16 = vcombine.low %v345_v0, %v355_v6  ;;  %v386_v27 = vrot.slane %v384_v18, 5  ;;  %v3335_v36 = vcombine.low %v4557_v56, %v4562_v62  ;;  %v405_v43 = vshrl.u32 %v229_v38, 16  ;;  %v4612_v55 = vld [vmem:[%s4426_s11 + $0x58] sm:$0xf]  ;;  %v4619_v0 = vld [vmem:[%s4426_s11 + $0x5c] sm:$0x1] }
  0x42   : > { %3908 = vmatpush3.bf16.msra.mxu0 %v4207_v13  ;;  %v381_v13 = vshrl.u32 %v4557_v56, 16  ;;  %v373_v20 = vor.u32 %v372_v8, %v368_v3  ;;  %v392_v28 = vrot.slane %v390_v19, 5  ;;  %v396_v31 = vrot.slane %v394_v22, 4  ;;  %v4223_v19 = vld [vmem:[%s5408_s1 + $0x88] sm:$0xff]  }
  0x43   : > { %3940 = vmatpush3.bf16.msra.mxu1 %v4208_v29  ;;  %3909 = vmatprep.subr.bf16.mxu0 %v4211_v45  ;;  %v4217_v29 = vld [vmem:[%s5408_s1 + $0x98] sm:$0xff]   ;;  %v369_v34 = vsel %vm4469_vm2, %v364_v24, %v368_v3  ;;  %v408_v44 = vshll.u32 %v229_v38, 16  ;;  %v407_v59 = vrot.slane %v405_v43, 4  ;;  %v426_v8 = vrot.slane %v424_v61, 5 }
  0x44   : > { %3941 = vmatprep.subr.bf16.mxu1 %v4212_v52  ;;  %v383_v21 = vrot.slane %v381_v13, 4  ;;  %v374_v30 = vrot.slane %v373_v20, 4  ;;  %v397_v41 = vor.u32 %v396_v31, %v392_v28  ;;  %v438_v18 = vshll.u32 %v4612_v55, 16 }
  0x45   : > { %3862 = vmatmul.mubr.bf16.gmra.mxu0 %v3317_v16  ;;  %v410_v60 = vrot.slane %v408_v44, 5  ;;  %v442_v22 = vshrl.u32 %v4612_v55, 16  ;;  %v448_v23 = vshll.u32 %v4619_v0, 16  ;;  %v903_v46 = vrot.slane %v4562_v62, 5 }
  0x46   : > { %3894 = vmatmul.mubr.bf16.gmra.mxu1 %v3333_v40  ;;  %3910 = vmatpush3.bf16.msra.mxu0 %v4211_v45  ;;  %v387_v35 = vor.u32 %v386_v27, %v383_v21  ;;  %v379_v40 = vsel %vm4469_vm2, %v374_v30, %v378_v12  ;;  %v4604_v45 = vld [vmem:[%s4426_s11 + $0x54] sm:$0xf]  ;;  %v398_v56 = vrot.slane %v397_v41, 4  ;;  %v4224_v30 = vld [vmem:[%s5408_s1 + $0xc8] sm:$0xff]   ;;  %v4225_v41 = vld [vmem:[%s5408_s1 + $0x80] sm:$0xff]  }
  0x47   : > { %3942 = vmatpush3.bf16.msra.mxu1 %v4212_v52  ;;  %3911 = vmatprep.subr.bf16.mxu0 %v4213_v1  ;;  %v3318_v49 = vcombine.low %v369_v34, %v379_v40  ;;  %v414_v52 = vshll.u32 %v4596_v39, 16  ;;  %v429_v12 = vshrl.u32 %v4604_v45, 16  ;;  %v432_v17 = vshll.u32 %v4604_v45, 16 }
  0x48   : > { %3943 = vmatprep.subr.bf16.mxu1 %v4214_v7  ;;  %3897 = vmatprep.mubr.bf16.mxu1 %v3334_v4  ;;  %v388_v50 = vrot.slane %v387_v35, 4  ;;  %v420_v4 = vrot.slane %v418_v53, 4  ;;  %v403_v6 = vsel %vm4469_vm2, %v398_v56, %v402_v32  ;;  %v444_v31 = vrot.slane %v442_v22, 4  ;;  %v839_v32 = vld [vmem:[%s4426_s11] sm:$0xe]  ;;  %v4227_v53 = vld [vmem:[%s4426_s11 + $0xc] sm:$0xff]  }
  0x49   : > { %3865 = vmatprep.mubr.bf16.mxu0 %v3318_v49  ;;  %v416_v3 = vrot.slane %v414_v52, 5  ;;  %v431_v21 = vrot.slane %v429_v12, 4  ;;  %v434_v27 = vrot.slane %v432_v17, 5  ;;  %v870_v34 = vrot.slane %v868_v11, 4  ;;  %v840_v56 = vld [vmem:[%s4426_s11 + $0xc] sm:$0xe] }
  0x4a   : > { %3912 = vmatpush3.bf16.msra.mxu0 %v4213_v1  ;;  %v393_v2 = vsel %vm4469_vm2, %v388_v50, %v392_v28  ;;  %v3336_v1 = vcombine.low %v229_v38, %v4596_v39  ;;  %v440_v28 = vrot.slane %v438_v18, 5  ;;  %v875_v35 = vrot.slane %v4449_v25, 5  ;;  %v4226_v25 = vld [vmem:[%s5408_s1 + $0xc0] sm:$0xff]  }
  0x4b   : > { %3944 = vmatpush3.bf16.msra.mxu1 %v4214_v7  ;;  %3913 = vmatprep.subr.bf16.mxu0 %v4217_v29  ;;  %v411_v7 = vor.u32 %v410_v60, %v407_v59  ;;  %v3319_v13 = vcombine.low %v393_v2, %v403_v6  ;;  %v421_v16 = vor.u32 %v420_v4, %v416_v3  ;;  %v3346_v43 = vrot.slane %v839_v32, 9  ;;  %v4230_v4 = vld [vmem:[%s5408_s1 + $0x178] sm:$0xff]   ;;  %v4238_v32 = vld [vmem:[%s5408_s1 + $0x160] sm:$0xff]  }
  0x4c   : > { %3945 = vmatprep.subr.bf16.mxu1 %v4218_v33  ;;  %v435_v38 = vor.u32 %v434_v27, %v431_v21  ;;  %v3337_v40 = vcombine.low %v4604_v45, %v4612_v55  ;;  %v445_v49 = vor.u32 %v444_v31, %v440_v28  ;;  %v450_v50 = vrot.slane %v448_v23, 5  ;;  %v843_v23 = vld [vmem:[%s4426_s11 + $0x30] sm:$0xe]  ;;  %v4235_v31 = vld [vmem:[%s5408_s1 + $0x128] sm:$0xff]  }
  0x4d   : > { %v412_v20 = vrot.slane %v411_v7, 4  ;;  %3866 = vmatmul.mubr.bf16.gmra.mxu0 %v3319_v13  ;;  %v422_v24 = vrot.slane %v421_v16, 4  ;;  %v877_v59 = vrot.slane %v875_v35, 4  ;;  %v3347_v14 = vrot.slane %v840_v56, 9  ;;  %v4228_v7 = vld [vmem:[%s4426_s11 + $0x18] sm:$0xff]   ;;  %v4233_v16 = vld [vmem:[%s4426_s11 + $0x24] sm:$0xff]  }
  0x4e   : > { %3898 = vmatmul.mubr.bf16.gmra.mxu1 %v3335_v36  ;;  %3914 = vmatpush3.bf16.msra.mxu0 %v4217_v29  ;;  %v436_v52 = vrot.slane %v435_v38, 4  ;;  %v446_v45 = vrot.slane %v445_v49, 4  ;;  %v882_v2 = vrot.slane %v4492_v58, 5  ;;  %v885_v58 = vrot.slane %v4498_v63, 5  ;;  %v842_v63 = vld [vmem:[%s4426_s11 + $0x24] sm:$0xe] }
  0x4f   : > { %3946 = vmatpush3.bf16.msra.mxu1 %v4218_v33  ;;  %3915 = vmatprep.subr.bf16.mxu0 %v4219_v51  ;;  %v417_v29 = vsel %vm4469_vm2, %v412_v20, %v416_v3  ;;  %v427_v36 = vsel %vm4469_vm2, %v422_v24, %v426_v8  ;;  %v841_v3 = vld [vmem:[%s4426_s11 + $0x18] sm:$0xe]  ;;  %v4232_v8 = vld [vmem:[%s5408_s1 + $0x170] sm:$0xff]   ;;  %v876_v12 = vsel %vm4642_vm5, %v3347_v14, %v875_v35  ;;  %v889_v17 = vrot.slane %v4513_v9, 5 }
  0x50   : > { %3947 = vmatprep.subr.bf16.mxu1 %v4220_v57  ;;  %3901 = vmatprep.mubr.bf16.mxu1 %v3336_v1  ;;  %v3320_v44 = vcombine.low %v417_v29, %v427_v36  ;;  %v441_v60 = vsel %vm4469_vm2, %v436_v52, %v440_v28  ;;  %v451_v61 = vsel %vm4469_vm2, %v446_v45, %v450_v50  ;;  %v3348_v1 = vrot.slane %v841_v3, 9  ;;  %v4234_v27 = vld [vmem:[%s4426_s11 + $0x30] sm:$0xff]   ;;  %v4236_v28 = vld [vmem:[%s5408_s1 + $0x168] sm:$0xff]  }
  0x51   : > { %v884_v6 = vrot.slane %v882_v2, 4  ;;  %v879_v13 = vsel %vm4642_vm5, %v877_v59, %v878_v54  ;;  %v4231_v54 = vld [vmem:[%s5408_s1 + $0x130] sm:$0xff]   ;;  %v892_v9 = vrot.slane %v4516_v10, 5  ;;  %v3349_v21 = vrot.slane %v842_v63, 9 }
  0x52   : > { %3916 = vmatpush3.bf16.msra.mxu0 %v4219_v51  ;;  %3869 = vmatprep.mubr.bf16.mxu0 %v3320_v44  ;;  %v869_v51 = vsel %vm4642_vm5, %v3346_v43, %v868_v11  ;;  %v3321_v11 = vcombine.low %v441_v60, %v451_v61  ;;  %v883_v18 = vsel %vm4642_vm5, %v3348_v1, %v882_v2  ;;  %v891_v22 = vrot.slane %v889_v17, 4  ;;  %v846_v45 = vld [vmem:[%s4426_s11 + $0x54] sm:$0xe]  ;;  %v4240_v61 = vld [vmem:[%s4426_s11 + $0x48] sm:$0xff]  }
  0x53   : > { %3948 = vmatpush3.bf16.msra.mxu1 %v4220_v57  ;;  %3917 = vmatprep.subr.bf16.mxu0 %v4223_v19  ;;  %v872_v57 = vsel %vm4642_vm5, %v870_v34, %v871_v47  ;;  %v4229_v47 = vld [vmem:[%s5408_s1 + $0x138] sm:$0xff]   ;;  %v3371_v20 = vcombine.low %v876_v12, %v879_v13  ;;  %v898_v29 = vrot.slane %v896_v26, 4  ;;  %v899_v10 = vrot.slane %v4548_v48, 5  ;;  %v3436_v1 = vld [vmem:[%s4426_s11 + $0xc] sm:$0xf] }
  0x54   : > { %3949 = vmatprep.subr.bf16.mxu1 %v4224_v30  ;;  %v3370_v15 = vcombine.low %v869_v51, %v872_v57  ;;  %v844_v34 = vld [vmem:[%s4426_s11 + $0x3c] sm:$0xe]  ;;  %v890_v62 = vsel %vm4642_vm5, %v3349_v21, %v889_v17  ;;  %v893_v35 = vsel %vm4642_vm5, %v891_v22, %v892_v9  ;;  %v910_v36 = vrot.slane %v4596_v39, 5  ;;  %v3438_v12 = vld [vmem:[%s4426_s11 + $0x14] sm:$0x1]  ;;  %v4248_v17 = vld [vmem:[%s5408_s1 + $0x148] sm:$0xff]  }
  0x55   : > { %3870 = vmatmul.mubr.bf16.gmra.mxu0 %v3321_v11  ;;  %v4239_v48 = vld [vmem:[%s4426_s11 + $0x3c] sm:$0xff]   ;;  %v905_v38 = vrot.slane %v903_v46, 4  ;;  %v900_v43 = vsel %vm4642_vm5, %v898_v29, %v899_v10  ;;  %v3351_v44 = vrot.slane %v844_v34, 9  ;;  %v913_v49 = vrot.slane %v4601_v42, 5  ;;  %v4247_v10 = vld [vmem:[%s5408_s1 + $0x108] sm:$0xff]  }
  0x56   : > { %3902 = vmatmul.mubr.bf16.gmra.mxu1 %v3337_v40  ;;  %3918 = vmatpush3.bf16.msra.mxu0 %v4223_v19  ;;  %v886_v19 = vsel %vm4642_vm5, %v884_v6, %v885_v58  ;;  %v906_v40 = vrot.slane %v4572_v5, 5  ;;  %v3373_v50 = vcombine.low %v890_v62, %v893_v35  ;;  %v912_v39 = vrot.slane %v910_v36, 4  ;;  %v4237_v5 = vld [vmem:[%s5408_s1 + $0x120] sm:$0xff]   ;;  %v4243_v6 = vld [vmem:[%s5408_s1 + $0x110] sm:$0xff]   ;;  %v3440_v29 = vld [vmem:[%s4426_s11 + $0x1c] sm:$0xf] }
  0x57   : > { %3950 = vmatpush3.bf16.msra.mxu1 %v4224_v30  ;;  %3919 = vmatprep.subr.bf16.mxu0 %v4225_v41  ;;  %v3372_v24 = vcombine.low %v883_v18, %v886_v19  ;;  %v3350_v30 = vrot.slane %v843_v23, 9  ;;  %v917_v52 = vrot.slane %v4612_v55, 5  ;;  %v920_v42 = vrot.slane %v4619_v0, 5  ;;  %v4242_v55 = vld [vmem:[%s5408_s1 + $0x158] sm:$0xff]   ;;  %v3441_v34 = vld [vmem:[%s4426_s11 + $0x20] sm:$0x1] }
  0x58   : > { %3951 = vmatprep.subr.bf16.mxu1 %v4226_v25  ;;  %3953 = vmatprep.mubr.bf16.mxu1 %v4227_v53  ;;  %v3353_v57 = vrot.slane %v846_v45, 9  ;;  %v904_v59 = vsel %vm4642_vm5, %v3351_v44, %v903_v46  ;;  %v907_v60 = vsel %vm4642_vm5, %v905_v38, %v906_v40  ;;  %v914_v14 = vsel %vm4642_vm5, %v912_v39, %v913_v49  ;;  %v4241_v0 = vld [vmem:[%s5408_s1 + $0x118] sm:$0xff]  }
  0x59   : > { %3921 = vmatprep.mubr.bf16.mxu0 %v3370_v15  ;;  %v919_v51 = vrot.slane %v917_v52, 4  ;;  %v3375_v3 = vcombine.low %v904_v59, %v907_v60  ;;  %v1403_v13 = vshrl.u32 %v3436_v1, 16  ;;  %v1422_v19 = vshll.u32 %v3438_v12, 16 }
  0x5a   : > { %3920 = vmatpush3.bf16.msra.mxu0 %v4225_v41  ;;  %v897_v41 = vsel %vm4642_vm5, %v3350_v30, %v896_v26  ;;  %v4754_v11 = vsel %vm4642_vm5, %v3353_v57, %v917_v52  ;;  %v3492_v26 = vld [vmem:[%s4426_s11 + $0xc] sm:$0xe]  ;;  %v1841_v23 = vrot.slane %v3438_v12, 5  ;;  %v1436_v40 = vshll.u32 %v3440_v29, 16  ;;  %v3444_v12 = vld [vmem:[%s4426_s11 + $0x2c] sm:$0x1] }
  0x5b   : > { %3952 = vmatpush3.bf16.msra.mxu1 %v4226_v25  ;;  %3969 = vmatprep.subr.bf16.mxu0 %v4229_v47  ;;  %v845_v25 = vld [vmem:[%s4426_s11 + $0x48] sm:$0xe]  ;;  %v3374_v56 = vcombine.low %v897_v41, %v900_v43  ;;  %v4758_v15 = vsel %vm4642_vm5, %v919_v51, %v920_v42  ;;  %v1405_v9 = vrot.slane %v1403_v13, 4  ;;  %v3500_v22 = vrot.slane %v3492_v26, 9  ;;  %v4250_v43 = vld [vmem:[%s5408_s1 + $0x140] sm:$0xff]  }
  0x5c   : > { %4001 = vmatprep.subr.bf16.mxu1 %v4230_v4  ;;  %v3352_v53 = vrot.slane %v845_v25, 9  ;;  %v1440_v41 = vshrl.u32 %v3440_v29, 16  ;;  %v1438_v52 = vrot.slane %v1436_v40, 5  ;;  %v1845_v42 = vrot.slane %v3440_v29, 5 }
  0x5d   : > { %3922 = vmatmul.mubr.bf16.vlgmr.msra.gmra.mxu0 %v3371_v20  ;;  %v1848_v60 = vrot.slane %v3441_v34, 5 }
  0x5e   : > { %3954 = vmatmul.mubr.bf16.vlgmr.msra.gmra.mxu1 %v4228_v7  ;;  %3970 = vmatpush3.bf16.msra.mxu0 %v4229_v47  ;;  %v911_v2 = vsel %vm4642_vm5, %v3352_v53, %v910_v36  ;;  %v4244_v47 = vld [vmem:[%s5408_s1 + $0x150] sm:$0xff]   ;;  %v3377_v7 = vcombine.low %v4754_v11, %v4758_v15  ;;  %v1446_v53 = vshll.u32 %v3441_v34, 16  ;;  %v4251_v11 = vld [vmem:[%s5408_s1 + $0x1b8] sm:$0xff]  }
  0x5f   : > { %4002 = vmatpush3.bf16.msra.mxu1 %v4230_v4  ;;  %3957 = vmatprep.mubr.bf16.mxu1 %v4233_v16  ;;  %v4245_v4 = vld [vmem:[%s4426_s11 + $0x54] sm:$0xff]   ;;  %v3376_v58 = vcombine.low %v911_v2, %v914_v14  ;;  %v1406_v16 = vshll.u32 %v3436_v1, 16  ;;  %v3442_v1 = vld [vmem:[%s4426_s11 + $0x24] sm:$0xf]  ;;  %v3495_v34 = vld [vmem:[%s4426_s11 + $0x30] sm:$0xe] }
  0x60   : > { %4003 = vmatprep.subr.bf16.mxu1 %v4232_v8  ;;  %3971 = vmatprep.subr.bf16.mxu0 %v4231_v54  ;;  %v1448_v59 = vrot.slane %v1446_v53, 5  ;;  %v1451_v13 = vshrl.u32 %v3442_v1, 16 }
  0x61   : > { %3925 = vmatprep.mubr.bf16.mxu0 %v3372_v24  ;;  %v1408_v21 = vrot.slane %v1406_v16, 5  ;;  %v3439_v24 = vld [vmem:[%s4426_s11 + $0x18] sm:$0xf]  ;;  %v1454_v16 = vshll.u32 %v3442_v1, 16 }
  0x62   : > { %3972 = vmatpush3.bf16.msra.mxu0 %v4231_v54  ;;  %v4246_v54 = vld [vmem:[%s4426_s11 + $0x60] sm:$0xff]   ;;  %v1427_v62 = vshrl.u32 %v3439_v24, 16  ;;  %v1430_v35 = vshll.u32 %v3439_v24, 16 }
  0x63   : > { %4004 = vmatpush3.bf16.msra.mxu1 %v4232_v8  ;;  %3973 = vmatprep.subr.bf16.mxu0 %v4235_v31  ;;  %v3437_v8 = vld [vmem:[%s4426_s11 + $0x10] sm:$0xf] }
  0x64   : > { %4005 = vmatprep.subr.bf16.mxu1 %v4236_v28  ;;  %v1412_v63 = vshll.u32 %v3437_v8, 16  ;;  %v1416_v18 = vshrl.u32 %v3437_v8, 16  ;;  %v1838_v20 = vrot.slane %v3437_v8, 5  ;;  %v1432_v25 = vrot.slane %v1430_v35, 5 }
  0x65   : > { %3926 = vmatmul.mubr.bf16.gmra.mxu0 %v3373_v50  ;;  %v1429_v50 = vrot.slane %v1427_v62, 4 }
  0x66   : > { %3958 = vmatmul.mubr.bf16.gmra.mxu1 %v4234_v27  ;;  %3974 = vmatpush3.bf16.msra.mxu0 %v4235_v31  ;;  %v1414_v27 = vrot.slane %v1412_v63, 5  ;;  %v1418_v46 = vrot.slane %v1416_v18, 4  ;;  %v1840_v30 = vrot.slane %v1838_v20, 4  ;;  %v1409_v31 = vor.u32 %v1408_v21, %v1405_v9 }
  0x67   : > { %4006 = vmatpush3.bf16.msra.mxu1 %v4236_v28  ;;  %3961 = vmatprep.mubr.bf16.mxu1 %v4239_v48  ;;  %v1424_v28 = vrot.slane %v1422_v19, 5  ;;  %v3493_v48 = vld [vmem:[%s4426_s11 + $0x18] sm:$0xe]  ;;  %v1433_v45 = vor.u32 %v1432_v25, %v1429_v50  ;;  %v3445_v19 = vld [vmem:[%s4426_s11 + $0x30] sm:$0xf]  ;;  %v1456_v9 = vrot.slane %v1454_v16, 5 }
  0x68   : > { %4007 = vmatprep.subr.bf16.mxu1 %v4238_v32  ;;  %3975 = vmatprep.subr.bf16.mxu0 %v4237_v5  ;;  %v1419_v36 = vor.u32 %v1418_v46, %v1414_v27  ;;  %v1842_v38 = vsel %vm4642_vm5, %v1840_v30, %v1841_v23  ;;  %v1410_v44 = vrot.slane %v1409_v31, 4  ;;  %v3501_v51 = vrot.slane %v3493_v48, 9  ;;  %v4253_v30 = vld [vmem:[%s5408_s1 + $0x1b0] sm:$0xff]  }
  0x69   : > { %3929 = vmatprep.mubr.bf16.mxu0 %v3374_v56  ;;  %v1470_v21 = vshll.u32 %v3444_v12, 16  ;;  %v1855_v31 = vrot.slane %v3444_v12, 5 }
  0x6a   : > { %3976 = vmatpush3.bf16.msra.mxu0 %v4237_v5  ;;  %v1420_v39 = vrot.slane %v1419_v36, 4  ;;  %v1442_v5 = vrot.slane %v1440_v41, 4  ;;  %v1415_v56 = vsel %vm4469_vm2, %v1410_v44, %v1414_v27  ;;  %v1846_v2 = vsel %vm4642_vm5, %v3501_v51, %v1845_v42 }
  0x6b   : > { %4008 = vmatpush3.bf16.msra.mxu1 %v4238_v32  ;;  %3977 = vmatprep.subr.bf16.mxu0 %v4241_v0  ;;  %v1839_v32 = vsel %vm4642_vm5, %v3500_v22, %v1838_v20  ;;  %v4254_v20 = vld [vmem:[%s5408_s1 + $0x1f0] sm:$0xff]   ;;  %v1478_v36 = vshll.u32 %v3445_v19, 16 }
  0x6c   : > { %4009 = vmatprep.subr.bf16.mxu1 %v4242_v55  ;;  %v3524_v49 = vcombine.low %v1839_v32, %v1842_v38  ;;  %v1443_v57 = vor.u32 %v1442_v5, %v1438_v52  ;;  %v3446_v22 = vld [vmem:[%s4426_s11 + $0x34] sm:$0xf]  ;;  %v1475_v32 = vshrl.u32 %v3445_v19, 16 }
  0x6d   : > { %3930 = vmatmul.mubr.bf16.gmra.mxu0 %v3375_v3  ;;  %v1484_v41 = vshll.u32 %v3446_v22, 16  ;;  %v1480_v50 = vrot.slane %v1478_v36, 5 }
  0x6e   : > { %3962 = vmatmul.mubr.bf16.gmra.mxu1 %v4240_v61  ;;  %3978 = vmatpush3.bf16.msra.mxu0 %v4241_v0  ;;  %v4249_v61 = vld [vmem:[%s5408_s1 + $0x100] sm:$0xff]   ;;  %v1434_v0 = vrot.slane %v1433_v45, 4  ;;  %v1444_v3 = vrot.slane %v1443_v57, 4  ;;  %v1477_v40 = vrot.slane %v1475_v32, 4  ;;  %v3448_v57 = vld [vmem:[%s4426_s11 + $0x3c] sm:$0xf] }
  0x6f   : > { %4010 = vmatpush3.bf16.msra.mxu1 %v4242_v55  ;;  %3965 = vmatprep.mubr.bf16.mxu1 %v4245_v4  ;;  %v1425_v55 = vsel %vm4469_vm2, %v1420_v39, %v1424_v28  ;;  %v4252_v4 = vld [vmem:[%s5408_s1 + $0x1f8] sm:$0xff]   ;;  %v4256_v39 = vld [vmem:[%s5408_s1 + $0x1e8] sm:$0xff]   ;;  %v1486_v53 = vrot.slane %v1484_v41, 5  ;;  %v1499_v1 = vshrl.u32 %v3448_v57, 16 }
  0x70   : > { %4011 = vmatprep.subr.bf16.mxu1 %v4244_v47  ;;  %3979 = vmatprep.subr.bf16.mxu0 %v4243_v6  ;;  %v3476_v14 = vcombine.low %v1415_v56, %v1425_v55  ;;  %v1449_v63 = vsel %vm4469_vm2, %v1444_v3, %v1448_v59  ;;  %v4825_v28 = vld [vmem:[%s4426_s11 + $0x38] sm:$0x1]  ;;  %v1481_v51 = vor.u32 %v1480_v50, %v1477_v40  ;;  %v3503_v55 = vrot.slane %v3495_v34, 9  ;;  %v3497_v32 = vld [vmem:[%s4426_s11 + $0x48] sm:$0xe] }
  0x71   : > { %3933 = vmatprep.mubr.bf16.mxu0 %v3376_v58  ;;  %v1439_v58 = vsel %vm4469_vm2, %v1434_v0, %v1438_v52  ;;  %v1494_v25 = vshll.u32 %v4825_v28, 16  ;;  %v4255_v0 = vld [vmem:[%s5408_s1 + $0x1a8] sm:$0xff]  }
  0x72   : > { %3980 = vmatpush3.bf16.msra.mxu0 %v4243_v6  ;;  %v3443_v6 = vld [vmem:[%s4426_s11 + $0x28] sm:$0xf]  ;;  %v3477_v26 = vcombine.low %v1439_v58, %v1449_v63  ;;  %v1482_v3 = vrot.slane %v1481_v51, 4 }
  0x73   : > { %4012 = vmatpush3.bf16.msra.mxu1 %v4244_v47  ;;  %3981 = vmatprep.subr.bf16.mxu0 %v4247_v10  ;;  %v1847_v47 = vrot.slane %v1845_v42, 4  ;;  %v1460_v15 = vshll.u32 %v3443_v6, 16  ;;  %v1852_v46 = vrot.slane %v3443_v6, 5  ;;  %v1496_v42 = vrot.slane %v1494_v25, 5 }
  0x74   : > { %4013 = vmatprep.subr.bf16.mxu1 %v4248_v17  ;;  %v1487_v63 = vsel %vm4469_vm2, %v1482_v3, %v1486_v53 }
  0x75   : > { %3934 = vmatmul.mubr.bf16.gmra.mxu0 %v3377_v7  ;;  %v1849_v8 = vsel %vm4642_vm5, %v1847_v47, %v1848_v60  ;;  %v1464_v7 = vshrl.u32 %v3443_v6, 16  ;;  %v1462_v23 = vrot.slane %v1460_v15, 5  ;;  %v1854_v48 = vrot.slane %v1852_v46, 4  ;;  %v3449_v47 = vld [vmem:[%s4426_s11 + $0x40] sm:$0xf] }
  0x76   : > { %3966 = vmatmul.mubr.bf16.gmra.mxu1 %v4246_v54  ;;  %3982 = vmatpush3.bf16.msra.mxu0 %v4247_v10  ;;  %v3525_v18 = vcombine.low %v1846_v2, %v1849_v8  ;;  %v1453_v54 = vrot.slane %v1451_v13, 4  ;;  %v1472_v10 = vrot.slane %v1470_v21, 5  ;;  %v4258_v2 = vld [vmem:[%s5408_s1 + $0x1e0] sm:$0xff]   ;;  %v1502_v6 = vshll.u32 %v3448_v57, 16  ;;  %v3452_v21 = vld [vmem:[%s4426_s11 + $0x4c] sm:$0xf] }
  0x77   : > { %4014 = vmatpush3.bf16.msra.mxu1 %v4248_v17  ;;  %4017 = vmatprep.mubr.bf16.mxu1 %v3524_v49  ;;  %v3494_v17 = vld [vmem:[%s4426_s11 + $0x24] sm:$0xe]  ;;  %v1466_v24 = vrot.slane %v1464_v7, 4  ;;  %v1856_v49 = vsel %vm4642_vm5, %v1854_v48, %v1855_v31  ;;  %v1508_v58 = vshll.u32 %v3449_v47, 16  ;;  %v1512_v16 = vshrl.u32 %v3449_v47, 16 }
  0x78   : > { %4015 = vmatprep.subr.bf16.mxu1 %v4250_v43  ;;  %3983 = vmatprep.subr.bf16.mxu0 %v4249_v61  ;;  %v3502_v27 = vrot.slane %v3494_v17, 9  ;;  %v1457_v29 = vor.u32 %v1456_v9, %v1453_v54  ;;  %v3496_v17 = vld [vmem:[%s4426_s11 + $0x3c] sm:$0xe]  ;;  %v1504_v15 = vrot.slane %v1502_v6, 5  ;;  %v3451_v9 = vld [vmem:[%s4426_s11 + $0x48] sm:$0xf] }
  0x79   : > { %3985 = vmatprep.mubr.bf16.mxu0 %v3476_v14  ;;  %v1467_v62 = vor.u32 %v1466_v24, %v1462_v23  ;;  %v1862_v14 = vrot.slane %v4825_v28, 5  ;;  %v1510_v7 = vrot.slane %v1508_v58, 5  ;;  %v4260_v28 = vld [vmem:[%s5408_s1 + $0x1d8] sm:$0xff]   ;;  %v1532_v48 = vshll.u32 %v3452_v21, 16  ;;  %v3454_v57 = vld [vmem:[%s4426_s11 + $0x54] sm:$0xf] }
  0x7a   : > { %3984 = vmatpush3.bf16.msra.mxu0 %v4249_v61  ;;  %v1853_v35 = vsel %vm4642_vm5, %v3502_v27, %v1852_v46  ;;  %v1458_v38 = vrot.slane %v1457_v29, 4  ;;  %v1859_v61 = vrot.slane %v3446_v22, 5  ;;  %v3504_v27 = vrot.slane %v3496_v17, 9  ;;  %v4868_v46 = vld [vmem:[%s4426_s11 + $0x50] sm:$0x1] }
  0x7b   : > { %4016 = vmatpush3.bf16.msra.mxu1 %v4250_v43  ;;  %4033 = vmatprep.subr.bf16.mxu0 %v4251_v11  ;;  %v1488_v43 = vshrl.u32 %v3446_v22, 16  ;;  %v1468_v44 = vrot.slane %v1467_v62, 4  ;;  %v3526_v5 = vcombine.low %v1853_v35, %v1856_v49  ;;  %v1523_v62 = vshrl.u32 %v3451_v9, 16  ;;  %v3498_v17 = vld [vmem:[%s4426_s11 + $0x54] sm:$0xe] }
  0x7c   : > { %4065 = vmatprep.subr.bf16.mxu1 %v4252_v4  ;;  %v1463_v52 = vsel %vm4469_vm2, %v1458_v38, %v1462_v23  ;;  %v1860_v12 = vsel %vm4642_vm5, %v3503_v55, %v1859_v61  ;;  %v1861_v13 = vrot.slane %v1859_v61, 4  ;;  %v1526_v35 = vshll.u32 %v3451_v9, 16  ;;  %v3457_v9 = vld [vmem:[%s4426_s11 + $0x60] sm:$0xf] }
  0x7d   : > { %3986 = vmatmul.mubr.bf16.vlgmr.msra.gmra.mxu0 %v3477_v26  ;;  %v1490_v56 = vrot.slane %v1488_v43, 4  ;;  %v1473_v45 = vsel %vm4469_vm2, %v1468_v44, %v1472_v10  ;;  %v1866_v10 = vrot.slane %v3449_v47, 5  ;;  %v1536_v41 = vshrl.u32 %v3452_v21, 16  ;;  %v4259_v43 = vld [vmem:[%s5408_s1 + $0x198] sm:$0xff]   ;;  %v4264_v47 = vld [vmem:[%s5408_s1 + $0x1c8] sm:$0xff]  }
  0x7e   : > { %4018 = vmatmul.mubr.bf16.vlgmr.msra.gmra.mxu1 %v3525_v18  ;;  %4034 = vmatpush3.bf16.msra.mxu0 %v4251_v11  ;;  %v3478_v59 = vcombine.low %v1463_v52, %v1473_v45  ;;  %v4257_v18 = vld [vmem:[%s5408_s1 + $0x1a0] sm:$0xff]   ;;  %v1501_v11 = vrot.slane %v1499_v1, 4  ;;  %v1863_v26 = vsel %vm4642_vm5, %v1861_v13, %v1862_v14  ;;  %v1525_v49 = vrot.slane %v1523_v62, 4 }
  0x7f   : > { %4066 = vmatpush3.bf16.msra.mxu1 %v4252_v4  ;;  %4035 = vmatprep.subr.bf16.mxu0 %v4253_v30  ;;  %v1491_v60 = vor.u32 %v1490_v56, %v1486_v53  ;;  %v3450_v4 = vld [vmem:[%s4426_s11 + $0x44] sm:$0x1]  ;;  %v3527_v23 = vcombine.low %v1860_v12, %v1863_v26  ;;  %v1867_v38 = vsel %vm4642_vm5, %v3504_v27, %v1866_v10  ;;  %v1868_v40 = vrot.slane %v1866_v10, 4 }
  0x80   : > { %4067 = vmatprep.subr.bf16.mxu1 %v4254_v20  ;;  %4021 = vmatprep.mubr.bf16.mxu1 %v3526_v5  ;;  %v1518_v54 = vshll.u32 %v3450_v4, 16  ;;  %v1505_v24 = vor.u32 %v1504_v15, %v1501_v11  ;;  %v1869_v31 = vrot.slane %v3450_v4, 5  ;;  %v1528_v50 = vrot.slane %v1526_v35, 5  ;;  %v3456_v4 = vld [vmem:[%s4426_s11 + $0x5c] sm:$0x1] }
  0x81   : > { %3989 = vmatprep.mubr.bf16.mxu0 %v3478_v59  ;;  %v1492_v8 = vrot.slane %v1491_v60, 4  ;;  %v1534_v25 = vrot.slane %v1532_v48, 5  ;;  %v1538_v53 = vrot.slane %v1536_v41, 4  ;;  %v1542_v56 = vshll.u32 %v4868_v46, 16  ;;  %v3455_v59 = vld [vmem:[%s4426_s11 + $0x58] sm:$0xf] }
  0x82   : > { %4036 = vmatpush3.bf16.msra.mxu0 %v4253_v30  ;;  %v1520_v29 = vrot.slane %v1518_v54, 5  ;;  %v1506_v34 = vrot.slane %v1505_v24, 4  ;;  %v1870_v5 = vsel %vm4642_vm5, %v1868_v40, %v1869_v31  ;;  %v3505_v55 = vrot.slane %v3497_v32, 9  ;;  %v3499_v32 = vld [vmem:[%s4426_s11 + $0x60] sm:$0xe] }
  0x83   : > { %4068 = vmatpush3.bf16.msra.mxu1 %v4254_v20  ;;  %v1497_v19 = vsel %vm4469_vm2, %v1492_v8, %v1496_v42  ;;  %4037 = vmatprep.subr.bf16.mxu0 %v4255_v0  ;;  %v1514_v20 = vrot.slane %v1512_v16, 4  ;;  %v3528_v51 = vcombine.low %v1867_v38, %v1870_v5  ;;  %v1529_v42 = vor.u32 %v1528_v50, %v1525_v49 }
  0x84   : > { %4069 = vmatprep.subr.bf16.mxu1 %v4256_v39  ;;  %v3479_v22 = vcombine.low %v1487_v63, %v1497_v19  ;;  %v1511_v44 = vsel %vm4469_vm2, %v1506_v34, %v1510_v7  ;;  %v1539_v60 = vor.u32 %v1538_v53, %v1534_v25  ;;  %v1544_v61 = vrot.slane %v1542_v56, 5 }
  0x85   : > { %v1515_v30 = vor.u32 %v1514_v20, %v1510_v7  ;;  %v1873_v14 = vrot.slane %v3452_v21, 5  ;;  %v1530_v3 = vrot.slane %v1529_v42, 4  ;;  %v1547_v1 = vshrl.u32 %v3454_v57, 16  ;;  %v4263_v7 = vld [vmem:[%s5408_s1 + $0x188] sm:$0xff]   ;;  %v3458_v21 = vld [vmem:[%s4426_s11 + $0x64] sm:$0xf] }
  0x86   : > { %3990 = vmatmul.mubr.bf16.gmra.mxu0 %v3479_v22  ;;  %4022 = vmatmul.mubr.bf16.gmra.mxu1 %v3527_v23  ;;  %v1550_v6 = vshll.u32 %v3454_v57, 16  ;;  %v1556_v58 = vshll.u32 %v3455_v59, 16  ;;  %v1540_v8 = vrot.slane %v1539_v60, 4  ;;  %v1560_v16 = vshrl.u32 %v3455_v59, 16 }
  0x87   : > { %4070 = vmatpush3.bf16.msra.mxu1 %v4256_v39  ;;  %4038 = vmatpush3.bf16.msra.mxu0 %v4255_v0  ;;  %v1516_v36 = vrot.slane %v1515_v30, 4  ;;  %v4262_v39 = vld [vmem:[%s5408_s1 + $0x1d0] sm:$0xff]   ;;  %v1876_v0 = vrot.slane %v4868_v46, 5  ;;  %v1874_v12 = vsel %vm4642_vm5, %v3505_v55, %v1873_v14  ;;  %v1875_v13 = vrot.slane %v1873_v14, 4  ;;  %v4914_v46 = vld [vmem:[%s4426_s11 + $0x68] sm:$0x1] }
  0x88   : > { %4071 = vmatprep.subr.bf16.mxu1 %v4258_v2  ;;  %4039 = vmatprep.subr.bf16.mxu0 %v4257_v18  ;;  %v1535_v63 = vsel %vm4469_vm2, %v1530_v3, %v1534_v25  ;;  %v1552_v11 = vrot.slane %v1550_v6, 5  ;;  %v1558_v15 = vrot.slane %v1556_v58, 5  ;;  %v1545_v19 = vsel %vm4469_vm2, %v1540_v8, %v1544_v61  ;;  %v3590_v14 = vld [vmem:[%s4426_s11 + $0x18] sm:$0xf] }
  0x89   : > { %v1521_v52 = vsel %vm4469_vm2, %v1516_v36, %v1520_v29  ;;  %4025 = vmatprep.mubr.bf16.mxu1 %v3528_v51  ;;  %v1877_v26 = vsel %vm4642_vm5, %v1875_v13, %v1876_v0  ;;  %v1562_v20 = vrot.slane %v1560_v16, 4  ;;  %v1566_v54 = vshll.u32 %v3456_v4, 16 }
  0x8a   : > { %v3480_v45 = vcombine.low %v1511_v44, %v1521_v52  ;;  %v3481_v22 = vcombine.low %v1535_v63, %v1545_v19  ;;  %v3529_v23 = vcombine.low %v1874_v12, %v1877_v26  ;;  %v3506_v27 = vrot.slane %v3498_v17, 9  ;;  %v4267_v12 = vld [vmem:[%s4426_s11 + $0x18] sm:$0xff]   ;;  %v4960_v19 = vld [vmem:[%s4426_s11 + $0x28] sm:$0xf] }
  0x8b   : > { %4072 = vmatpush3.bf16.msra.mxu1 %v4258_v2  ;;  %4040 = vmatpush3.bf16.msra.mxu0 %v4257_v18  ;;  %v4261_v2 = vld [vmem:[%s5408_s1 + $0x190] sm:$0xff]   ;;  %v1549_v18 = vrot.slane %v1547_v1, 4  ;;  %v1563_v30 = vor.u32 %v1562_v20, %v1558_v15  ;;  %v1568_v29 = vrot.slane %v1566_v54, 5  ;;  %v1880_v10 = vrot.slane %v3455_v59, 5 }
  0x8c   : > { %4073 = vmatprep.subr.bf16.mxu1 %v4260_v28  ;;  %3993 = vmatprep.mubr.bf16.mxu0 %v3480_v45  ;;  %v1883_v31 = vrot.slane %v3456_v4, 5  ;;  %v1571_v62 = vshrl.u32 %v3457_v9, 16  ;;  %v1574_v35 = vshll.u32 %v3457_v9, 16  ;;  %v1580_v48 = vshll.u32 %v3458_v21, 16 }
  0x8d   : > { %4041 = vmatprep.subr.bf16.mxu0 %v4259_v43  ;;  %v1553_v24 = vor.u32 %v1552_v11, %v1549_v18  ;;  %v1564_v36 = vrot.slane %v1563_v30, 4  ;;  %v1881_v38 = vsel %vm4642_vm5, %v3506_v27, %v1880_v10  ;;  %v1882_v40 = vrot.slane %v1880_v10, 4 }
  0x8e   : > { %3994 = vmatmul.mubr.bf16.gmra.mxu0 %v3481_v22  ;;  %4026 = vmatmul.mubr.bf16.gmra.mxu1 %v3529_v23  ;;  %v1584_v41 = vshrl.u32 %v3458_v21, 16  ;;  %v1573_v49 = vrot.slane %v1571_v62, 4  ;;  %v1576_v50 = vrot.slane %v1574_v35, 5  ;;  %v1582_v25 = vrot.slane %v1580_v48, 5  ;;  %v4268_v62 = vld [vmem:[%s4426_s11 + $0x24] sm:$0xff]  }
  0x8f   : > { %4074 = vmatpush3.bf16.msra.mxu1 %v4260_v28  ;;  %4042 = vmatpush3.bf16.msra.mxu0 %v4259_v43  ;;  %v4266_v28 = vld [vmem:[%s5408_s1 + $0x1c0] sm:$0xff]   ;;  %v1554_v34 = vrot.slane %v1553_v24, 4  ;;  %v1569_v52 = vsel %vm4469_vm2, %v1564_v36, %v1568_v29  ;;  %v1884_v5 = vsel %vm4642_vm5, %v1882_v40, %v1883_v31  ;;  %v1590_v56 = vshll.u32 %v4914_v46, 16 }
  0x90   : > { %4075 = vmatprep.subr.bf16.mxu1 %v4262_v39  ;;  %4043 = vmatprep.subr.bf16.mxu0 %v4261_v2  ;;  %v4265_v43 = vld [vmem:[%s5408_s1 + $0x180] sm:$0xff]   ;;  %v1586_v53 = vrot.slane %v1584_v41, 4  ;;  %v3530_v51 = vcombine.low %v1881_v38, %v1884_v5  ;;  %v1577_v42 = vor.u32 %v1576_v50, %v1573_v49  ;;  %v3507_v55 = vrot.slane %v3499_v32, 9  ;;  %v3596_v41 = vld [vmem:[%s4426_s11 + $0x30] sm:$0xf] }
  0x91   : > { %v1559_v44 = vsel %vm4469_vm2, %v1554_v34, %v1558_v15  ;;  %v1592_v59 = vrot.slane %v1590_v56, 5  ;;  %v1887_v60 = vrot.slane %v3458_v21, 5  ;;  %v1890_v61 = vrot.slane %v4914_v46, 5  ;;  %v4963_v21 = vld [vmem:[%s4426_s11 + $0x2c] sm:$0x1]  ;;  %v4981_v50 = vld [vmem:[%s5408_s1 + $0x230] sm:$0xff]  }
  0x92   : > { %v3482_v45 = vcombine.low %v1559_v44, %v1569_v52  ;;  %v1587_v57 = vor.u32 %v1586_v53, %v1582_v25  ;;  %4029 = vmatprep.mubr.bf16.mxu1 %v3530_v51  ;;  %v1578_v0 = vrot.slane %v1577_v42, 4  ;;  %v2373_v3 = vshrl.u32 %v3590_v14, 16 }
  0x93   : > { %4076 = vmatpush3.bf16.msra.mxu1 %v4262_v39  ;;  %4044 = vmatpush3.bf16.msra.mxu0 %v4261_v2  ;;  %v4930_v39 = vld [vmem:[%s5408_s1 + $0x238] sm:$0xff]   ;;  %v1888_v1 = vsel %vm4642_vm5, %v3507_v55, %v1887_v60  ;;  %v1889_v6 = vrot.slane %v1887_v60, 4  ;;  %v2376_v58 = vshll.u32 %v3590_v14, 16  ;;  %v2410_v30 = vshrl.u32 %v4960_v19, 16 }
  0x94   : > { %4077 = vmatprep.subr.bf16.mxu1 %v4264_v47  ;;  %4045 = vmatprep.subr.bf16.mxu0 %v4263_v7  ;;  %v4940_v2 = vld [vmem:[%s4426_s11 + $0x1c] sm:$0xf]  ;;  %v1588_v4 = vrot.slane %v1587_v57, 4  ;;  %v1583_v8 = vsel %vm4469_vm2, %v1578_v0, %v1582_v25  ;;  %v2375_v13 = vrot.slane %v2373_v3, 4  ;;  %v2416_v29 = vshll.u32 %v4963_v21, 16 }
  0x95   : > { %3997 = vmatprep.mubr.bf16.mxu0 %v3482_v45  ;;  %v2382_v16 = vshll.u32 %v4940_v2, 16  ;;  %v2386_v17 = vshrl.u32 %v4940_v2, 16  ;;  %v1891_v18 = vsel %vm4642_vm5, %v1889_v6, %v1890_v61  ;;  %v2378_v11 = vrot.slane %v2376_v58, 5  ;;  %v4984_v25 = vld [vmem:[%s4426_s11 + $0x38] sm:$0x1]  ;;  %v4271_v45 = vld [vmem:[%s4426_s11 + $0x30] sm:$0xff]  }
  0x96   : > { %v1593_v63 = vsel %vm4469_vm2, %v1588_v4, %v1592_v59  ;;  %v3531_v20 = vcombine.low %v1888_v1, %v1891_v18  ;;  %v2412_v48 = vrot.slane %v2410_v30, 4  ;;  %v2418_v36 = vrot.slane %v2416_v29, 5  ;;  %v3599_v61 = vld [vmem:[%s4426_s11 + $0x3c] sm:$0xf]  ;;  %v4994_v4 = vld [vmem:[%s4426_s11 + $0x40] sm:$0xf] }
  0x97   : > { %4078 = vmatpush3.bf16.msra.mxu1 %v4264_v47  ;;  %4046 = vmatpush3.bf16.msra.mxu0 %v4263_v7  ;;  %v4943_v47 = vld [vmem:[%s4426_s11 + $0x20] sm:$0x1]  ;;  %v3593_v7 = vld [vmem:[%s4426_s11 + $0x24] sm:$0xf]  ;;  %v3483_v26 = vcombine.low %v1583_v8, %v1593_v63  ;;  %v2384_v54 = vrot.slane %v2382_v16, 5  ;;  %v2388_v9 = vrot.slane %v2386_v17, 4  ;;  %v2379_v22 = vor.u32 %v2378_v11, %v2375_v13 }
  0x98   : > { %4079 = vmatprep.subr.bf16.mxu1 %v4266_v28  ;;  %4047 = vmatprep.subr.bf16.mxu0 %v4265_v43  ;;  %v2392_v15 = vshll.u32 %v4943_v47, 16  ;;  %v2397_v24 = vshrl.u32 %v3593_v7, 16  ;;  %v2400_v27 = vshll.u32 %v3593_v7, 16  ;;  %v2421_v52 = vshrl.u32 %v3596_v41, 16  ;;  %v4997_v1 = vld [vmem:[%s4426_s11 + $0x44] sm:$0x1] }
  0x99   : > { %3998 = vmatmul.mubr.bf16.gmra.mxu0 %v3483_v26  ;;  %4030 = vmatmul.mubr.bf16.gmra.mxu1 %v3531_v20  ;;  %v2389_v46 = vor.u32 %v2388_v9, %v2384_v54  ;;  %v2380_v10 = vrot.slane %v2379_v22, 4  ;;  %v2424_v5 = vshll.u32 %v3596_v41, 16  ;;  %v2440_v60 = vshll.u32 %v4984_v25, 16  ;;  %v5004_v13 = vld [vmem:[%s5408_s1 + $0x228] sm:$0xff]  }
  0x9a   : > { %v2394_v23 = vrot.slane %v2392_v15, 5  ;;  %4049 = vmatprep.mubr.bf16.mxu0 %v4267_v12  ;;  %v2399_v31 = vrot.slane %v2397_v24, 4  ;;  %v2402_v32 = vrot.slane %v2400_v27, 5  ;;  %v2423_v57 = vrot.slane %v2421_v52, 4  ;;  %v5018_v30 = vld [vmem:[%s4426_s11 + $0x4c] sm:$0xf] }
  0x9b   : > { %4080 = vmatpush3.bf16.msra.mxu1 %v4266_v28  ;;  %4048 = vmatpush3.bf16.msra.mxu0 %v4265_v43  ;;  %v2406_v28 = vshll.u32 %v4960_v19, 16  ;;  %v2390_v34 = vrot.slane %v2389_v46, 4  ;;  %v2385_v38 = vsel %vm4469_vm2, %v2380_v10, %v2384_v54  ;;  %v4974_v43 = vld [vmem:[%s4426_s11 + $0x34] sm:$0xf]  ;;  %v2426_v59 = vrot.slane %v2424_v5, 5  ;;  %v4272_v54 = vld [vmem:[%s4426_s11 + $0x3c] sm:$0xff]  }
  0x9c   : > { %4129 = vmatprep.subr.bf16.mxu1 %v4930_v39  ;;  %4097 = vmatprep.subr.bf16.mxu0 %v4930_v39  ;;  %v2403_v40 = vor.u32 %v2402_v32, %v2399_v31  ;;  %v2430_v51 = vshll.u32 %v4974_v43, 16  ;;  %v2434_v42 = vshrl.u32 %v4974_v43, 16  ;;  %v2442_v8 = vrot.slane %v2440_v60, 5  ;;  %v4275_v46 = vld [vmem:[%s4426_s11 + $0x48] sm:$0xff]   ;;  %v5030_v31 = vld [vmem:[%s4426_s11 + $0x50] sm:$0x1] }
  0x9d   : > { %v2408_v35 = vrot.slane %v2406_v28, 5  ;;  %v2395_v44 = vsel %vm4469_vm2, %v2390_v34, %v2394_v23  ;;  %v2427_v58 = vor.u32 %v2426_v59, %v2423_v57  ;;  %v2445_v12 = vshrl.u32 %v3599_v61, 16  ;;  %v3602_v28 = vld [vmem:[%s4426_s11 + $0x48] sm:$0xf]  ;;  %v5038_v52 = vld [vmem:[%s4426_s11 + $0x58] sm:$0xf] }
  0x9e   : > { %v3630_v53 = vcombine.low %v2385_v38, %v2395_v44  ;;  %v2404_v56 = vrot.slane %v2403_v40, 4  ;;  %v2432_v0 = vrot.slane %v2430_v51, 5  ;;  %v2436_v3 = vrot.slane %v2434_v42, 4  ;;  %v3605_v38 = vld [vmem:[%s4426_s11 + $0x54] sm:$0xf] }
  0x9f   : > { %v2413_v49 = vor.u32 %v2412_v48, %v2408_v35  ;;  %v2448_v63 = vshll.u32 %v3599_v61, 16  ;;  %v2454_v18 = vshll.u32 %v4994_v4, 16  ;;  %v2428_v11 = vrot.slane %v2427_v58, 4 }
  0xa0   : > { %4081 = vmatprep.mubr.bf16.mxu1 %v3630_v53  ;;  %v2409_v14 = vsel %vm4469_vm2, %v2404_v56, %v2408_v35  ;;  %v2437_v17 = vor.u32 %v2436_v3, %v2432_v0  ;;  %v2447_v15 = vrot.slane %v2445_v12, 4  ;;  %v2458_v7 = vshrl.u32 %v4994_v4, 16  ;;  %v4277_v12 = vld [vmem:[%s5408_s1 + $0x218] sm:$0xff]  }
  0xa1   : > { %v2414_v55 = vrot.slane %v2413_v49, 4  ;;  %4050 = vmatmul.mubr.bf16.vlgmr.msra.gmra.mxu0 %v4268_v62  ;;  %v2464_v26 = vshll.u32 %v4997_v1, 16  ;;  %v2450_v9 = vrot.slane %v2448_v63, 5  ;;  %v2456_v22 = vrot.slane %v2454_v18, 5 }
  0xa2   : > { %4098 = vmatpush3.bf16.msra.mxu0 %v4930_v39  ;;  %4053 = vmatprep.mubr.bf16.mxu0 %v4271_v45  ;;  %v2438_v20 = vrot.slane %v2437_v17, 4  ;;  %v2433_v23 = vsel %vm4469_vm2, %v2428_v11, %v2432_v0  ;;  %v2460_v24 = vrot.slane %v2458_v7, 4  ;;  %v2469_v32 = vshrl.u32 %v3602_v28, 16  ;;  %v5042_v45 = vld [vmem:[%s4426_s11 + $0x5c] sm:$0x1] }
  0xa3   : > { %v2419_v6 = vsel %vm4469_vm2, %v2414_v55, %v2418_v36  ;;  %4099 = vmatprep.subr.bf16.mxu0 %v4981_v50  ;;  %v2466_v27 = vrot.slane %v2464_v26, 5  ;;  %v2451_v10 = vor.u32 %v2450_v9, %v2447_v15  ;;  %v2472_v34 = vshll.u32 %v3602_v28, 16 }
  0xa4   : > { %v3631_v16 = vcombine.low %v2409_v14, %v2419_v6  ;;  %v2443_v29 = vsel %vm4469_vm2, %v2438_v20, %v2442_v8  ;;  %v2461_v35 = vor.u32 %v2460_v24, %v2456_v22  ;;  %v2478_v48 = vshll.u32 %v5018_v30, 16  ;;  %v4276_v6 = vld [vmem:[%s4426_s11 + $0x54] sm:$0xff]   ;;  %v3608_v20 = vld [vmem:[%s4426_s11 + $0x60] sm:$0xf] }
  0xa5   : > { %v3632_v62 = vcombine.low %v2433_v23, %v2443_v29  ;;  %v2482_v36 = vshrl.u32 %v5018_v30, 16  ;;  %v2452_v40 = vrot.slane %v2451_v10, 4  ;;  %v2471_v41 = vrot.slane %v2469_v32, 4  ;;  %v4279_v24 = vld [vmem:[%s4426_s11 + $0x60] sm:$0xff]  }
  0xa6   : > { %4082 = vmatmul.mubr.bf16.vlgmr.msra.gmra.mxu1 %v3631_v16  ;;  %4100 = vmatpush3.bf16.msra.mxu0 %v4981_v50  ;;  %v2474_v44 = vrot.slane %v2472_v34, 5  ;;  %v2488_v49 = vshll.u32 %v5030_v31, 16  ;;  %v2462_v5 = vrot.slane %v2461_v35, 4  ;;  %v2480_v53 = vrot.slane %v2478_v48, 5 }
  0xa7   : > { %4137 = vmatpush3.bf16.msra.mxu1 %v4930_v39  ;;  %v5027_v39 = vld [vmem:[%s5408_s1 + $0x220] sm:$0xff]   ;;  %4101 = vmatprep.subr.bf16.mxu0 %v5004_v13  ;;  %v2484_v56 = vrot.slane %v2482_v36, 4  ;;  %v2493_v51 = vshrl.u32 %v3605_v38, 16  ;;  %v2457_v42 = vsel %vm4469_vm2, %v2452_v40, %v2456_v22  ;;  %v2496_v59 = vshll.u32 %v3605_v38, 16  ;;  %v3611_v36 = vld [vmem:[%s4426_s11 + $0x6c] sm:$0xf] }
  0xa8   : > { %4130 = vmatprep.subr.bf16.mxu1 %v4981_v50  ;;  %4085 = vmatprep.mubr.bf16.mxu1 %v3632_v62  ;;  %v2475_v55 = vor.u32 %v2474_v44, %v2471_v41  ;;  %v2490_v57 = vrot.slane %v2488_v49, 5  ;;  %v2502_v14 = vshll.u32 %v5038_v52, 16  ;;  %v2506_v8 = vshrl.u32 %v5038_v52, 16  ;;  %v5092_v44 = vld [vmem:[%s4426_s11 + $0x70] sm:$0xf] }
  0xa9   : > { %4054 = vmatmul.mubr.bf16.gmra.mxu0 %v4272_v54  ;;  %v2485_v60 = vor.u32 %v2484_v56, %v2480_v53  ;;  %v2495_v61 = vrot.slane %v2493_v51, 4  ;;  %v2498_v58 = vrot.slane %v2496_v59, 5  ;;  %v2512_v63 = vshll.u32 %v5042_v45, 16  ;;  %v5071_v54 = vld [vmem:[%s4426_s11 + $0x64] sm:$0xf] }
  0xaa   : > { %4102 = vmatpush3.bf16.msra.mxu0 %v5004_v13  ;;  %4057 = vmatprep.mubr.bf16.mxu0 %v4275_v46  ;;  %v2476_v3 = vrot.slane %v2475_v55, 4  ;;  %v2504_v17 = vrot.slane %v2502_v14, 5  ;;  %v2843_v18 = vrot.slane %v5038_v52, 5  ;;  %v2508_v7 = vrot.slane %v2506_v8, 4  ;;  %v5095_v49 = vld [vmem:[%s4426_s11 + $0x74] sm:$0x1] }
  0xab   : > { %4138 = vmatpush3.bf16.msra.mxu1 %v4981_v50  ;;  %v2467_v50 = vsel %vm4469_vm2, %v2462_v5, %v2466_v27  ;;  %4103 = vmatprep.subr.bf16.mxu0 %v5027_v39  ;;  %v2486_v16 = vrot.slane %v2485_v60, 4  ;;  %v2499_v15 = vor.u32 %v2498_v58, %v2495_v61  ;;  %v2846_v26 = vrot.slane %v5042_v45, 5  ;;  %v5082_v27 = vld [vmem:[%s4426_s11 + $0x68] sm:$0x1] }
  0xac   : > { %4131 = vmatprep.subr.bf16.mxu1 %v5004_v13  ;;  %v3633_v0 = vcombine.low %v2457_v42, %v2467_v50  ;;  %v2481_v11 = vsel %vm4469_vm2, %v2476_v3, %v2480_v53  ;;  %v2514_v22 = vrot.slane %v2512_v63, 5  ;;  %v5078_v23 = vrot.slane %v2843_v18, 4 }
  0xad   : > { %v2491_v9 = vsel %vm4469_vm2, %v2486_v16, %v2490_v57  ;;  %v2517_v46 = vshrl.u32 %v3608_v20, 16  ;;  %v2500_v29 = vrot.slane %v2499_v15, 4  ;;  %v2509_v10 = vor.u32 %v2508_v7, %v2504_v17  ;;  %v3650_v15 = vld [vmem:[%s4426_s11 + $0x48] sm:$0xe] }
  0xae   : > { %4086 = vmatmul.mubr.bf16.gmra.mxu1 %v3633_v0  ;;  %4104 = vmatpush3.bf16.msra.mxu0 %v5027_v39  ;;  %v3634_v28 = vcombine.low %v2481_v11, %v2491_v9  ;;  %v2520_v32 = vshll.u32 %v3608_v20, 16  ;;  %v2526_v62 = vshll.u32 %v5071_v54, 16  ;;  %v2530_v35 = vshrl.u32 %v5071_v54, 16  ;;  %v3646_v0 = vld [vmem:[%s4426_s11 + $0x18] sm:$0xe] }
  0xaf   : > { %4139 = vmatpush3.bf16.msra.mxu1 %v5004_v13  ;;  %v5067_v13 = vld [vmem:[%s5408_s1 + $0x210] sm:$0xff]   ;;  %4105 = vmatprep.subr.bf16.mxu0 %v4277_v12  ;;  %v2519_v34 = vrot.slane %v2517_v46, 4  ;;  %v2536_v48 = vshll.u32 %v5082_v27, 16  ;;  %v2505_v38 = vsel %vm4469_vm2, %v2500_v29, %v2504_v17  ;;  %v2510_v40 = vrot.slane %v2509_v10, 4  ;;  %v3647_v46 = vld [vmem:[%s4426_s11 + $0x24] sm:$0xe] }
  0xb0   : > { %4132 = vmatprep.subr.bf16.mxu1 %v5027_v39  ;;  %4089 = vmatprep.mubr.bf16.mxu1 %v3634_v28  ;;  %v2522_v41 = vrot.slane %v2520_v32, 5  ;;  %v2528_v5 = vrot.slane %v2526_v62, 5  ;;  %v2532_v53 = vrot.slane %v2530_v35, 4  ;;  %v2541_v51 = vshrl.u32 %v3611_v36, 16  ;;  %v3651_v35 = vld [vmem:[%s4426_s11 + $0x54] sm:$0xe] }
  0xb1   : > { %4058 = vmatmul.mubr.bf16.gmra.mxu0 %v4276_v6  ;;  %v2538_v56 = vrot.slane %v2536_v48, 5  ;;  %v2515_v42 = vsel %vm4469_vm2, %v2510_v40, %v2514_v22  ;;  %v2544_v57 = vshll.u32 %v3611_v36, 16  ;;  %v2550_v59 = vshll.u32 %v5092_v44, 16  ;;  %v4280_v6 = vld [vmem:[%s4426_s11 + $0x6c] sm:$0xff]   ;;  %v4282_v22 = vld [vmem:[%s5408_s1 + $0x200] sm:$0xff]  }
  0xb2   : > { %4106 = vmatpush3.bf16.msra.mxu0 %v4277_v12  ;;  %4061 = vmatprep.mubr.bf16.mxu0 %v4279_v24  ;;  %v2523_v55 = vor.u32 %v2522_v41, %v2519_v34  ;;  %v3635_v50 = vcombine.low %v2505_v38, %v2515_v42  ;;  %v2533_v60 = vor.u32 %v2532_v53, %v2528_v5  ;;  %v2543_v61 = vrot.slane %v2541_v51, 4  ;;  %v3648_v40 = vld [vmem:[%s4426_s11 + $0x30] sm:$0xe] }
  0xb3   : > { %4140 = vmatpush3.bf16.msra.mxu1 %v5027_v39  ;;  %v5100_v39 = vld [vmem:[%s5408_s1 + $0x208] sm:$0xff]   ;;  %4107 = vmatprep.subr.bf16.mxu0 %v5067_v13  ;;  %v2554_v14 = vshrl.u32 %v5092_v44, 16  ;;  %v2546_v58 = vrot.slane %v2544_v57, 5  ;;  %v2552_v8 = vrot.slane %v2550_v59, 5  ;;  %v2560_v16 = vshll.u32 %v5095_v49, 16 }
  0xb4   : > { %4133 = vmatprep.subr.bf16.mxu1 %v4277_v12  ;;  %v2524_v3 = vrot.slane %v2523_v55, 4  ;;  %v2534_v17 = vrot.slane %v2533_v60, 4  ;;  %v3654_v63 = vrot.slane %v3646_v0, 9  ;;  %v2808_v11 = vrot.slane %v4940_v2, 5  ;;  %v3652_v60 = vld [vmem:[%s4426_s11 + $0x60] sm:$0xe] }
  0xb5   : > { %v2547_v20 = vor.u32 %v2546_v58, %v2543_v61  ;;  %v2562_v9 = vrot.slane %v2560_v16, 5  ;;  %v2811_v24 = vrot.slane %v4943_v47, 5  ;;  %v3658_v62 = vrot.slane %v3650_v15, 9  ;;  %v3653_v16 = vld [vmem:[%s4426_s11 + $0x6c] sm:$0xe] }
  0xb6   : > { %4090 = vmatmul.mubr.bf16.gmra.mxu1 %v3635_v50  ;;  %4108 = vmatpush3.bf16.msra.mxu0 %v5067_v13  ;;  %v2529_v7 = vsel %vm4469_vm2, %v2524_v3, %v2528_v5  ;;  %v2539_v2 = vsel %vm4469_vm2, %v2534_v17, %v2538_v56  ;;  %v2809_v29 = vsel %vm4642_vm5, %v3654_v63, %v2808_v11  ;;  %v2810_v10 = vrot.slane %v2808_v11, 4 }
  0xb7   : > { %4141 = vmatpush3.bf16.msra.mxu1 %v4277_v12  ;;  %v2556_v12 = vrot.slane %v2554_v14, 4  ;;  %4109 = vmatprep.subr.bf16.mxu0 %v5100_v39  ;;  %v3636_v32 = vcombine.low %v2529_v7, %v2539_v2  ;;  %v2548_v34 = vrot.slane %v2547_v20, 4  ;;  %v2836_v47 = vrot.slane %v5018_v30, 5 }
  0xb8   : > { %4134 = vmatprep.subr.bf16.mxu1 %v5067_v13  ;;  %v2839_v36 = vrot.slane %v5030_v31, 5  ;;  %v3655_v38 = vrot.slane %v3647_v46, 9  ;;  %v2815_v31 = vrot.slane %v4960_v19, 5  ;;  %v2818_v51 = vrot.slane %v4963_v21, 5  ;;  %v3649_v21 = vld [vmem:[%s4426_s11 + $0x3c] sm:$0xe] }
  0xb9   : > { %v2557_v28 = vor.u32 %v2556_v12, %v2552_v8  ;;  %4062 = vmatmul.mubr.bf16.gmra.mxu0 %v4280_v6  ;;  %4093 = vmatprep.mubr.bf16.mxu1 %v3636_v32  ;;  %v2553_v41 = vsel %vm4469_vm2, %v2548_v34, %v2552_v8  ;;  %v2837_v30 = vsel %vm4642_vm5, %v3658_v62, %v2836_v47  ;;  %v2838_v53 = vrot.slane %v2836_v47, 4 }
  0xba   : > { %4110 = vmatpush3.bf16.msra.mxu0 %v5100_v39  ;;  %v3659_v42 = vrot.slane %v3651_v35, 9  ;;  %v3656_v59 = vrot.slane %v3648_v40, 9  ;;  %v2822_v50 = vrot.slane %v4974_v43, 5  ;;  %v2817_v61 = vrot.slane %v2815_v31, 4 }
  0xbb   : > { %4142 = vmatpush3.bf16.msra.mxu1 %v5067_v13  ;;  %v2558_v48 = vrot.slane %v2557_v28, 4  ;;  %v2812_v13 = vsel %vm4642_vm5, %v2810_v10, %v2811_v24  ;;  %4111 = vmatprep.subr.bf16.mxu0 %v4282_v22  ;;  %v2840_v57 = vsel %vm4642_vm5, %v2838_v53, %v2839_v36  ;;  %v2847_v19 = vsel %vm4642_vm5, %v5078_v23, %v2846_v26 }
  0xbc   : > { %4135 = vmatprep.subr.bf16.mxu1 %v5100_v39  ;;  %v3678_v5 = vcombine.low %v2809_v29, %v2812_v13  ;;  %v3682_v37 = vcombine.low %v2837_v30, %v2840_v57  ;;  %v2844_v43 = vsel %vm4642_vm5, %v3659_v42, %v2843_v18  ;;  %v2823_v14 = vsel %vm4642_vm5, %v3656_v59, %v2822_v50 }
  0xbd   : > { %v2563_v56 = vsel %vm4469_vm2, %v2558_v48, %v2562_v9  ;;  %v2824_v0 = vrot.slane %v2822_v50, 4  ;;  %v2825_v3 = vrot.slane %v4984_v25, 5  ;;  %v2819_v45 = vsel %vm4642_vm5, %v2817_v61, %v2818_v51 }
  0xbe   : > { %v3637_v55 = vcombine.low %v2553_v41, %v2563_v56  ;;  %4113 = vmatprep.mubr.bf16.mxu0 %v3678_v5  ;;  %4112 = vmatpush3.bf16.msra.mxu0 %v4282_v22  ;;  %v3660_v26 = vrot.slane %v3652_v60, 9  ;;  %v2850_v23 = vrot.slane %v5071_v54, 5  ;;  %v2853_v6 = vrot.slane %v5082_v27, 5 }
  0xbf   : > { %4143 = vmatpush3.bf16.msra.mxu1 %v5100_v39  ;;  %v2816_v39 = vsel %vm4642_vm5, %v3655_v38, %v2815_v31  ;;  %v2826_v18 = vsel %vm4642_vm5, %v2824_v0, %v2825_v3  ;;  %v3657_v58 = vrot.slane %v3649_v21, 9  ;;  %v2829_v8 = vrot.slane %v4994_v4, 5 }
  0xc0   : > { %4136 = vmatprep.subr.bf16.mxu1 %v4282_v22  ;;  %4094 = vmatmul.mubr.bf16.gmra.mxu1 %v3637_v55  ;;  %v3679_v52 = vcombine.low %v2816_v39, %v2819_v45  ;;  %v3680_v17 = vcombine.low %v2823_v14, %v2826_v18  ;;  %v2851_v25 = vsel %vm4642_vm5, %v3660_v26, %v2850_v23  ;;  %v2852_v12 = vrot.slane %v2850_v23, 4 }
  0xc1   : > { %4121 = vmatprep.mubr.bf16.mxu1 %v3682_v37  ;;  %v2832_v63 = vrot.slane %v4997_v1, 5  ;;  %v3683_v11 = vcombine.low %v2844_v43, %v2847_v19  ;;  %v2831_v54 = vrot.slane %v2829_v8, 4  ;;  %v2857_v27 = vrot.slane %v5092_v44, 5 }
  0xc2   : > { %4114 = vmatmul.mubr.bf16.vlgmr.msra.gmra.mxu0 %v3679_v52  ;;  %v2854_v15 = vsel %vm4642_vm5, %v2852_v12, %v2853_v6  ;;  %v2830_v4 = vsel %vm4642_vm5, %v3657_v58, %v2829_v8  ;;  %v3661_v7 = vrot.slane %v3653_v16, 9  ;;  %v2860_v20 = vrot.slane %v5095_v49, 5 }
  0xc3   : > { %4144 = vmatpush3.bf16.msra.mxu1 %v4282_v22  ;;  %4117 = vmatprep.mubr.bf16.mxu0 %v3680_v17  ;;  %v3684_v9 = vcombine.low %v2851_v25, %v2854_v15  ;;  %v2833_v22 = vsel %vm4642_vm5, %v2831_v54, %v2832_v63  ;;  %v2859_v1 = vrot.slane %v2857_v27, 4 }
  0xc4   : > { %v3681_v24 = vcombine.low %v2830_v4, %v2833_v22  ;;  %v2858_v44 = vsel %vm4642_vm5, %v3661_v7, %v2857_v27 }
  0xc5   : > { %v2861_v46 = vsel %vm4642_vm5, %v2859_v1, %v2860_v20 }
  0xc6   : > { %v3685_v2 = vcombine.low %v2858_v44, %v2861_v46 }
  0xc8   : > { %4122 = vmatmul.mubr.bf16.vlgmr.msra.gmra.mxu1 %v3683_v11 }
  0xc9   : > { %4125 = vmatprep.mubr.bf16.mxu1 %v3684_v9 }
  0xca   : > { %4118 = vmatmul.mubr.bf16.gmra.mxu0 %v3681_v24 }
  0xd0   : > { %4126 = vmatmul.mubr.bf16.gmra.mxu1 %v3685_v2 }
  0xfd   : > { %v3859_v28 = vpop.f32.mrf.mxu0 }
  0xfe   : > { %v3891_v29 = vpop.f32.mrf.mxu1 }
  0xff   : > { %v785_v49 = vadd.f32 %v3891_v29, %v3859_v28  ;;  %v583_v10 = vpop.f32.mrf.mxu0 }
 0x100   : > { %v776_v32 = vpop.f32.mrf.mxu1 }
 0x101   : > { %v777_v34 = vadd.f32 %v776_v32, %v583_v10  ;;  %v3860_v62 = vpop.f32.mrf.mxu0 }
 0x102   : > { %v3892_v47 = vpop.f32.mrf.mxu1 }
 0x103   : > { %v788_v35 = vadd.f32 %v3892_v47, %v3860_v62  ;;  %v586_v48 = vpop.f32.mrf.mxu0 }
 0x104   : > { %v779_v13 = vpop.f32.mrf.mxu1 }
 0x105   : > { %v780_v36 = vadd.f32 %v779_v13, %v586_v48  ;;  %v3863_v38 = vpop.f32.mrf.mxu0 }
 0x106   : > { %v3895_v40 = vpop.f32.mrf.mxu1 }
 0x107   : > { %v801_v41 = vadd.f32 %v3895_v40, %v3863_v38  ;;  %v599_v33 = vpop.f32.mrf.mxu0 }
 0x108   : > { %v792_v5 = vpop.f32.mrf.mxu1 }
 0x109   : > { %v793_v30 = vadd.f32 %v792_v5, %v599_v33  ;;  %v3864_v53 = vpop.f32.mrf.mxu0 }
 0x10a   : > { %v3896_v56 = vpop.f32.mrf.mxu1 }
 0x10b   : > { %v804_v31 = vadd.f32 %v3896_v56, %v3864_v53  ;;  %v602_v51 = vpop.f32.mrf.mxu0 }
 0x10c   : > { %v795_v42 = vpop.f32.mrf.mxu1 }
 0x10d   : > { %v796_v55 = vadd.f32 %v795_v42, %v602_v51  ;;  %v3867_v59 = vpop.f32.mrf.mxu0 }
 0x10e   : > { %v3899_v57 = vpop.f32.mrf.mxu1 }
 0x10f   : > { %v817_v60 = vadd.f32 %v3899_v57, %v3867_v59  ;;  %v615_v37 = vpop.f32.mrf.mxu0 }
 0x110   : > { %v808_v50 = vpop.f32.mrf.mxu1 }
 0x111   : > { %v809_v61 = vadd.f32 %v808_v50, %v615_v37  ;;  %v3868_v19 = vpop.f32.mrf.mxu0 }
 0x112   : > { %v3900_v39 = vpop.f32.mrf.mxu1 }
 0x113   : > { %v820_v43 = vadd.f32 %v3900_v39, %v3868_v19  ;;  %v618_v14 = vpop.f32.mrf.mxu0 }
 0x114   : > { %v811_v21 = vpop.f32.mrf.mxu1 }
 0x115   : > { %v812_v3 = vadd.f32 %v811_v21, %v618_v14  ;;  %v3871_v26 = vpop.f32.mrf.mxu0 }
 0x116   : > { %v3903_v0 = vpop.f32.mrf.mxu1 }
 0x117   : > { %v833_v6 = vadd.f32 %v3903_v0, %v3871_v26  ;;  %v631_v52 = vpop.f32.mrf.mxu0 }
 0x118   : > { %v824_v45 = vpop.f32.mrf.mxu1 }
 0x119   : > { %v825_v58 = vadd.f32 %v824_v45, %v631_v52  ;;  %v3872_v8 = vpop.f32.mrf.mxu0 }
 0x11a   : > { %v3904_v23 = vpop.f32.mrf.mxu1 }
 0x11b   : > { %v836_v17 = vadd.f32 %v3904_v23, %v3872_v8  ;;  %v634_v25 = vpop.f32.mrf.mxu0 }
 0x11c   : > { %v827_v18 = vpop.f32.mrf.mxu1 }
 0x11d   : > { %v5186_v63 = vadd.f32 %v827_v18, %v634_v25  ;;  %v3923_v11 = vpop.f32.mrf.mxu0 }
 0x11e   : > { %v3955_v16 = vpop.f32.mrf.mxu1  ;;  %v1118_v27 = vadd.f32 %v3923_v11, %v785_v49 }
 0x11f   : > { %v1053_v15 = vpop.f32.mrf.mxu0 }
 0x120   : > { %v1299_v12 = vpop.f32.mrf.mxu1  ;;  %v5188_v7 = vadd.f32 %v3955_v16, %v1118_v27  ;;  %v1116_v20 = vadd.f32 %v1053_v15, %v777_v34 }
 0x121   : > { %v3924_v9 = vpop.f32.mrf.mxu0 }
 0x122   : > { %v3956_v54 = vpop.f32.mrf.mxu1  ;;  %v5190_v1 = vadd.f32 %v1299_v12, %v1116_v20  ;;  %v1119_v24 = vadd.f32 %v3924_v9, %v788_v35 }
 0x123   : > { %v1056_v44 = vpop.f32.mrf.mxu0 }
 0x124   : > { %v1302_v4 = vpop.f32.mrf.mxu1  ;;  %v5192_v2 = vadd.f32 %v3956_v54, %v1119_v24  ;;  %v1117_v28 = vadd.f32 %v1056_v44, %v780_v36 }
 0x125   : > { %v3927_v29 = vpop.f32.mrf.mxu0 }
 0x126   : > { %v3959_v22 = vpop.f32.mrf.mxu1  ;;  %v5194_v32 = vadd.f32 %v1302_v4, %v1117_v28  ;;  %v1122_v49 = vadd.f32 %v3927_v29, %v801_v41 }
 0x127   : > { %v1069_v62 = vpop.f32.mrf.mxu0 }
 0x128   : > { %v1315_v46 = vpop.f32.mrf.mxu1  ;;  %v5196_v48 = vadd.f32 %v3959_v22, %v1122_v49  ;;  %v1120_v34 = vadd.f32 %v1069_v62, %v793_v30 }
 0x129   : > { %v3928_v13 = vpop.f32.mrf.mxu0 }
 0x12a   : > { %v3960_v10 = vpop.f32.mrf.mxu1  ;;  %v5198_v40 = vadd.f32 %v1315_v46, %v1120_v34  ;;  %v1123_v35 = vadd.f32 %v3928_v13, %v804_v31 }
 0x12b   : > { %v1072_v33 = vpop.f32.mrf.mxu0 }
 0x12c   : > { %v1318_v47 = vpop.f32.mrf.mxu1  ;;  %v5200_v53 = vadd.f32 %v3960_v10, %v1123_v35  ;;  %v1121_v36 = vadd.f32 %v1072_v33, %v796_v55 }
 0x12d   : > { %v3931_v56 = vpop.f32.mrf.mxu0 }
 0x12e   : > { %v3963_v38 = vpop.f32.mrf.mxu1  ;;  %v5202_v42 = vadd.f32 %v1318_v47, %v1121_v36  ;;  %v1126_v41 = vadd.f32 %v3931_v56, %v817_v60 }
 0x12f   : > { %v1085_v57 = vpop.f32.mrf.mxu0 }
 0x130   : > { %v1331_v5 = vpop.f32.mrf.mxu1  ;;  %v5204_v50 = vadd.f32 %v3963_v38, %v1126_v41  ;;  %v1124_v30 = vadd.f32 %v1085_v57, %v809_v61 }
 0x131   : > { %v3932_v37 = vpop.f32.mrf.mxu0 }
 0x132   : > { %v3964_v51 = vpop.f32.mrf.mxu1  ;;  %v5206_v19 = vadd.f32 %v1331_v5, %v1124_v30  ;;  %v1127_v31 = vadd.f32 %v3932_v37, %v820_v43 }
 0x133   : > { %v1088_v21 = vpop.f32.mrf.mxu0 }
 0x134   : > { %v1334_v59 = vpop.f32.mrf.mxu1  ;;  %v5208_v0 = vadd.f32 %v3964_v51, %v1127_v31  ;;  %v1125_v55 = vadd.f32 %v1088_v21, %v812_v3 }
 0x135   : > { %v3935_v45 = vpop.f32.mrf.mxu0 }
 0x136   : > { %v3967_v39 = vpop.f32.mrf.mxu1  ;;  %v5210_v23 = vadd.f32 %v1334_v59, %v1125_v55  ;;  %v1130_v60 = vadd.f32 %v3935_v45, %v833_v6 }
 0x137   : > { %v1101_v52 = vpop.f32.mrf.mxu0 }
 0x138   : > { %v1347_v14 = vpop.f32.mrf.mxu1  ;;  %v5212_v8 = vadd.f32 %v3967_v39, %v1130_v60  ;;  %v1128_v61 = vadd.f32 %v1101_v52, %v825_v58 }
 0x139   : > { %v3936_v16 = vpop.f32.mrf.mxu0 }
 0x13a   : > { %v3968_v26 = vpop.f32.mrf.mxu1  ;;  %v5216_v12 = vadd.f32 %v1347_v14, %v1128_v61  ;;  %v1131_v43 = vadd.f32 %v3936_v16, %v836_v17 }
 0x13b   : > { %v1104_v11 = vpop.f32.mrf.mxu0 }
 0x13c   : > { %v1350_v18 = vpop.f32.mrf.mxu1  ;;  %v5220_v3 = vadd.f32 %v3968_v26, %v1131_v43  ;;  %v1129_v27 = vadd.f32 %v1104_v11, %v5186_v63 }
 0x13d   : > { %v3987_v15 = vpop.f32.mrf.mxu0 }
 0x13e   : > { %v5214_v25 = vpop.f32.mrf.mxu1  ;;  %v5223_v6 = vadd.f32 %v1350_v18, %v1129_v27 }
 0x13f   : > { %v1725_v20 = vpop.f32.mrf.mxu0 }
 0x140   : > { %v5218_v54 = vpop.f32.mrf.mxu1  ;;  %5415 = vst [vmem:[#allocation2_spill] sm:$0xff] %v5223_v6 }
 0x141   : > { %v3988_v58 = vpop.f32.mrf.mxu0 }
 0x142   : > { %v5225_v4 = vpop.f32.mrf.mxu1 }
 0x143   : > { %v1728_v22 = vpop.f32.mrf.mxu0 }
 0x144   : > { %v5227_v9 = vpop.f32.mrf.mxu1  ;;  %v1789_v6 = vadd.f32 %v1728_v22, %v5194_v32 }
 0x146   : > { %v3991_v24 = vpop.f32.mrf.mxu0  ;;  %v5229_v44 = vpop.f32.mrf.mxu1 }
 0x148   : > { %v1741_v17 = vpop.f32.mrf.mxu0  ;;  %v5231_v46 = vpop.f32.mrf.mxu1 }
 0x14a   : > { %v3992_v28 = vpop.f32.mrf.mxu0  ;;  %v5233_v29 = vpop.f32.mrf.mxu1 }
 0x14c   : > { %v5235_v63 = vpop.f32.mrf.mxu0  ;;  %v5237_v10 = vpop.f32.mrf.mxu1 }
 0x14d   : > { %5416 = vst [vmem:[#allocation3_spill] sm:$0xff] %v5237_v10  ;;  %v1790_v10 = vadd.f32 %v3987_v15, %v5188_v7  ;;  %v1794_v7 = vadd.f32 %v3991_v24, %v5196_v48  ;;  %v1792_v15 = vadd.f32 %v1741_v17, %v5198_v40  ;;  %v2087_v24 = vadd.f32 %v5227_v9, %v1789_v6 }
 0x14e   : > { %v3995_v49 = vpop.f32.mrf.mxu0  ;;  %v4027_v62 = vpop.f32.mrf.mxu1 }
 0x150   : > { %v1757_v47 = vpop.f32.mrf.mxu0  ;;  %v5239_v34 = vpop.f32.mrf.mxu1 }
 0x152   : > { %v3996_v13 = vpop.f32.mrf.mxu0  ;;  %v5241_v38 = vpop.f32.mrf.mxu1 }
 0x154   : > { %v1760_v35 = vpop.f32.mrf.mxu0  ;;  %v5243_v33 = vpop.f32.mrf.mxu1 }
 0x159   : > { %v5245_v5 = vpop.f32.mrf.mxu0  ;;  %v5247_v36 = vpop.f32.mrf.mxu1 }
 0x15a   : > { %5417 = vst [vmem:[#allocation4_spill] sm:$0xff] %v5247_v36  ;;  %v1802_v9 = vadd.f32 %v5245_v5, %v5212_v8 }
 0x15b   : > { %v5249_v56 = vpop.f32.mrf.mxu0  ;;  %v5251_v51 = vpop.f32.mrf.mxu1 }
 0x15c   : > { %5418 = vst [vmem:[#allocation5_spill] sm:$0xff] %v5251_v51 }
 0x15d   : > { %v5253_v41 = vpop.f32.mrf.mxu0  ;;  %v5255_v57 = vpop.f32.mrf.mxu1 }
 0x15e   : > { %5419 = vst [vmem:[#allocation6_spill] sm:$0xff] %v5255_v57 }
 0x15f   : > { %v5257_v59 = vpop.f32.mrf.mxu0  ;;  %v5259_v30 = vpop.f32.mrf.mxu1 }
 0x160   : > { %5420 = vst [vmem:[#allocation7_spill] sm:$0xff] %v5257_v59  ;;  %5421 = vst [vmem:[#allocation8_spill] sm:$0xff] %v5259_v30 }
 0x161   : > { %v4051_v37 = vpop.f32.mrf.mxu0 }
 0x163   : > { %v2269_v39 = vpop.f32.mrf.mxu0 }
 0x165   : > { %v4052_v21 = vpop.f32.mrf.mxu0 }
 0x166   : > { %v4083_v31 = vpop.f32.mrf.mxu1 }
 0x167   : > { %v2272_v55 = vpop.f32.mrf.mxu0 }
 0x168   : > { %v2695_v14 = vpop.f32.mrf.mxu1 }
 0x169   : > { %v5263_v60 = vpop.f32.mrf.mxu0 }
 0x16a   : > { %v4084_v45 = vpop.f32.mrf.mxu1  ;;  %5423 = vst [vmem:[#allocation10_spill] sm:$0xff] %v5263_v60 }
 0x16b   : > { %v5265_v52 = vpop.f32.mrf.mxu0 }
 0x16c   : > { %v5261_v26 = vpop.f32.mrf.mxu1  ;;  %5424 = vst [vmem:[#allocation11_spill] sm:$0xff] %v5265_v52 }
 0x16d   : > { %5422 = vst [vmem:[#allocation9_spill] sm:$0xff] %v5261_v26  ;;  %v5269_v61 = vpop.f32.mrf.mxu0 }
 0x16e   : > { %v5267_v18 = vpop.f32.mrf.mxu1  ;;  %5426 = vst [vmem:[#allocation13_spill] sm:$0xff] %v5269_v61  ;;  %v1788_v61 = vadd.f32 %v1725_v20, %v5190_v1  ;;  %v1796_v20 = vadd.f32 %v1757_v47, %v5206_v19 }
 0x16f   : > { %5425 = vst [vmem:[#allocation12_spill] sm:$0xff] %v5267_v18  ;;  %v5273_v43 = vpop.f32.mrf.mxu0 }
 0x170   : > { %v5271_v16 = vpop.f32.mrf.mxu1  ;;  %5428 = vst [vmem:[#allocation15_spill] sm:$0xff] %v5273_v43  ;;  %v1791_v43 = vadd.f32 %v3988_v58, %v5192_v2  ;;  %v2086_v1 = vadd.f32 %v5218_v54, %v1788_v61  ;;  %v1795_v2 = vadd.f32 %v3992_v28, %v5200_v53  ;;  %v2092_v54 = vadd.f32 %v5229_v44, %v1794_v7 }
 0x171   : > { %5427 = vst [vmem:[#allocation14_spill] sm:$0xff] %v5271_v16  ;;  %v4059_v27 = vpop.f32.mrf.mxu0  ;;  %v2090_v53 = vadd.f32 %v5231_v46, %v1792_v15  ;;  %v5434_v5 = vld [vmem:[#allocation10_spill] sm:$0xff] }
 0x172   : > { %v5275_v11 = vpop.f32.mrf.mxu1  ;;  %v2332_v22 = vadd.f32 %v2269_v39, %v2086_v1  ;;  %v2338_v39 = vadd.f32 %v5434_v5, %v2092_v54 }
 0x173   : > { %5429 = vst [vmem:[#allocation16_spill] sm:$0xff] %v5275_v11  ;;  %v2301_v57 = vpop.f32.mrf.mxu0  ;;  %v2088_v11 = vadd.f32 %v5214_v25, %v1790_v10  ;;  %v2089_v25 = vadd.f32 %v5225_v4, %v1791_v43  ;;  %v1797_v10 = vadd.f32 %v1760_v35, %v5210_v23  ;;  %v2093_v4 = vadd.f32 %v5233_v29, %v1795_v2  ;;  %v5437_v61 = vld [vmem:[#allocation11_spill] sm:$0xff]  ;;  %v5440_v2 = vld [vmem:[#allocation6_spill] sm:$0xff] }
 0x174   : > { %v5277_v30 = vpop.f32.mrf.mxu1  ;;  %v2758_v47 = vadd.f32 %v2695_v14, %v2332_v22  ;;  %v2333_v29 = vadd.f32 %v2272_v55, %v2087_v24  ;;  %v1800_v35 = vadd.f32 %v5249_v56, %v5216_v12  ;;  %v5435_v14 = vld [vmem:[#allocation3_spill] sm:$0xff]  ;;  %v5436_v12 = vld [vmem:[#allocation4_spill] sm:$0xff] }
 0x175   : > { %5430 = vst [vmem:[#allocation17_spill] sm:$0xff] %v5277_v30  ;;  %v4060_v51 = vpop.f32.mrf.mxu0  ;;  %v1798_v30 = vadd.f32 %v3995_v49, %v5204_v50  ;;  %v2334_v58 = vadd.f32 %v4051_v37, %v2088_v11  ;;  %v1799_v50 = vadd.f32 %v3996_v13, %v5208_v0  ;;  %v2335_v19 = vadd.f32 %v4052_v21, %v2089_v25  ;;  %v5438_v11 = vld [vmem:[#allocation9_spill] sm:$0xff] }
 0x176   : > { %v4091_v26 = vpop.f32.mrf.mxu1  ;;  %v2094_v0 = vadd.f32 %v5239_v34, %v1796_v20  ;;  %v1793_v49 = vadd.f32 %v5235_v63, %v5202_v42  ;;  %v2095_v6 = vadd.f32 %v5243_v33, %v1797_v10  ;;  %v1803_v42 = vadd.f32 %v5253_v41, %v5220_v3  ;;  %v5432_v63 = vld [vmem:[#allocation2_spill] sm:$0xff]  ;;  %v5443_v22 = vld [vmem:[#allocation12_spill] sm:$0xff] }
 0x177   : > { %v2304_v36 = vpop.f32.mrf.mxu0  ;;  %v2096_v40 = vadd.f32 %v4027_v62, %v1798_v30  ;;  %v2760_v23 = vadd.f32 %v4083_v31, %v2334_v58  ;;  %v2097_v62 = vadd.f32 %v5241_v38, %v1799_v50  ;;  %v5433_v38 = vld [vmem:[#allocation7_spill] sm:$0xff]  ;;  %v2761_v30 = vadd.f32 %v4084_v45, %v2335_v19  ;;  %v5441_v58 = vld [vmem:[#allocation8_spill] sm:$0xff] }
 0x178   : > { %v2727_v52 = vpop.f32.mrf.mxu1  ;;  %v2340_v13 = vadd.f32 %v2301_v57, %v2094_v0  ;;  %v1801_v33 = vadd.f32 %v5433_v38, %v5432_v63  ;;  %v2091_v55 = vadd.f32 %v5435_v14, %v1793_v49  ;;  %v2100_v56 = vadd.f32 %v5436_v12, %v1802_v9  ;;  %v5444_v19 = vld [vmem:[#allocation14_spill] sm:$0xff] }
 0x179   : > { %v5280_v60 = vpop.f32.mrf.mxu0  ;;  %v2342_v28 = vadd.f32 %v4059_v27, %v2096_v40  ;;  %v2343_v21 = vadd.f32 %v4060_v51, %v2097_v62  ;;  %v2336_v3 = vadd.f32 %v5437_v61, %v2090_v53  ;;  %v2341_v41 = vadd.f32 %v2304_v36, %v2095_v6 }
 0x17a   : > { %5431 = vst [vmem:[#allocation18_spill] sm:$0xff] %v5280_v60  ;;  %v5283_v18 = vpop.f32.mrf.mxu1  ;;  %v2759_v27 = vadd.f32 %v5438_v11, %v2333_v29  ;;  %v2766_v7 = vadd.f32 %v2727_v52, %v2340_v13  ;;  %v2101_v20 = vadd.f32 %v5440_v2, %v1803_v42  ;;  %v2099_v25 = vadd.f32 %v5441_v58, %v1801_v33  ;;  %v5446_v13 = vld [vmem:[#allocation15_spill] sm:$0xff]  ;;  %v5447_v5 = vld [vmem:[#allocation16_spill] sm:$0xff] }
 0x17b   : > { %v5286_v16 = vpop.f32.mrf.mxu0  ;;  %v2768_v31 = vadd.f32 %v4091_v26, %v2342_v28  ;;  %v5439_v26 = vld [vmem:[#allocation5_spill] sm:$0xff]  ;;  %v2764_v24 = vadd.f32 %v5443_v22, %v2338_v39  ;;  %v2769_v52 = vadd.f32 %v5283_v18, %v2343_v21  ;;  %v2762_v0 = vadd.f32 %v5444_v19, %v2336_v3 }
 0x17c   : > { %v5290_v59 = vpop.f32.mrf.mxu1  ;;  %v2098_v1 = vadd.f32 %v5439_v26, %v1800_v35  ;;  %v2337_v35 = vadd.f32 %v5446_v13, %v2091_v55 }
 0x17d   : > { %v5295_v60 = vpop.f32.mrf.mxu0  ;;  %v2767_v49 = vadd.f32 %v5290_v59, %v2341_v41 }
 0x17e   : > { %v2344_v62 = vadd.f32 %v5286_v16, %v2098_v1  ;;  %v2347_v59 = vadd.f32 %v5295_v60, %v2101_v20 }
 0x17f   : > { %v5305_v48 = vpop.f32.mrf.mxu0 }
 0x180   : > { %v5303_v32 = vpop.f32.mrf.mxu1  ;;  %v2345_v21 = vadd.f32 %v5305_v48, %v2099_v25 }
 0x181   : > { %v5442_v50 = vld [vmem:[#allocation18_spill] sm:$0xff] }
 0x182   : > { %v5310_v17 = vpop.f32.mrf.mxu1  ;;  %v4115_v46 = vpop.f32.mrf.mxu0  ;;  %v2346_v10 = vadd.f32 %v5442_v50, %v2100_v56  ;;  %v5448_v56 = vld [vmem:[#allocation17_spill] sm:$0xff] }
 0x183   : > { %v3058_v34 = vadd.f32 %v4115_v46, %v2760_v23  ;;  %v5445_v23 = vld [vmem:[#allocation13_spill] sm:$0xff]  ;;  %v2763_v61 = vadd.f32 %v5448_v56, %v2337_v35 }
 0x184   : > { %v5320_v44 = vpop.f32.mrf.mxu1  ;;  %v2993_v8 = vpop.f32.mrf.mxu0  ;;  %v2339_v28 = vadd.f32 %v5445_v23, %v2093_v4  ;;  %v2772_v4 = vadd.f32 %v5303_v32, %v2346_v10 }
 0x185   : > { %3074 = vst [vmem:[%s4390_s7 + $0x10] sm:$0xff] %v3058_v34  ;;  %v3056_v57 = vadd.f32 %v2993_v8, %v2758_v47  ;;  %v3115_v38 = vmul.f32 %v3058_v34, %v3058_v34  ;;  %v2773_v3 = vadd.f32 %v5320_v44, %v2347_v59 }
 0x186   : > { %v5328_v37 = vpop.f32.mrf.mxu1  ;;  %v4116_v45 = vpop.f32.mrf.mxu0  ;;  %v2765_v39 = vadd.f32 %v5447_v5, %v2339_v28 }
 0x187   : > { %3072 = vst [vmem:[%s4390_s7] sm:$0xff] %v3056_v57  ;;  %v3059_v51 = vadd.f32 %v4116_v45, %v2761_v30  ;;  %v3113_v46 = vmul.f32 %v3056_v57, %v3056_v57  ;;  %v2771_v26 = vadd.f32 %v5328_v37, %v2345_v21 }
 0x188   : > { %v4123_v43 = vpop.f32.mrf.mxu1  ;;  %v2996_v40 = vpop.f32.mrf.mxu0 }
 0x189   : > { %v5336_v15 = vadd.f32 %v4123_v43, %v2768_v31  ;;  %3075 = vst [vmem:[%s4390_s7 + $0x18] sm:$0xff] %v3059_v51  ;;  %v3057_v53 = vadd.f32 %v2996_v40, %v2759_v27  ;;  %v2770_v31 = vadd.f32 %v5310_v17, %v2344_v62  ;;  %v3116_v14 = vmul.f32 %v3059_v51, %v3059_v51 }
 0x18a   : > { %v3025_v36 = vpop.f32.mrf.mxu1  ;;  %v4119_v9 = vpop.f32.mrf.mxu0 }
 0x18b   : > { %3082 = vst [vmem:[%s4390_s7 + $0x50] sm:$0xff] %v5336_v15  ;;  %v5347_v54 = vadd.f32 %v3025_v36, %v2766_v7  ;;  %3073 = vst [vmem:[%s4390_s7 + $0x8] sm:$0xff] %v3057_v53  ;;  %v3089_v47 = vadd.f32 %v3057_v53, %v3056_v57  ;;  %v3114_v29 = vmul.f32 %v3057_v53, %v3057_v53 }
 0x18c   : > { %v4124_v6 = vpop.f32.mrf.mxu1  ;;  %v3062_v16 = vadd.f32 %v4119_v9, %v2764_v24  ;;  %v3009_v63 = vpop.f32.mrf.mxu0  ;;  %v3123_v28 = vmul.f32 %v5336_v15, %v5336_v15 }
 0x18d   : > { %3080 = vst [vmem:[%s4390_s7 + $0x40] sm:$0xff] %v5347_v54  ;;  %v5356_v18 = vadd.f32 %v4124_v6, %v2769_v52  ;;  %v3090_v33 = vadd.f32 %v3089_v47, %v3058_v34  ;;  %v3129_v30 = vadd.f32 %v3114_v29, %v3113_v46  ;;  %v3060_v32 = vadd.f32 %v3009_v63, %v2762_v0 }
 0x18e   : > { %v3028_v42 = vpop.f32.mrf.mxu1  ;;  %3078 = vst [vmem:[%s4390_s7 + $0x30] sm:$0xff] %v3062_v16  ;;  %v4120_v57 = vpop.f32.mrf.mxu0  ;;  %v3119_v50 = vmul.f32 %v3062_v16, %v3062_v16  ;;  %v3121_v52 = vmul.f32 %v5347_v54, %v5347_v54 }
 0x18f   : > { %3083 = vst [vmem:[%s4390_s7 + $0x58] sm:$0xff] %v5356_v18  ;;  %v3065_v8 = vadd.f32 %v3028_v42, %v2767_v49  ;;  %v3130_v55 = vadd.f32 %v3129_v30, %v3115_v38  ;;  %v3091_v34 = vadd.f32 %v3090_v33, %v3059_v51  ;;  %3076 = vst [vmem:[%s4390_s7 + $0x20] sm:$0xff] %v3060_v32 }
 0x190   : > { %v4127_v60 = vpop.f32.mrf.mxu1  ;;  %v3063_v48 = vadd.f32 %v4120_v57, %v2765_v39  ;;  %v3012_v41 = vpop.f32.mrf.mxu0  ;;  %v3117_v45 = vmul.f32 %v3060_v32, %v3060_v32  ;;  %v3124_v6 = vmul.f32 %v5356_v18, %v5356_v18  ;;  %v3088_v57 = vld [vmem:[%s4385_s4] sm:$0x1] }
 0x191   : > { %3081 = vst [vmem:[%s4390_s7 + $0x48] sm:$0xff] %v3065_v8  ;;  %v3070_v12 = vadd.f32 %v4127_v60, %v2772_v4  ;;  %v3092_v43 = vadd.f32 %v3091_v34, %v3060_v32  ;;  %v3131_v11 = vadd.f32 %v3130_v55, %v3116_v14  ;;  %v3061_v51 = vadd.f32 %v3012_v41, %v2763_v61 }
 0x192   : > { %v3041_v17 = vpop.f32.mrf.mxu1  ;;  %3079 = vst [vmem:[%s4390_s7 + $0x38] sm:$0xff] %v3063_v48  ;;  %v3120_v40 = vmul.f32 %v3063_v48, %v3063_v48  ;;  %v3122_v19 = vmul.f32 %v3065_v8, %v3065_v8 }
 0x193   : > { %3086 = vst [vmem:[%s4390_s7 + $0x70] sm:$0xff] %v3070_v12  ;;  %v3068_v27 = vadd.f32 %v3041_v17, %v2770_v31  ;;  %v3132_v1 = vadd.f32 %v3131_v11, %v3117_v45  ;;  %3077 = vst [vmem:[%s4390_s7 + $0x28] sm:$0xff] %v3061_v51  ;;  %v3093_v2 = vadd.f32 %v3092_v43, %v3061_v51 }
 0x194   : > { %v4128_v7 = vpop.f32.mrf.mxu1  ;;  %v3118_v20 = vmul.f32 %v3061_v51, %v3061_v51  ;;  %v3127_v59 = vmul.f32 %v3070_v12, %v3070_v12 }
 0x195   : > { %3084 = vst [vmem:[%s4390_s7 + $0x60] sm:$0xff] %v3068_v27  ;;  %v3071_v44 = vadd.f32 %v4128_v7, %v2773_v3  ;;  %v3094_v10 = vadd.f32 %v3093_v2, %v3062_v16  ;;  %v3125_v47 = vmul.f32 %v3068_v27, %v3068_v27 }
 0x196   : > { %v3044_v58 = vpop.f32.mrf.mxu1  ;;  %v3133_v36 = vadd.f32 %v3132_v1, %v3118_v20 }
 0x197   : > { %3087 = vst [vmem:[%s4390_s7 + $0x78] sm:$0xff] %v3071_v44  ;;  %v3069_v25 = vadd.f32 %v3044_v58, %v2771_v26  ;;  %v3095_v22 = vadd.f32 %v3094_v10, %v3063_v48  ;;  %v3128_v63 = vmul.f32 %v3071_v44, %v3071_v44 }
 0x198   : > { %v3134_v24 = vadd.f32 %v3133_v36, %v3119_v50 }
 0x199   : > { %3085 = vst [vmem:[%s4390_s7 + $0x68] sm:$0xff] %v3069_v25  ;;  %v3096_v37 = vadd.f32 %v3095_v22, %v5347_v54  ;;  %v3126_v35 = vmul.f32 %v3069_v25, %v3069_v25 }
 0x19a   : > { %v3135_v53 = vadd.f32 %v3134_v24, %v3120_v40 }
 0x19b   : > { %v3097_v23 = vadd.f32 %v3096_v37, %v3065_v8 }
 0x19c   : > { %v3136_v0 = vadd.f32 %v3135_v53, %v3121_v52 }
 0x19d   : > { %v3098_v49 = vadd.f32 %v3097_v23, %v5336_v15 }
 0x19e   : > { %v3137_v62 = vadd.f32 %v3136_v0, %v3122_v19 }
 0x19f   : > { %v3099_v9 = vadd.f32 %v3098_v49, %v5356_v18 }
 0x1a0   : > { %v3138_v46 = vadd.f32 %v3137_v62, %v3123_v28 }
 0x1a1   : > { %v3100_v29 = vadd.f32 %v3099_v9, %v3068_v27 }
 0x1a2   : > { %v3139_v13 = vadd.f32 %v3138_v46, %v3124_v6 }
 0x1a3   : > { %v3101_v54 = vadd.f32 %v3100_v29, %v3069_v25 }
 0x1a4   : > { %v3140_v4 = vadd.f32 %v3139_v13, %v3125_v47 }
 0x1a5   : > { %v3102_v42 = vadd.f32 %v3101_v54, %v3070_v12  ;;  %v3112_v12 = vld [vmem:[%s4385_s4 + $0x1] sm:$0x1] }
 0x1a6   : > { %v3141_v16 = vadd.f32 %v3140_v4, %v3126_v35 }
 0x1a7   : > { %v3103_v15 = vadd.f32 %v3102_v42, %v3071_v44 }
 0x1a8   : > { %v3142_v38 = vadd.f32 %v3141_v16, %v3127_v59 }
 0x1a9   : > { %v3104_v33 = vrot.slane %v3103_v15, 4 }
 0x1aa   : > { %v3143_v30 = vadd.f32 %v3142_v38, %v3128_v63 }
 0x1ab   : > { %v3105_v8 = vadd.f32 %v3104_v33, %v3103_v15 }
 0x1ac   : > { %v3144_v18 = vrot.slane %v3143_v30, 4 }
 0x1ad   : > { %v3106_v5 = vrot.slane %v3105_v8, 2 }
 0x1ae   : > { %v3145_v39 = vadd.f32 %v3144_v18, %v3143_v30 }
 0x1af   : > { %v3107_v31 = vadd.f32 %v3106_v5, %v3105_v8 }
 0x1b0   : > { %v3146_v21 = vrot.slane %v3145_v39, 2 }
 0x1b1   : > { %v3108_v60 = vrot.slane %v3107_v31, 1 }
 0x1b2   : > { %v3147_v32 = vadd.f32 %v3146_v21, %v3145_v39 }
 0x1b3   : > { %v3109_v14 = vadd.f32 %v3108_v60, %v3107_v31 }
 0x1b4   : > { %v3148_v55 = vrot.slane %v3147_v32, 1 }
 0x1b5   : > { %v3110_v34 = vadd.f32 %v3109_v14, %v3088_v57 }
 0x1b6   : > { %v3149_v56 = vadd.f32 %v3148_v55, %v3147_v32 }
 0x1b7   : > { %3111 = vst [vmem:[%s4385_s4] sm:$0x1] %v3110_v34 }
 0x1b8   : > { %v3150_v61 = vadd.f32 %v3149_v56, %v3112_v12 }
 0x1ba   : > { %3151 = vst [vmem:[%s4385_s4 + $0x1] sm:$0x1] %v3150_v61 }
 0x1bb PF: > { %s14_s16 = sadd.s32 1, %s4321_s16   ;;  %s5449_s12 = smov %s4313_s14 }
 0x1bc   : > { %p11_p8 = scmp.ge.s32.totalorder %s14_s16, 6   ;;  %s5450_s13 = smov %s4317_s15 }
 0x1bd   : > { %s5451_s14 = smov %s5454_s17  ;;  %s5452_s15 = smov %s5458_s18 }
 0x1be   :  { %13 = sbr.rel (!%p11_p8) target bundleno = 3 (0x3), region = 85 }

</bundles_post_ra>
